<compile_context>
chip_gen: v5e
topology: v5e:2x2
jax: 0.10.0
libtpu: 0.0.40
codegen_flags: <defaults>
</compile_context>

<pallas_src>
import functools

import jax
import jax.numpy as jnp
from jax.experimental import pallas as pl
from jax.experimental.pallas import tpu as pltpu


def _resblock_kernel(x_ref,             # (NB, H, W, C) f32 input block
                     w1_ref, b1_ref,    # conv #1: (9C, C) cdt, (1, C) f32
                     w2_ref, b2_ref,    # conv #2: (9C, C) cdt, (1, C) f32
                     o_ref,             # (NB, H, W, C) f32 output block
                     pad_ref,           # scratch (NB, H+2, W+2, C)  compute dtype
                     slab_ref,          # scratch (H+2, W, C)        compute dtype
                     patch_ref,         # scratch (NB*H*W, 9C)       compute dtype
                     *, NB, H, W, C, res_scale):
    HW = H * W
    cdt = pad_ref.dtype                 # MXU operand dtype (f32 or bf16)

    # Re-zero only the 1-pixel halo border each grid step (cheap, megacore-safe:
    # each core re-establishes the border on every step; interiors are rewritten).
    pad_ref[:, 0:1, :, :] = jnp.zeros((NB, 1, W + 2, C), cdt)
    pad_ref[:, H + 1:H + 2, :, :] = jnp.zeros((NB, 1, W + 2, C), cdt)
    pad_ref[:, :, 0:1, :] = jnp.zeros((NB, H + 2, 1, C), cdt)
    pad_ref[:, :, W + 1:W + 2, :] = jnp.zeros((NB, H + 2, 1, C), cdt)

    def stage_patches():
        # Build im2col matrix (NB*HW, 9C).  dx outer: dx=0 reads are already
        # sublane-aligned; dx=1/2 slabs are relayout-copied once into slab_ref,
        # then the 3 dy taps per dx are free leading-dim selections.
        for img in range(NB):
            r0 = img * HW
            pad_img = pad_ref.at[img]                    # (H+2, W+2, C) view
            for dx in range(3):
                use_slab = dx > 0
                if use_slab:
                    slab_ref[...] = pad_img[:, dx:dx + W, :]   # one misaligned copy
                for dy in range(3):
                    t = dy * 3 + dx                      # matches (dy, dx, ci) rows
                    if use_slab:
                        tap = slab_ref[dy:dy + H, :, :]
                    else:
                        tap = pad_img[dy:dy + H, 0:W, :]
                    patch_ref[r0:r0 + HW, t * C:(t + 1) * C] = tap.reshape(HW, C)

    def conv3x3(w_ref, b_ref):
        stage_patches()
        # Single fused MXU matmul per conv: (NB*HW, 9C) x (9C, C), f32 accumulate.
        return jnp.dot(patch_ref[...], w_ref[...],
                       preferred_element_type=jnp.float32) + b_ref[...]

    # ---- conv #1 + ReLU ----
    for img in range(NB):
        pad_ref.at[img][1:H + 1, 1:W + 1, :] = x_ref[img].astype(cdt)
    t1 = jnp.maximum(conv3x3(w1_ref, b1_ref), 0.0)        # (NB*HW, C) f32

    # ---- conv #2 (halo border of pad_ref is still zero; only interior rewritten) ----
    for img in range(NB):
        pad_ref.at[img][1:H + 1, 1:W + 1, :] = (
            t1[img * HW:(img + 1) * HW].reshape(H, W, C).astype(cdt))
    t2 = conv3x3(w2_ref, b2_ref)                          # (NB*HW, C) f32

    # ---- residual: out = conv_out * res_scale + x (f32).  x re-read here so its
    # live range does not overlap the conv/staging region.
    for img in range(NB):
        res = (t2[img * HW:(img + 1) * HW] * res_scale
               + x_ref[img].reshape(HW, C))
        o_ref[img] = res.reshape(H, W, C).astype(o_ref.dtype)


def _default_batch_block(N):
    # Keep >= 2 grid steps when possible (v7x has 2 TensorCores) while folding
    # larger batches so single-TC chips (v5e/v6e) do not pay N serial steps.
    if N <= 2:
        return 1
    if N % 2 == 0:
        return N // 2
    return 1


def resblock_forward_nhwc(x_nhwc, w1, b1, w2, b2, *, res_scale=1.0,
                          use_bf16=True, batch_block=None):
    """x_nhwc: (N, H, W, C) f32.  w1/w2: (3,3,C,C) HWIO.  b1/b2: (C,).

    use_bf16=True is the recommended default for v6e/v7x; pass False on v5e.
    batch_block images are processed per grid step (None -> heuristic)."""
    N, H, W, C = x_nhwc.shape
    assert H % 8 == 0 and W % 8 == 0, "H and W must be multiples of 8 (layout-free reshapes)"
    assert C <= 128, "C must fit in one lane tile"
    nb = _default_batch_block(N) if batch_block is None else batch_block
    assert N % nb == 0, "batch_block must divide N"
    cdt = jnp.bfloat16 if use_bf16 else jnp.float32

    # HWIO (3,3,C,C) -> im2col weight (9C, C); row order (dy, dx, ci) matches the
    # tap-staging order inside the kernel.  Casting weights in the wrapper halves
    # their DMA bytes in the bf16 path.
    w1_9 = w1.reshape(9 * C, C).astype(cdt)
    w2_9 = w2.reshape(9 * C, C).astype(cdt)
    b1r = b1.reshape(1, C).astype(jnp.float32)
    b2r = b2.reshape(1, C).astype(jnp.float32)

    kernel = functools.partial(_resblock_kernel, NB=nb, H=H, W=W, C=C,
                               res_scale=res_scale)
    full = lambda shape: pl.BlockSpec(shape, lambda b: (0,) * len(shape))

    out = pl.pallas_call(
        kernel,
        out_shape=jax.ShapeDtypeStruct((N, H, W, C), jnp.float32),
        grid_spec=pltpu.PrefetchScalarGridSpec(
            num_scalar_prefetch=0,
            grid=(N // nb,),
            in_specs=[
                pl.BlockSpec((nb, H, W, C), lambda b: (b, 0, 0, 0)),
                full((9 * C, C)), full((1, C)),
                full((9 * C, C)), full((1, C)),
            ],
            out_specs=pl.BlockSpec((nb, H, W, C), lambda b: (b, 0, 0, 0)),
            scratch_shapes=[
                pltpu.VMEM((nb, H + 2, W + 2, C), cdt),   # zero-padded activations
                pltpu.VMEM((H + 2, W, C), cdt),           # aligned dx-shifted slab
                pltpu.VMEM((nb * H * W, 9 * C), cdt),     # im2col patch matrix
            ],
        ),
        compiler_params=pltpu.CompilerParams(
            dimension_semantics=("parallel",)),
    )(x_nhwc, w1_9, b1r, w2_9, b2r)
    return out


def resblock_forward(x_nchw, w1, b1, w2, b2, *, res_scale=1.0,
                     use_bf16=True, batch_block=None):
    """PyTorch-convention (N, C, H, W) wrapper.  For chained blocks prefer the
    NHWC entry point above to avoid the per-call transposes."""
    x = jnp.transpose(x_nchw, (0, 2, 3, 1))
    y = resblock_forward_nhwc(x, w1, b1, w2, b2, res_scale=res_scale,
                              use_bf16=use_bf16, batch_block=batch_block)
    return jnp.transpose(y, (0, 3, 1, 2))


# ---------------- pure-JAX reference for verification ----------------
def resblock_reference(x_nchw, w1, b1, w2, b2, *, res_scale=1.0):
    x = jnp.transpose(x_nchw, (0, 2, 3, 1))

    def conv3(x, w, b):  # w: (3,3,Ci,Co) HWIO, cross-correlation == PyTorch Conv2d
        y = jax.lax.conv_general_dilated(
            x, w, window_strides=(1, 1), padding="SAME",
            dimension_numbers=("NHWC", "HWIO", "NHWC"))
        return y + b.reshape(1, 1, 1, -1)

    t = jnp.maximum(conv3(x, w1, b1), 0.0)
    t = conv3(t, w2, b2)
    out = t * res_scale + x
    return jnp.transpose(out, (0, 3, 1, 2))


if __name__ == "__main__":
    key = jax.random.PRNGKey(0)
    k_x, k_p = jax.random.split(key)

    N, C, H, W = 2, 32, 16, 16            # n_feats = 32
    res_scale = 0.1

    x = jax.random.normal(k_x, (N, C, H, W), jnp.float32)
    ks = jax.random.split(k_p, 4)
    s3 = 1.0 / (3 * 3 * C) ** 0.5
    w1 = jax.random.normal(ks[0], (3, 3, C, C), jnp.float32) * s3   # HWIO
    b1 = jax.random.normal(ks[1], (C,), jnp.float32) * 0.01
    w2 = jax.random.normal(ks[2], (3, 3, C, C), jnp.float32) * s3
    b2 = jax.random.normal(ks[3], (C,), jnp.float32) * 0.01

    ref = jax.block_until_ready(
        resblock_reference(x, w1, b1, w2, b2, res_scale=res_scale))

    # f32 operands, grid=(N,) (>=2 parallel steps -> both v7x TCs busy): tight tol.
    out = jax.block_until_ready(
        resblock_forward(x, w1, b1, w2, b2, res_scale=res_scale,
                         use_bf16=False, batch_block=1))
    assert out.shape == (N, C, H, W)
    err = float(jnp.max(jnp.abs(out - ref)))
    assert jnp.allclose(out, ref, atol=1e-4, rtol=1e-4), err

    # f32, whole batch folded into one grid step (v5e/v6e style: M = N*H*W).
    out_fold = jax.block_until_ready(
        resblock_forward(x, w1, b1, w2, b2, res_scale=res_scale,
                         use_bf16=False, batch_block=N))
    err_fold = float(jnp.max(jnp.abs(out_fold - ref)))
    assert jnp.allclose(out_fold, ref, atol=1e-4, rtol=1e-4), err_fold

    # bf16 MXU operands (default, v6e/v7x), f32 accumulation: looser tolerance.
    out_bf = jax.block_until_ready(
        resblock_forward(x, w1, b1, w2, b2, res_scale=res_scale, use_bf16=True))
    err_bf = float(jnp.max(jnp.abs(out_bf - ref)))
    assert jnp.allclose(out_bf, ref, atol=5e-2, rtol=5e-2), err_bf

    print("KERNEL_OK")
</pallas_src>

<mosaic_0001>
module attributes {stable_mosaic.version = 11 : i64} {
  func.func @_resblock_kernel(%arg0: i32, %arg1: memref<1x16x16x32xf32, #tpu.memory_space<vmem>>, %arg2: memref<288x32xf32, #tpu.memory_space<vmem>>, %arg3: memref<1x32xf32, #tpu.memory_space<vmem>>, %arg4: memref<288x32xf32, #tpu.memory_space<vmem>>, %arg5: memref<1x32xf32, #tpu.memory_space<vmem>>, %arg6: memref<1x16x16x32xf32, #tpu.memory_space<vmem>>, %arg7: memref<1x18x18x32xf32, #tpu.memory_space<vmem>>, %arg8: memref<18x16x32xf32, #tpu.memory_space<vmem>>, %arg9: memref<256x288xf32, #tpu.memory_space<vmem>>) attributes {dimension_semantics = [#tpu.dimension_semantics<parallel>], iteration_bounds = array<i64: 2>, scalar_prefetch = 0 : i64, scratch_operands = 3 : i64, tpu.core_type = #tpu.core_type<tc>, window_params = [{transform_indices = @transform_0, window_bounds = array<i64: 1, 16, 16, 32>}, {pipeline_mode = #tpu.pipeline_mode<synchronous>, transform_indices = @transform_1, window_bounds = array<i64: 288, 32>}, {pipeline_mode = #tpu.pipeline_mode<synchronous>, transform_indices = @transform_2, window_bounds = array<i64: 1, 32>}, {pipeline_mode = #tpu.pipeline_mode<synchronous>, transform_indices = @transform_3, window_bounds = array<i64: 288, 32>}, {pipeline_mode = #tpu.pipeline_mode<synchronous>, transform_indices = @transform_4, window_bounds = array<i64: 1, 32>}, {transform_indices = @transform_5, window_bounds = array<i64: 1, 16, 16, 32>}]} {
    %cst = arith.constant 0.000000e+00 : f32
    %0 = vector.broadcast %cst : f32 to vector<1x1x18x32xf32>
    %c0 = arith.constant 0 : index
    %c0_0 = arith.constant 0 : index
    %c0_1 = arith.constant 0 : index
    %c0_2 = arith.constant 0 : index
    %1 = vector.load %arg7[%c0, %c0_0, %c0_1, %c0_2] : memref<1x18x18x32xf32, #tpu.memory_space<vmem>>, vector<1x1x18x32xf32>
    tpu.vector_store %arg7[%c0, %c0_0, %c0_1, %c0_2], %0 {strides = array<i32>} : memref<1x18x18x32xf32, #tpu.memory_space<vmem>>, vector<1x1x18x32xf32>,
    %cst_3 = arith.constant 0.000000e+00 : f32
    %2 = vector.broadcast %cst_3 : f32 to vector<1x1x18x32xf32>
    %c0_4 = arith.constant 0 : index
    %c17 = arith.constant 17 : index
    %c0_5 = arith.constant 0 : index
    %c0_6 = arith.constant 0 : index
    %3 = vector.load %arg7[%c0_4, %c17, %c0_5, %c0_6] : memref<1x18x18x32xf32, #tpu.memory_space<vmem>>, vector<1x1x18x32xf32>
    tpu.vector_store %arg7[%c0_4, %c17, %c0_5, %c0_6], %2 {strides = array<i32>} : memref<1x18x18x32xf32, #tpu.memory_space<vmem>>, vector<1x1x18x32xf32>,
    %cst_7 = arith.constant 0.000000e+00 : f32
    %4 = vector.broadcast %cst_7 : f32 to vector<1x18x1x32xf32>
    %c0_8 = arith.constant 0 : index
    %c0_9 = arith.constant 0 : index
    %c0_10 = arith.constant 0 : index
    %c0_11 = arith.constant 0 : index
    %5 = vector.load %arg7[%c0_8, %c0_9, %c0_10, %c0_11] : memref<1x18x18x32xf32, #tpu.memory_space<vmem>>, vector<1x18x1x32xf32>
    tpu.vector_store %arg7[%c0_8, %c0_9, %c0_10, %c0_11], %4 {strides = array<i32>} : memref<1x18x18x32xf32, #tpu.memory_space<vmem>>, vector<1x18x1x32xf32>,
    %cst_12 = arith.constant 0.000000e+00 : f32
    %6 = vector.broadcast %cst_12 : f32 to vector<1x18x1x32xf32>
    %c0_13 = arith.constant 0 : index
    %c0_14 = arith.constant 0 : index
    %c17_15 = arith.constant 17 : index
    %c0_16 = arith.constant 0 : index
    %7 = vector.load %arg7[%c0_13, %c0_14, %c17_15, %c0_16] : memref<1x18x18x32xf32, #tpu.memory_space<vmem>>, vector<1x18x1x32xf32>
    tpu.vector_store %arg7[%c0_13, %c0_14, %c17_15, %c0_16], %6 {strides = array<i32>} : memref<1x18x18x32xf32, #tpu.memory_space<vmem>>, vector<1x18x1x32xf32>,
    %c0_17 = arith.constant 0 : index
    %c0_18 = arith.constant 0 : index
    %c0_19 = arith.constant 0 : index
    %c0_20 = arith.constant 0 : index
    %8 = vector.load %arg1[%c0_17, %c0_18, %c0_19, %c0_20] : memref<1x16x16x32xf32, #tpu.memory_space<vmem>>, vector<1x16x16x32xf32>
    %9 = vector.shape_cast %8 : vector<1x16x16x32xf32> to vector<16x16x32xf32>
    %c0_i32 = arith.constant 0 : i32
    %c0_i32_21 = arith.constant 0 : i32
    %c0_i32_22 = arith.constant 0 : i32
    %c0_i32_23 = arith.constant 0 : i32
    %10 = tpu.memref_slice %arg7[%c0_i32, %c0_i32_21, %c0_i32_22, %c0_i32_23] : memref<1x18x18x32xf32, #tpu.memory_space<vmem>> -> memref<1x18x18x32xf32, #tpu.memory_space<vmem>>
    %11 = tpu.memref_squeeze %10 : memref<1x18x18x32xf32, #tpu.memory_space<vmem>> -> memref<18x18x32xf32, #tpu.memory_space<vmem>>
    %c1 = arith.constant 1 : index
    %c1_24 = arith.constant 1 : index
    %c0_25 = arith.constant 0 : index
    %12 = vector.load %11[%c1, %c1_24, %c0_25] : memref<18x18x32xf32, #tpu.memory_space<vmem>>, vector<16x16x32xf32>
    tpu.vector_store %11[%c1, %c1_24, %c0_25], %9 {strides = array<i32>} : memref<18x18x32xf32, #tpu.memory_space<vmem>>, vector<16x16x32xf32>,
    %c0_i32_26 = arith.constant 0 : i32
    %c0_i32_27 = arith.constant 0 : i32
    %c0_i32_28 = arith.constant 0 : i32
    %c0_i32_29 = arith.constant 0 : i32
    %13 = tpu.memref_slice %arg7[%c0_i32_26, %c0_i32_27, %c0_i32_28, %c0_i32_29] : memref<1x18x18x32xf32, #tpu.memory_space<vmem>> -> memref<1x18x18x32xf32, #tpu.memory_space<vmem>>
    %14 = tpu.memref_squeeze %13 : memref<1x18x18x32xf32, #tpu.memory_space<vmem>> -> memref<18x18x32xf32, #tpu.memory_space<vmem>>
    %c0_30 = arith.constant 0 : index
    %c0_31 = arith.constant 0 : index
    %c0_32 = arith.constant 0 : index
    %15 = vector.load %14[%c0_30, %c0_31, %c0_32] : memref<18x18x32xf32, #tpu.memory_space<vmem>>, vector<16x16x32xf32>
    %16 = vector.shape_cast %15 : vector<16x16x32xf32> to vector<256x32xf32>
    %c0_33 = arith.constant 0 : index
    %c0_34 = arith.constant 0 : index
    %17 = vector.load %arg9[%c0_33, %c0_34] : memref<256x288xf32, #tpu.memory_space<vmem>>, vector<256x32xf32>
    tpu.vector_store %arg9[%c0_33, %c0_34], %16 {strides = array<i32>} : memref<256x288xf32, #tpu.memory_space<vmem>>, vector<256x32xf32>,
    %c0_i32_35 = arith.constant 0 : i32
    %c0_i32_36 = arith.constant 0 : i32
    %c0_i32_37 = arith.constant 0 : i32
    %c0_i32_38 = arith.constant 0 : i32
    %18 = tpu.memref_slice %arg7[%c0_i32_35, %c0_i32_36, %c0_i32_37, %c0_i32_38] : memref<1x18x18x32xf32, #tpu.memory_space<vmem>> -> memref<1x18x18x32xf32, #tpu.memory_space<vmem>>
    %19 = tpu.memref_squeeze %18 : memref<1x18x18x32xf32, #tpu.memory_space<vmem>> -> memref<18x18x32xf32, #tpu.memory_space<vmem>>
    %c1_39 = arith.constant 1 : index
    %c0_40 = arith.constant 0 : index
    %c0_41 = arith.constant 0 : index
    %20 = vector.load %19[%c1_39, %c0_40, %c0_41] : memref<18x18x32xf32, #tpu.memory_space<vmem>>, vector<16x16x32xf32>
    %21 = vector.shape_cast %20 : vector<16x16x32xf32> to vector<256x32xf32>
    %c0_42 = arith.constant 0 : index
    %c96 = arith.constant 96 : index
    %22 = vector.load %arg9[%c0_42, %c96] : memref<256x288xf32, #tpu.memory_space<vmem>>, vector<256x32xf32>
    tpu.vector_store %arg9[%c0_42, %c96], %21 {strides = array<i32>} : memref<256x288xf32, #tpu.memory_space<vmem>>, vector<256x32xf32>,
    %c0_i32_43 = arith.constant 0 : i32
    %c0_i32_44 = arith.constant 0 : i32
    %c0_i32_45 = arith.constant 0 : i32
    %c0_i32_46 = arith.constant 0 : i32
    %23 = tpu.memref_slice %arg7[%c0_i32_43, %c0_i32_44, %c0_i32_45, %c0_i32_46] : memref<1x18x18x32xf32, #tpu.memory_space<vmem>> -> memref<1x18x18x32xf32, #tpu.memory_space<vmem>>
    %24 = tpu.memref_squeeze %23 : memref<1x18x18x32xf32, #tpu.memory_space<vmem>> -> memref<18x18x32xf32, #tpu.memory_space<vmem>>
    %c2 = arith.constant 2 : index
    %c0_47 = arith.constant 0 : index
    %c0_48 = arith.constant 0 : index
    %25 = vector.load %24[%c2, %c0_47, %c0_48] : memref<18x18x32xf32, #tpu.memory_space<vmem>>, vector<16x16x32xf32>
    %26 = vector.shape_cast %25 : vector<16x16x32xf32> to vector<256x32xf32>
    %c0_49 = arith.constant 0 : index
    %c192 = arith.constant 192 : index
    %27 = vector.load %arg9[%c0_49, %c192] : memref<256x288xf32, #tpu.memory_space<vmem>>, vector<256x32xf32>
    tpu.vector_store %arg9[%c0_49, %c192], %26 {strides = array<i32>} : memref<256x288xf32, #tpu.memory_space<vmem>>, vector<256x32xf32>,
    %c0_i32_50 = arith.constant 0 : i32
    %c0_i32_51 = arith.constant 0 : i32
    %c0_i32_52 = arith.constant 0 : i32
    %c0_i32_53 = arith.constant 0 : i32
    %28 = tpu.memref_slice %arg7[%c0_i32_50, %c0_i32_51, %c0_i32_52, %c0_i32_53] : memref<1x18x18x32xf32, #tpu.memory_space<vmem>> -> memref<1x18x18x32xf32, #tpu.memory_space<vmem>>
    %29 = tpu.memref_squeeze %28 : memref<1x18x18x32xf32, #tpu.memory_space<vmem>> -> memref<18x18x32xf32, #tpu.memory_space<vmem>>
    %c0_54 = arith.constant 0 : index
    %c1_55 = arith.constant 1 : index
    %c0_56 = arith.constant 0 : index
    %30 = vector.load %29[%c0_54, %c1_55, %c0_56] : memref<18x18x32xf32, #tpu.memory_space<vmem>>, vector<18x16x32xf32>
    %c0_57 = arith.constant 0 : index
    %c0_58 = arith.constant 0 : index
    %c0_59 = arith.constant 0 : index
    %31 = vector.load %arg8[%c0_57, %c0_58, %c0_59] : memref<18x16x32xf32, #tpu.memory_space<vmem>>, vector<18x16x32xf32>
    tpu.vector_store %arg8[%c0_57, %c0_58, %c0_59], %30 {strides = array<i32>} : memref<18x16x32xf32, #tpu.memory_space<vmem>>, vector<18x16x32xf32>,
    %c0_60 = arith.constant 0 : index
    %c0_61 = arith.constant 0 : index
    %c0_62 = arith.constant 0 : index
    %32 = vector.load %arg8[%c0_60, %c0_61, %c0_62] : memref<18x16x32xf32, #tpu.memory_space<vmem>>, vector<16x16x32xf32>
    %33 = vector.shape_cast %32 : vector<16x16x32xf32> to vector<256x32xf32>
    %c0_63 = arith.constant 0 : index
    %c32 = arith.constant 32 : index
    %34 = vector.load %arg9[%c0_63, %c32] : memref<256x288xf32, #tpu.memory_space<vmem>>, vector<256x32xf32>
    tpu.vector_store %arg9[%c0_63, %c32], %33 {strides = array<i32>} : memref<256x288xf32, #tpu.memory_space<vmem>>, vector<256x32xf32>,
    %c1_64 = arith.constant 1 : index
    %c0_65 = arith.constant 0 : index
    %c0_66 = arith.constant 0 : index
    %35 = vector.load %arg8[%c1_64, %c0_65, %c0_66] : memref<18x16x32xf32, #tpu.memory_space<vmem>>, vector<16x16x32xf32>
    %36 = vector.shape_cast %35 : vector<16x16x32xf32> to vector<256x32xf32>
    %c0_67 = arith.constant 0 : index
    %c128 = arith.constant 128 : index
    %37 = vector.load %arg9[%c0_67, %c128] : memref<256x288xf32, #tpu.memory_space<vmem>>, vector<256x32xf32>
    tpu.vector_store %arg9[%c0_67, %c128], %36 {strides = array<i32>} : memref<256x288xf32, #tpu.memory_space<vmem>>, vector<256x32xf32>,
    %c2_68 = arith.constant 2 : index
    %c0_69 = arith.constant 0 : index
    %c0_70 = arith.constant 0 : index
    %38 = vector.load %arg8[%c2_68, %c0_69, %c0_70] : memref<18x16x32xf32, #tpu.memory_space<vmem>>, vector<16x16x32xf32>
    %39 = vector.shape_cast %38 : vector<16x16x32xf32> to vector<256x32xf32>
    %c0_71 = arith.constant 0 : index
    %c224 = arith.constant 224 : index
    %40 = vector.load %arg9[%c0_71, %c224] : memref<256x288xf32, #tpu.memory_space<vmem>>, vector<256x32xf32>
    tpu.vector_store %arg9[%c0_71, %c224], %39 {strides = array<i32>} : memref<256x288xf32, #tpu.memory_space<vmem>>, vector<256x32xf32>,
    %c0_i32_72 = arith.constant 0 : i32
    %c0_i32_73 = arith.constant 0 : i32
    %c0_i32_74 = arith.constant 0 : i32
    %c0_i32_75 = arith.constant 0 : i32
    %41 = tpu.memref_slice %arg7[%c0_i32_72, %c0_i32_73, %c0_i32_74, %c0_i32_75] : memref<1x18x18x32xf32, #tpu.memory_space<vmem>> -> memref<1x18x18x32xf32, #tpu.memory_space<vmem>>
    %42 = tpu.memref_squeeze %41 : memref<1x18x18x32xf32, #tpu.memory_space<vmem>> -> memref<18x18x32xf32, #tpu.memory_space<vmem>>
    %c0_76 = arith.constant 0 : index
    %c2_77 = arith.constant 2 : index
    %c0_78 = arith.constant 0 : index
    %43 = vector.load %42[%c0_76, %c2_77, %c0_78] : memref<18x18x32xf32, #tpu.memory_space<vmem>>, vector<18x16x32xf32>
    %c0_79 = arith.constant 0 : index
    %c0_80 = arith.constant 0 : index
    %c0_81 = arith.constant 0 : index
    %44 = vector.load %arg8[%c0_79, %c0_80, %c0_81] : memref<18x16x32xf32, #tpu.memory_space<vmem>>, vector<18x16x32xf32>
    tpu.vector_store %arg8[%c0_79, %c0_80, %c0_81], %43 {strides = array<i32>} : memref<18x16x32xf32, #tpu.memory_space<vmem>>, vector<18x16x32xf32>,
    %c0_82 = arith.constant 0 : index
    %c0_83 = arith.constant 0 : index
    %c0_84 = arith.constant 0 : index
    %45 = vector.load %arg8[%c0_82, %c0_83, %c0_84] : memref<18x16x32xf32, #tpu.memory_space<vmem>>, vector<16x16x32xf32>
    %46 = vector.shape_cast %45 : vector<16x16x32xf32> to vector<256x32xf32>
    %c0_85 = arith.constant 0 : index
    %c64 = arith.constant 64 : index
    %47 = vector.load %arg9[%c0_85, %c64] : memref<256x288xf32, #tpu.memory_space<vmem>>, vector<256x32xf32>
    tpu.vector_store %arg9[%c0_85, %c64], %46 {strides = array<i32>} : memref<256x288xf32, #tpu.memory_space<vmem>>, vector<256x32xf32>,
    %c1_86 = arith.constant 1 : index
    %c0_87 = arith.constant 0 : index
    %c0_88 = arith.constant 0 : index
    %48 = vector.load %arg8[%c1_86, %c0_87, %c0_88] : memref<18x16x32xf32, #tpu.memory_space<vmem>>, vector<16x16x32xf32>
    %49 = vector.shape_cast %48 : vector<16x16x32xf32> to vector<256x32xf32>
    %c0_89 = arith.constant 0 : index
    %c160 = arith.constant 160 : index
    %50 = vector.load %arg9[%c0_89, %c160] : memref<256x288xf32, #tpu.memory_space<vmem>>, vector<256x32xf32>
    tpu.vector_store %arg9[%c0_89, %c160], %49 {strides = array<i32>} : memref<256x288xf32, #tpu.memory_space<vmem>>, vector<256x32xf32>,
    %c2_90 = arith.constant 2 : index
    %c0_91 = arith.constant 0 : index
    %c0_92 = arith.constant 0 : index
    %51 = vector.load %arg8[%c2_90, %c0_91, %c0_92] : memref<18x16x32xf32, #tpu.memory_space<vmem>>, vector<16x16x32xf32>
    %52 = vector.shape_cast %51 : vector<16x16x32xf32> to vector<256x32xf32>
    %c0_93 = arith.constant 0 : index
    %c256 = arith.constant 256 : index
    %53 = vector.load %arg9[%c0_93, %c256] : memref<256x288xf32, #tpu.memory_space<vmem>>, vector<256x32xf32>
    tpu.vector_store %arg9[%c0_93, %c256], %52 {strides = array<i32>} : memref<256x288xf32, #tpu.memory_space<vmem>>, vector<256x32xf32>,
    %c0_94 = arith.constant 0 : index
    %c0_95 = arith.constant 0 : index
    %54 = vector.load %arg9[%c0_94, %c0_95] : memref<256x288xf32, #tpu.memory_space<vmem>>, vector<256x288xf32>
    %c0_96 = arith.constant 0 : index
    %c0_97 = arith.constant 0 : index
    %55 = vector.load %arg2[%c0_96, %c0_97] : memref<288x32xf32, #tpu.memory_space<vmem>>, vector<288x32xf32>
    %cst_98 = arith.constant dense<0.000000e+00> : vector<256x32xf32>
    %56 = tpu.matmul %54, %55, %cst_98 {dimension_numbers = #tpu.dot_dimension_numbers<[1], [0], [0], [1], [0, 0, 1, 1], [], []>} : vector<256x288xf32>, vector<288x32xf32>, vector<256x32xf32> -> vector<256x32xf32>
    %c0_99 = arith.constant 0 : index
    %c0_100 = arith.constant 0 : index
    %57 = vector.load %arg3[%c0_99, %c0_100] : memref<1x32xf32, #tpu.memory_space<vmem>>, vector<1x32xf32>
    %58 = vector.broadcast %57 : vector<1x32xf32> to vector<256x32xf32>
    %59 = arith.addf %56, %58 : vector<256x32xf32>
    %cst_101 = arith.constant 0.000000e+00 : f32
    %60 = vector.broadcast %cst_101 : f32 to vector<256x32xf32>
    %61 = arith.maximumf %59, %60 : vector<256x32xf32>
    %62 = vector.shape_cast %61 : vector<256x32xf32> to vector<16x16x32xf32>
    %c0_i32_102 = arith.constant 0 : i32
    %c0_i32_103 = arith.constant 0 : i32
    %c0_i32_104 = arith.constant 0 : i32
    %c0_i32_105 = arith.constant 0 : i32
    %63 = tpu.memref_slice %arg7[%c0_i32_102, %c0_i32_103, %c0_i32_104, %c0_i32_105] : memref<1x18x18x32xf32, #tpu.memory_space<vmem>> -> memref<1x18x18x32xf32, #tpu.memory_space<vmem>>
    %64 = tpu.memref_squeeze %63 : memref<1x18x18x32xf32, #tpu.memory_space<vmem>> -> memref<18x18x32xf32, #tpu.memory_space<vmem>>
    %c1_106 = arith.constant 1 : index
    %c1_107 = arith.constant 1 : index
    %c0_108 = arith.constant 0 : index
    %65 = vector.load %64[%c1_106, %c1_107, %c0_108] : memref<18x18x32xf32, #tpu.memory_space<vmem>>, vector<16x16x32xf32>
    tpu.vector_store %64[%c1_106, %c1_107, %c0_108], %62 {strides = array<i32>} : memref<18x18x32xf32, #tpu.memory_space<vmem>>, vector<16x16x32xf32>,
    %c0_i32_109 = arith.constant 0 : i32
    %c0_i32_110 = arith.constant 0 : i32
    %c0_i32_111 = arith.constant 0 : i32
    %c0_i32_112 = arith.constant 0 : i32
    %66 = tpu.memref_slice %arg7[%c0_i32_109, %c0_i32_110, %c0_i32_111, %c0_i32_112] : memref<1x18x18x32xf32, #tpu.memory_space<vmem>> -> memref<1x18x18x32xf32, #tpu.memory_space<vmem>>
    %67 = tpu.memref_squeeze %66 : memref<1x18x18x32xf32, #tpu.memory_space<vmem>> -> memref<18x18x32xf32, #tpu.memory_space<vmem>>
    %c0_113 = arith.constant 0 : index
    %c0_114 = arith.constant 0 : index
    %c0_115 = arith.constant 0 : index
    %68 = vector.load %67[%c0_113, %c0_114, %c0_115] : memref<18x18x32xf32, #tpu.memory_space<vmem>>, vector<16x16x32xf32>
    %69 = vector.shape_cast %68 : vector<16x16x32xf32> to vector<256x32xf32>
    %c0_116 = arith.constant 0 : index
    %c0_117 = arith.constant 0 : index
    %70 = vector.load %arg9[%c0_116, %c0_117] : memref<256x288xf32, #tpu.memory_space<vmem>>, vector<256x32xf32>
    tpu.vector_store %arg9[%c0_116, %c0_117], %69 {strides = array<i32>} : memref<256x288xf32, #tpu.memory_space<vmem>>, vector<256x32xf32>,
    %c0_i32_118 = arith.constant 0 : i32
    %c0_i32_119 = arith.constant 0 : i32
    %c0_i32_120 = arith.constant 0 : i32
    %c0_i32_121 = arith.constant 0 : i32
    %71 = tpu.memref_slice %arg7[%c0_i32_118, %c0_i32_119, %c0_i32_120, %c0_i32_121] : memref<1x18x18x32xf32, #tpu.memory_space<vmem>> -> memref<1x18x18x32xf32, #tpu.memory_space<vmem>>
    %72 = tpu.memref_squeeze %71 : memref<1x18x18x32xf32, #tpu.memory_space<vmem>> -> memref<18x18x32xf32, #tpu.memory_space<vmem>>
    %c1_122 = arith.constant 1 : index
    %c0_123 = arith.constant 0 : index
    %c0_124 = arith.constant 0 : index
    %73 = vector.load %72[%c1_122, %c0_123, %c0_124] : memref<18x18x32xf32, #tpu.memory_space<vmem>>, vector<16x16x32xf32>
    %74 = vector.shape_cast %73 : vector<16x16x32xf32> to vector<256x32xf32>
    %c0_125 = arith.constant 0 : index
    %c96_126 = arith.constant 96 : index
    %75 = vector.load %arg9[%c0_125, %c96_126] : memref<256x288xf32, #tpu.memory_space<vmem>>, vector<256x32xf32>
    tpu.vector_store %arg9[%c0_125, %c96_126], %74 {strides = array<i32>} : memref<256x288xf32, #tpu.memory_space<vmem>>, vector<256x32xf32>,
    %c0_i32_127 = arith.constant 0 : i32
    %c0_i32_128 = arith.constant 0 : i32
    %c0_i32_129 = arith.constant 0 : i32
    %c0_i32_130 = arith.constant 0 : i32
    %76 = tpu.memref_slice %arg7[%c0_i32_127, %c0_i32_128, %c0_i32_129, %c0_i32_130] : memref<1x18x18x32xf32, #tpu.memory_space<vmem>> -> memref<1x18x18x32xf32, #tpu.memory_space<vmem>>
    %77 = tpu.memref_squeeze %76 : memref<1x18x18x32xf32, #tpu.memory_space<vmem>> -> memref<18x18x32xf32, #tpu.memory_space<vmem>>
    %c2_131 = arith.constant 2 : index
    %c0_132 = arith.constant 0 : index
    %c0_133 = arith.constant 0 : index
    %78 = vector.load %77[%c2_131, %c0_132, %c0_133] : memref<18x18x32xf32, #tpu.memory_space<vmem>>, vector<16x16x32xf32>
    %79 = vector.shape_cast %78 : vector<16x16x32xf32> to vector<256x32xf32>
    %c0_134 = arith.constant 0 : index
    %c192_135 = arith.constant 192 : index
    %80 = vector.load %arg9[%c0_134, %c192_135] : memref<256x288xf32, #tpu.memory_space<vmem>>, vector<256x32xf32>
    tpu.vector_store %arg9[%c0_134, %c192_135], %79 {strides = array<i32>} : memref<256x288xf32, #tpu.memory_space<vmem>>, vector<256x32xf32>,
    %c0_i32_136 = arith.constant 0 : i32
    %c0_i32_137 = arith.constant 0 : i32
    %c0_i32_138 = arith.constant 0 : i32
    %c0_i32_139 = arith.constant 0 : i32
    %81 = tpu.memref_slice %arg7[%c0_i32_136, %c0_i32_137, %c0_i32_138, %c0_i32_139] : memref<1x18x18x32xf32, #tpu.memory_space<vmem>> -> memref<1x18x18x32xf32, #tpu.memory_space<vmem>>
    %82 = tpu.memref_squeeze %81 : memref<1x18x18x32xf32, #tpu.memory_space<vmem>> -> memref<18x18x32xf32, #tpu.memory_space<vmem>>
    %c0_140 = arith.constant 0 : index
    %c1_141 = arith.constant 1 : index
    %c0_142 = arith.constant 0 : index
    %83 = vector.load %82[%c0_140, %c1_141, %c0_142] : memref<18x18x32xf32, #tpu.memory_space<vmem>>, vector<18x16x32xf32>
    %c0_143 = arith.constant 0 : index
    %c0_144 = arith.constant 0 : index
    %c0_145 = arith.constant 0 : index
    %84 = vector.load %arg8[%c0_143, %c0_144, %c0_145] : memref<18x16x32xf32, #tpu.memory_space<vmem>>, vector<18x16x32xf32>
    tpu.vector_store %arg8[%c0_143, %c0_144, %c0_145], %83 {strides = array<i32>} : memref<18x16x32xf32, #tpu.memory_space<vmem>>, vector<18x16x32xf32>,
    %c0_146 = arith.constant 0 : index
    %c0_147 = arith.constant 0 : index
    %c0_148 = arith.constant 0 : index
    %85 = vector.load %arg8[%c0_146, %c0_147, %c0_148] : memref<18x16x32xf32, #tpu.memory_space<vmem>>, vector<16x16x32xf32>
    %86 = vector.shape_cast %85 : vector<16x16x32xf32> to vector<256x32xf32>
    %c0_149 = arith.constant 0 : index
    %c32_150 = arith.constant 32 : index
    %87 = vector.load %arg9[%c0_149, %c32_150] : memref<256x288xf32, #tpu.memory_space<vmem>>, vector<256x32xf32>
    tpu.vector_store %arg9[%c0_149, %c32_150], %86 {strides = array<i32>} : memref<256x288xf32, #tpu.memory_space<vmem>>, vector<256x32xf32>,
    %c1_151 = arith.constant 1 : index
    %c0_152 = arith.constant 0 : index
    %c0_153 = arith.constant 0 : index
    %88 = vector.load %arg8[%c1_151, %c0_152, %c0_153] : memref<18x16x32xf32, #tpu.memory_space<vmem>>, vector<16x16x32xf32>
    %89 = vector.shape_cast %88 : vector<16x16x32xf32> to vector<256x32xf32>
    %c0_154 = arith.constant 0 : index
    %c128_155 = arith.constant 128 : index
    %90 = vector.load %arg9[%c0_154, %c128_155] : memref<256x288xf32, #tpu.memory_space<vmem>>, vector<256x32xf32>
    tpu.vector_store %arg9[%c0_154, %c128_155], %89 {strides = array<i32>} : memref<256x288xf32, #tpu.memory_space<vmem>>, vector<256x32xf32>,
    %c2_156 = arith.constant 2 : index
    %c0_157 = arith.constant 0 : index
    %c0_158 = arith.constant 0 : index
    %91 = vector.load %arg8[%c2_156, %c0_157, %c0_158] : memref<18x16x32xf32, #tpu.memory_space<vmem>>, vector<16x16x32xf32>
    %92 = vector.shape_cast %91 : vector<16x16x32xf32> to vector<256x32xf32>
    %c0_159 = arith.constant 0 : index
    %c224_160 = arith.constant 224 : index
    %93 = vector.load %arg9[%c0_159, %c224_160] : memref<256x288xf32, #tpu.memory_space<vmem>>, vector<256x32xf32>
    tpu.vector_store %arg9[%c0_159, %c224_160], %92 {strides = array<i32>} : memref<256x288xf32, #tpu.memory_space<vmem>>, vector<256x32xf32>,
    %c0_i32_161 = arith.constant 0 : i32
    %c0_i32_162 = arith.constant 0 : i32
    %c0_i32_163 = arith.constant 0 : i32
    %c0_i32_164 = arith.constant 0 : i32
    %94 = tpu.memref_slice %arg7[%c0_i32_161, %c0_i32_162, %c0_i32_163, %c0_i32_164] : memref<1x18x18x32xf32, #tpu.memory_space<vmem>> -> memref<1x18x18x32xf32, #tpu.memory_space<vmem>>
    %95 = tpu.memref_squeeze %94 : memref<1x18x18x32xf32, #tpu.memory_space<vmem>> -> memref<18x18x32xf32, #tpu.memory_space<vmem>>
    %c0_165 = arith.constant 0 : index
    %c2_166 = arith.constant 2 : index
    %c0_167 = arith.constant 0 : index
    %96 = vector.load %95[%c0_165, %c2_166, %c0_167] : memref<18x18x32xf32, #tpu.memory_space<vmem>>, vector<18x16x32xf32>
    %c0_168 = arith.constant 0 : index
    %c0_169 = arith.constant 0 : index
    %c0_170 = arith.constant 0 : index
    %97 = vector.load %arg8[%c0_168, %c0_169, %c0_170] : memref<18x16x32xf32, #tpu.memory_space<vmem>>, vector<18x16x32xf32>
    tpu.vector_store %arg8[%c0_168, %c0_169, %c0_170], %96 {strides = array<i32>} : memref<18x16x32xf32, #tpu.memory_space<vmem>>, vector<18x16x32xf32>,
    %c0_171 = arith.constant 0 : index
    %c0_172 = arith.constant 0 : index
    %c0_173 = arith.constant 0 : index
    %98 = vector.load %arg8[%c0_171, %c0_172, %c0_173] : memref<18x16x32xf32, #tpu.memory_space<vmem>>, vector<16x16x32xf32>
    %99 = vector.shape_cast %98 : vector<16x16x32xf32> to vector<256x32xf32>
    %c0_174 = arith.constant 0 : index
    %c64_175 = arith.constant 64 : index
    %100 = vector.load %arg9[%c0_174, %c64_175] : memref<256x288xf32, #tpu.memory_space<vmem>>, vector<256x32xf32>
    tpu.vector_store %arg9[%c0_174, %c64_175], %99 {strides = array<i32>} : memref<256x288xf32, #tpu.memory_space<vmem>>, vector<256x32xf32>,
    %c1_176 = arith.constant 1 : index
    %c0_177 = arith.constant 0 : index
    %c0_178 = arith.constant 0 : index
    %101 = vector.load %arg8[%c1_176, %c0_177, %c0_178] : memref<18x16x32xf32, #tpu.memory_space<vmem>>, vector<16x16x32xf32>
    %102 = vector.shape_cast %101 : vector<16x16x32xf32> to vector<256x32xf32>
    %c0_179 = arith.constant 0 : index
    %c160_180 = arith.constant 160 : index
    %103 = vector.load %arg9[%c0_179, %c160_180] : memref<256x288xf32, #tpu.memory_space<vmem>>, vector<256x32xf32>
    tpu.vector_store %arg9[%c0_179, %c160_180], %102 {strides = array<i32>} : memref<256x288xf32, #tpu.memory_space<vmem>>, vector<256x32xf32>,
    %c2_181 = arith.constant 2 : index
    %c0_182 = arith.constant 0 : index
    %c0_183 = arith.constant 0 : index
    %104 = vector.load %arg8[%c2_181, %c0_182, %c0_183] : memref<18x16x32xf32, #tpu.memory_space<vmem>>, vector<16x16x32xf32>
    %105 = vector.shape_cast %104 : vector<16x16x32xf32> to vector<256x32xf32>
    %c0_184 = arith.constant 0 : index
    %c256_185 = arith.constant 256 : index
    %106 = vector.load %arg9[%c0_184, %c256_185] : memref<256x288xf32, #tpu.memory_space<vmem>>, vector<256x32xf32>
    tpu.vector_store %arg9[%c0_184, %c256_185], %105 {strides = array<i32>} : memref<256x288xf32, #tpu.memory_space<vmem>>, vector<256x32xf32>,
    %c0_186 = arith.constant 0 : index
    %c0_187 = arith.constant 0 : index
    %107 = vector.load %arg9[%c0_186, %c0_187] : memref<256x288xf32, #tpu.memory_space<vmem>>, vector<256x288xf32>
    %c0_188 = arith.constant 0 : index
    %c0_189 = arith.constant 0 : index
    %108 = vector.load %arg4[%c0_188, %c0_189] : memref<288x32xf32, #tpu.memory_space<vmem>>, vector<288x32xf32>
    %cst_190 = arith.constant dense<0.000000e+00> : vector<256x32xf32>
    %109 = tpu.matmul %107, %108, %cst_190 {dimension_numbers = #tpu.dot_dimension_numbers<[1], [0], [0], [1], [0, 0, 1, 1], [], []>} : vector<256x288xf32>, vector<288x32xf32>, vector<256x32xf32> -> vector<256x32xf32>
    %c0_191 = arith.constant 0 : index
    %c0_192 = arith.constant 0 : index
    %110 = vector.load %arg5[%c0_191, %c0_192] : memref<1x32xf32, #tpu.memory_space<vmem>>, vector<1x32xf32>
    %111 = vector.broadcast %110 : vector<1x32xf32> to vector<256x32xf32>
    %112 = arith.addf %109, %111 : vector<256x32xf32>
    %cst_193 = arith.constant 1.000000e-01 : f32
    %113 = vector.broadcast %cst_193 : f32 to vector<256x32xf32>
    %114 = arith.mulf %112, %113 : vector<256x32xf32>
    %c0_194 = arith.constant 0 : index
    %c0_195 = arith.constant 0 : index
    %c0_196 = arith.constant 0 : index
    %c0_197 = arith.constant 0 : index
    %115 = vector.load %arg1[%c0_194, %c0_195, %c0_196, %c0_197] : memref<1x16x16x32xf32, #tpu.memory_space<vmem>>, vector<1x16x16x32xf32>
    %116 = vector.shape_cast %115 : vector<1x16x16x32xf32> to vector<16x16x32xf32>
    %117 = vector.shape_cast %116 : vector<16x16x32xf32> to vector<256x32xf32>
    %118 = arith.addf %114, %117 : vector<256x32xf32>
    %119 = vector.shape_cast %118 : vector<256x32xf32> to vector<16x16x32xf32>
    %c0_198 = arith.constant 0 : index
    %c0_199 = arith.constant 0 : index
    %c0_200 = arith.constant 0 : index
    %c0_201 = arith.constant 0 : index
    %120 = vector.load %arg6[%c0_198, %c0_199, %c0_200, %c0_201] : memref<1x16x16x32xf32, #tpu.memory_space<vmem>>, vector<1x16x16x32xf32>
    %121 = vector.shape_cast %120 : vector<1x16x16x32xf32> to vector<16x16x32xf32>
    %122 = vector.shape_cast %119 : vector<16x16x32xf32> to vector<1x16x16x32xf32>
    tpu.vector_store %arg6[%c0_198, %c0_199, %c0_200, %c0_201], %122 {strides = array<i32>} : memref<1x16x16x32xf32, #tpu.memory_space<vmem>>, vector<1x16x16x32xf32>,
    return
  }
  func.func @transform_0(%arg0: i32) -> (i32, i32, i32, i32) {
    %c0_i32 = arith.constant 0 : i32
    %c0_i32_0 = arith.constant 0 : i32
    %c0_i32_1 = arith.constant 0 : i32
    %c0_i32_2 = arith.constant 0 : i32
    return %arg0, %c0_i32, %c0_i32_0, %c0_i32_1 : i32, i32, i32, i32
  }
  func.func @transform_1(%arg0: i32) -> (i32, i32) {
    %c0_i32 = arith.constant 0 : i32
    %c0_i32_0 = arith.constant 0 : i32
    %c0_i32_1 = arith.constant 0 : i32
    return %c0_i32, %c0_i32_0 : i32, i32
  }
  func.func @transform_2(%arg0: i32) -> (i32, i32) {
    %c0_i32 = arith.constant 0 : i32
    %c0_i32_0 = arith.constant 0 : i32
    %c0_i32_1 = arith.constant 0 : i32
    return %c0_i32, %c0_i32_0 : i32, i32
  }
  func.func @transform_3(%arg0: i32) -> (i32, i32) {
    %c0_i32 = arith.constant 0 : i32
    %c0_i32_0 = arith.constant 0 : i32
    %c0_i32_1 = arith.constant 0 : i32
    return %c0_i32, %c0_i32_0 : i32, i32
  }
  func.func @transform_4(%arg0: i32) -> (i32, i32) {
    %c0_i32 = arith.constant 0 : i32
    %c0_i32_0 = arith.constant 0 : i32
    %c0_i32_1 = arith.constant 0 : i32
    return %c0_i32, %c0_i32_0 : i32, i32
  }
  func.func @transform_5(%arg0: i32) -> (i32, i32, i32, i32) {
    %c0_i32 = arith.constant 0 : i32
    %c0_i32_0 = arith.constant 0 : i32
    %c0_i32_1 = arith.constant 0 : i32
    %c0_i32_2 = arith.constant 0 : i32
    return %arg0, %c0_i32, %c0_i32_0, %c0_i32_1 : i32, i32, i32, i32
  }
}

</mosaic_0001>

<bundles_post_ra>
// kernel: tpu_custom_call.1
= control target key start
LH: loop header
LB: loop body
LE: loop exit
PB: predicated region body
PF: predicated region fallthrough
CT: control target
= control target key end

     0   :  { %10 = vsyncpa [#allocation6], 0  ;;  %s7632_s0 = inlined_call_operand.vmem [shape: f32[2,16,16,32], index: 0, kind: input, shape index: {}]   ;;  %s7633_s1 = inlined_call_operand.vmem [shape: f32[288,32], index: 1, kind: input, shape index: {}]   ;;  %s7634_s2 = inlined_call_operand.vmem [shape: f32[1,32], index: 2, kind: input, shape index: {}]   ;;  %s7635_s3 = inlined_call_operand.vmem [shape: f32[288,32], index: 3, kind: input, shape index: {}]   ;;  %s7636_s4 = inlined_call_operand.vmem [shape: f32[1,32], index: 4, kind: input, shape index: {}]   ;;  %s7637_s5 = inlined_call_operand.hbm [shape: f32[2,16,16,32], index: 5, kind: output, shape index: {}]  }
   0x1   :  { %12 = vsyncpa [#allocation6 + $0x1], 0  ;;  %s4983_s18 = smov 0   ;;  %s4985_s19 = smov 0  }
   0x2   :  { %s4987_s20 = smov 0   ;;  %s4989_s21 = smov 0  }
   0x3 LB: > { %s5004_s22 = sadd.s32 4294967295, %s4945_s21   ;;  %s4728_s23 = sadd.s32 4294967294, %s4945_s21   ;;  %s4945_s21 = sphi %s4989_s21, %s7643_s21   ;;  %s4941_s20 = sphi %s4987_s20, %s7642_s20   ;;  %s4937_s19 = sphi %s4985_s19, %s7641_s19   ;;  %s4933_s18 = sphi %s4983_s18, %s7640_s18  }
   0x4   : > { %s5008_s24 = sadd.s32 1, %s4945_s21   ;;  %s135_s25 = sadd.s32 1, %s4941_s20 }
   0x5   : > { %s132_s26 = ssub.s32 %s4945_s21, %s5008_s24  ;;  %p145_p0 = scmp.ne.s32.totalorder %s4941_s20, %s4937_s19 }
   0x6   : > { %p133_p1 = scmp.eq.s32.totalorder %s132_s26, 0  ;;  %p146_p2 = scmp.eq.s32.totalorder %s5004_s22, 1 }
   0x7   : > { %p151_p3 = scmp.ne.s32.totalorder %s4937_s19, %s4933_s18  ;;  %p152_p4 = scmp.eq.s32.totalorder %s4728_s23, 1 }
   0x8   : > { %s5019_s27 = scalar_select %p133_p1, %s4941_s20, %s135_s25  }
   0x9   : > { %p5021_p5 = por %p146_p2, %p145_p0  ;;  %p5025_p6 = por %p152_p4, %p151_p3 }
   0xa   : > { %p4731_p7 = scmp.ge.s32.totalorder %s4945_s21, 1  ;;  %p190_p8 = scmp.lt.s32.totalorder %s4945_s21, 3 }
   0xc   : > { %p191_p9 = pnand %p4731_p7, %p190_p8 }
   0xd   : > { %p218_p10 = scmp.lt.s32.totalorder (!%p191_p9), %s5004_s22, 1  ;;  %s4948_s10 = smov (!%p191_p9), 96  }
   0xe   : > { %194 = sbr.rel (%p191_p9) target bundleno = 1662 (0x67e), region = 40  ;;  %s4949_s11 = smov (!%p191_p9), 64  }
   0xf   : > { %s4950_s12 = smov (!%p191_p9), 32   ;;  %s215_s15 = sand.u32 (!%p191_p9), 1, %s4937_s19  }
  0x10   : > { %s4732_s16 = sshll.u32 (!%p191_p9), %s215_s15, 8 }
  0x11   : > { %s7237_s17 = scalar_lea.vmem (!%p191_p9), [#allocation5], %s4732_s16  ;;  %s4903_s16 = scalar_lea.hbm (!%p191_p9), %s7637_s5, 512 }
  0x13   : > { %vm232_vm0 = vcmask 253952   ;;  %vm223_vm1 = vcmask 261120   ;;  %v4947_v0 = vmov 0.0   ;;  %s219_s30 = scalar_select %p218_p10, %s5004_s22, 1  ;;  %vm558_vm2 = vcmask 1048320  }
  0x14   : > { %235 = vst.msk [vmem:[#allocation2 + $0x30] sm:$0x1] %vm232_vm0, %v4947_v0  ;;  %vm226_vm3 = vcmask 254976   ;;  %vm752_vm4 = vcmask 785920   ;;  %vm1017_vm5 = vcmask 523520  }
  0x15   : > { %224 = vst.msk [vmem:[#allocation2] sm:$0xff] %vm223_vm1, %v4947_v0  ;;  %s4804_s6 = sshll.u32 %s219_s30, 8  ;;  %s4663_s30 = sshll.u32 %s7237_s17, 4  ;;  %s4664_s30 = int_to_ptr.vmem [resolvable:$true] %s4663_s30 }
  0x16   : > { %225 = vst.msk [vmem:[#allocation2 + $0x8] sm:$0xff] %vm223_vm1, %v4947_v0  ;;  %s5044_s9 = scalar_lea.vmem %s7632_s0, %s4804_s6 }
  0x17   : > { %229 = vst.msk [vmem:[#allocation2 + $0x198] sm:$0xff] %vm223_vm1, %v4947_v0  ;;  %v271_v1 = vld [vmem:[%s5044_s9 + $0x10] sm:$0xff]  ;;  %v269_v3 = vld [vmem:[%s5044_s9] sm:$0xff]  ;;  %v272_v4 = vld [vmem:[%s5044_s9 + $0x18] sm:$0xff] }
  0x18   : > { %230 = vst.msk [vmem:[#allocation2 + $0x1a0] sm:$0xff] %vm223_vm1, %v4947_v0  ;;  %v270_v5 = vld [vmem:[%s5044_s9 + $0x8] sm:$0xff]  ;;  %v275_v6 = vld [vmem:[%s5044_s9 + $0x30] sm:$0xff]  ;;  %v276_v7 = vld [vmem:[%s5044_s9 + $0x38] sm:$0xff] }
  0x19   : > { %234 = vst.msk [vmem:[#allocation2 + $0x18] sm:$0x1] %vm232_vm0, %v4947_v0  ;;  %v279_v8 = vld [vmem:[%s5044_s9 + $0x50] sm:$0xff]  ;;  %v277_v9 = vld [vmem:[%s5044_s9 + $0x40] sm:$0xff]  ;;  %v278_v10 = vld [vmem:[%s5044_s9 + $0x48] sm:$0xff] }
  0x1a   : > { %304 = vst.msk [vmem:[#allocation2 + $0x31] sm:$0xff] %vm223_vm1, %v271_v1  ;;  %v273_v12 = vld [vmem:[%s5044_s9 + $0x20] sm:$0xff]  ;;  %v282_v14 = vld [vmem:[%s5044_s9 + $0x68] sm:$0xff]  ;;  %v283_v18 = vld [vmem:[%s5044_s9 + $0x70] sm:$0xff] }
  0x1b   : > { %236 = vst.msk [vmem:[#allocation2 + $0x48] sm:$0x1] %vm232_vm0, %v4947_v0  ;;  %v281_v13 = vld [vmem:[%s5044_s9 + $0x60] sm:$0xff]  ;;  %v274_v16 = vld [vmem:[%s5044_s9 + $0x28] sm:$0xff]  ;;  %v284_v20 = vld [vmem:[%s5044_s9 + $0x78] sm:$0xff] }
  0x1c   : > { %237 = vst.msk [vmem:[#allocation2 + $0x60] sm:$0x1] %vm232_vm0, %v4947_v0  ;;  %v285_v17 = vld [vmem:[%s5044_s9 + $0x80] sm:$0xff]  ;;  %v287_v21 = vld [vmem:[%s5044_s9 + $0x90] sm:$0xff]  ;;  %v288_v22 = vld [vmem:[%s5044_s9 + $0x98] sm:$0xff] }
  0x1d   : > { %238 = vst.msk [vmem:[#allocation2 + $0x78] sm:$0x1] %vm232_vm0, %v4947_v0  ;;  %v280_v27 = vld [vmem:[%s5044_s9 + $0x58] sm:$0xff]  ;;  %v291_v28 = vld [vmem:[%s5044_s9 + $0xb0] sm:$0xff]  ;;  %v289_v30 = vld [vmem:[%s5044_s9 + $0xa0] sm:$0xff] }
  0x1e   : > { %239 = vst.msk [vmem:[#allocation2 + $0x90] sm:$0x1] %vm232_vm0, %v4947_v0  ;;  %v290_v31 = vld [vmem:[%s5044_s9 + $0xa8] sm:$0xff]  ;;  %v293_v34 = vld [vmem:[%s5044_s9 + $0xc0] sm:$0xff]  ;;  %v295_v43 = vld [vmem:[%s5044_s9 + $0xd0] sm:$0xff] }
  0x1f   : > { %240 = vst.msk [vmem:[#allocation2 + $0xa8] sm:$0x1] %vm232_vm0, %v4947_v0  ;;  %v294_v35 = vld [vmem:[%s5044_s9 + $0xc8] sm:$0xff]  ;;  %v297_v41 = vld [vmem:[%s5044_s9 + $0xe0] sm:$0xff]  ;;  %v296_v44 = vld [vmem:[%s5044_s9 + $0xd8] sm:$0xff] }
  0x20   : > { %241 = vst.msk [vmem:[#allocation2 + $0xc0] sm:$0x1] %vm232_vm0, %v4947_v0  ;;  %v286_v40 = vld [vmem:[%s5044_s9 + $0x88] sm:$0xff]  ;;  %v299_v48 = vld [vmem:[%s5044_s9 + $0xf0] sm:$0xff]  ;;  %v300_v49 = vld [vmem:[%s5044_s9 + $0xf8] sm:$0xff] }
  0x21   : > { %v5064_v2 = vld [vmem:[#allocation2 + $0x30] sm:$0xff]  ;;  %242 = vst.msk [vmem:[#allocation2 + $0xd8] sm:$0x1] %vm232_vm0, %v4947_v0  ;;  %v292_v56 = vld [vmem:[%s5044_s9 + $0xb8] sm:$0xff]  ;;  %v298_v61 = vld [vmem:[%s5044_s9 + $0xe8] sm:$0xff] }
  0x22   : > { %466 = vrot.lane.b32.xlu1 %v5064_v2, %s4948_s10  ;;  %243 = vst.msk [vmem:[#allocation2 + $0xf0] sm:$0x1] %vm232_vm0, %v4947_v0 }
  0x23   : > { %244 = vst.msk [vmem:[#allocation2 + $0x108] sm:$0x1] %vm232_vm0, %v4947_v0 }
  0x24   : > { %245 = vst.msk [vmem:[#allocation2 + $0x120] sm:$0x1] %vm232_vm0, %v4947_v0 }
  0x25   : > { %246 = vst.msk [vmem:[#allocation2 + $0x138] sm:$0x1] %vm232_vm0, %v4947_v0 }
  0x26   : > { %247 = vst.msk [vmem:[#allocation2 + $0x150] sm:$0x1] %vm232_vm0, %v4947_v0 }
  0x27   : > { %248 = vst.msk [vmem:[#allocation2 + $0x168] sm:$0x1] %vm232_vm0, %v4947_v0 }
  0x28   : > { %249 = vst.msk [vmem:[#allocation2 + $0x180] sm:$0x1] %vm232_vm0, %v4947_v0 }
  0x29   : > { %252 = vst.msk [vmem:[#allocation2 + $0x29] sm:$0x1] %vm232_vm0, %v4947_v0 }
  0x2a   : > { %253 = vst.msk [vmem:[#allocation2 + $0x41] sm:$0x1] %vm232_vm0, %v4947_v0 }
  0x2b   : > { %254 = vst.msk [vmem:[#allocation2 + $0x59] sm:$0x1] %vm232_vm0, %v4947_v0 }
  0x2c   : > { %255 = vst.msk [vmem:[#allocation2 + $0x71] sm:$0x1] %vm232_vm0, %v4947_v0 }
  0x2d   : > { %256 = vst.msk [vmem:[#allocation2 + $0x89] sm:$0x1] %vm232_vm0, %v4947_v0 }
  0x2e   : > { %257 = vst.msk [vmem:[#allocation2 + $0xa1] sm:$0x1] %vm232_vm0, %v4947_v0 }
  0x2f   : > { %258 = vst.msk [vmem:[#allocation2 + $0xb9] sm:$0x1] %vm232_vm0, %v4947_v0 }
  0x30   : > { %259 = vst.msk [vmem:[#allocation2 + $0xd1] sm:$0x1] %vm232_vm0, %v4947_v0 }
  0x31   : > { %260 = vst.msk [vmem:[#allocation2 + $0xe9] sm:$0x1] %vm232_vm0, %v4947_v0 }
  0x32   : > { %261 = vst.msk [vmem:[#allocation2 + $0x101] sm:$0x1] %vm232_vm0, %v4947_v0 }
  0x33   : > { %262 = vst.msk [vmem:[#allocation2 + $0x119] sm:$0x1] %vm232_vm0, %v4947_v0 }
  0x34   : > { %263 = vst.msk [vmem:[#allocation2 + $0x131] sm:$0x1] %vm232_vm0, %v4947_v0 }
  0x35   : > { %264 = vst.msk [vmem:[#allocation2 + $0x149] sm:$0x1] %vm232_vm0, %v4947_v0 }
  0x36   : > { %265 = vst.msk [vmem:[#allocation2 + $0x161] sm:$0x1] %vm232_vm0, %v4947_v0 }
  0x37   : > { %266 = vst.msk [vmem:[#allocation2 + $0x179] sm:$0x1] %vm232_vm0, %v4947_v0 }
  0x38   : > { %267 = vst.msk [vmem:[#allocation2 + $0x191] sm:$0x1] %vm232_vm0, %v4947_v0 }
  0x39   : > { %302 = vst.msk [vmem:[#allocation2 + $0x19] sm:$0xff] %vm223_vm1, %v269_v3 }
  0x3a   : > { %233 = vst.msk [vmem:[#allocation2] sm:$0x1] %vm232_vm0, %v4947_v0 }
  0x3b   : > { %250 = vst.msk [vmem:[#allocation2 + $0x198] sm:$0x1] %vm232_vm0, %v4947_v0 }
  0x3c   : > { %305 = vst.msk [vmem:[#allocation2 + $0x39] sm:$0xff] %vm223_vm1, %v272_v4 }
  0x3d   : > { %303 = vst.msk [vmem:[#allocation2 + $0x21] sm:$0xff] %vm223_vm1, %v270_v5  ;;  %v335_v5 = vld [vmem:[#allocation2 + $0x8] sm:$0xff] }
  0x3e   : > { %308 = vst.msk [vmem:[#allocation2 + $0x61] sm:$0xff] %vm223_vm1, %v275_v6 }
  0x3f   : > { %309 = vst.msk [vmem:[#allocation2 + $0x69] sm:$0xff] %vm223_vm1, %v276_v7 }
  0x40   : > { %v398_v11 = vld [vmem:[#allocation2 + $0x18] sm:$0xff]  ;;  %312 = vst.msk [vmem:[#allocation2 + $0x91] sm:$0xff] %vm223_vm1, %v279_v8 }
  0x41   : > { %462 = vrot.lane.b32.xlu0 %v398_v11, %s4948_s10  ;;  %310 = vst.msk [vmem:[#allocation2 + $0x79] sm:$0xff] %vm223_vm1, %v277_v9  ;;  %v334_v3 = vld [vmem:[#allocation2] sm:$0xff] }
  0x42   : > { %311 = vst.msk [vmem:[#allocation2 + $0x81] sm:$0xff] %vm223_vm1, %v278_v10 }
  0x43   : > { %v5140_v15 = vld [vmem:[#allocation2 + $0x38] sm:$0xff]  ;;  %306 = vst.msk [vmem:[#allocation2 + $0x49] sm:$0xff] %vm223_vm1, %v273_v12 }
  0x44   : > { %468 = vrot.lane.b32.xlu1 %v5140_v15, %s4948_s10  ;;  %314 = vst.msk [vmem:[#allocation2 + $0xa9] sm:$0xff] %vm223_vm1, %v281_v13  ;;  %v399_v19 = vld [vmem:[#allocation2 + $0x20] sm:$0xff] }
  0x45   : > { %315 = vst.msk [vmem:[#allocation2 + $0xb1] sm:$0xff] %vm223_vm1, %v282_v14  ;;  %v5171_v25 = vld [vmem:[#allocation2 + $0x60] sm:$0xff] }
  0x46   : > { %307 = vst.msk [vmem:[#allocation2 + $0x51] sm:$0xff] %vm223_vm1, %v274_v16  ;;  %v5157_v23 = vld [vmem:[#allocation2 + $0x68] sm:$0xff] }
  0x47   : > { %318 = vst.msk [vmem:[#allocation2 + $0xd9] sm:$0xff] %vm223_vm1, %v285_v17  ;;  %v5184_v29 = vld [vmem:[#allocation2 + $0x90] sm:$0xff]  ;;  %v5401_v13 = vld [vmem:[#allocation2 + $0x1] sm:$0xff] }
  0x48   : > { %316 = vst.msk [vmem:[#allocation2 + $0xc1] sm:$0xff] %vm223_vm1, %v283_v18  ;;  %v5200_v33 = vld [vmem:[#allocation2 + $0x78] sm:$0xff]  ;;  %v5413_v17 = vld [vmem:[#allocation2 + $0x2] sm:$0xff] }
  0x49   : > { %464 = vrot.lane.b32.xlu0 %v399_v19, %s4948_s10  ;;  %317 = vst.msk [vmem:[#allocation2 + $0xc9] sm:$0xff] %vm223_vm1, %v284_v20  ;;  %v5198_v32 = vld [vmem:[#allocation2 + $0x80] sm:$0xff] }
  0x4a   : > { %v5160_v24 = vld [vmem:[#allocation2 + $0x48] sm:$0xff]  ;;  %320 = vst.msk [vmem:[#allocation2 + $0xf1] sm:$0xff] %vm223_vm1, %v287_v21  ;;  %v787_v20 = vld [vmem:[#allocation2 + $0x19] sm:$0xff] }
  0x4b   : > { %470 = vrot.lane.b32.xlu2 %v5160_v24, %s4948_s10  ;;  %321 = vst.msk [vmem:[#allocation2 + $0xf9] sm:$0xff] %vm223_vm1, %v288_v22  ;;  %v5226_v38 = vld [vmem:[#allocation2 + $0xa8] sm:$0xff] }
  0x4c   : > { %476 = vrot.lane.b32.xlu1 %v5157_v23, %s4948_s10  ;;  %368 = vst.msk [vmem:[#allocation4 + $0x30] sm:$0xff] %vm223_vm1, %v398_v11  ;;  %v5212_v36 = vld [vmem:[#allocation2 + $0xb0] sm:$0xff] }
  0x4d   : > { %370 = vst.msk [vmem:[#allocation4 + $0x60] sm:$0xff] %vm223_vm1, %v5064_v2  ;;  %v5174_v26 = vld [vmem:[#allocation2 + $0x50] sm:$0xff] }
  0x4e   : > { %369 = vst.msk [vmem:[#allocation4 + $0x48] sm:$0xff] %vm223_vm1, %v399_v19  ;;  %v5242_v42 = vld [vmem:[#allocation2 + $0xd8] sm:$0xff]  ;;  %v788_v19 = vld [vmem:[#allocation2 + $0x21] sm:$0xff] }
  0x4f   : > { %371 = vst.msk [vmem:[#allocation4 + $0x78] sm:$0xff] %vm223_vm1, %v5140_v15  ;;  %v5230_v39 = vld [vmem:[#allocation2 + $0xc0] sm:$0xff] }
  0x50   : > { %373 = vst.msk [vmem:[#allocation4 + $0xa8] sm:$0xff] %vm223_vm1, %v5174_v26  ;;  %v5253_v45 = vld [vmem:[#allocation2 + $0xc8] sm:$0xff] }
  0x51   : > { %474 = vrot.lane.b32.xlu0 %v5171_v25, %s4948_s10  ;;  %313 = vst.msk [vmem:[#allocation2 + $0x99] sm:$0xff] %vm223_vm1, %v280_v27  ;;  %v5258_v46 = vld [vmem:[#allocation2 + $0xf0] sm:$0xff] }
  0x52   : > { %324 = vst.msk [vmem:[#allocation2 + $0x121] sm:$0xff] %vm223_vm1, %v291_v28  ;;  %v5262_v47 = vld [vmem:[#allocation2 + $0xf8] sm:$0xff] }
  0x53   : > { %472 = vrot.lane.b32.xlu2 %v5174_v26, %s4948_s10  ;;  %322 = vst.msk [vmem:[#allocation2 + $0x109] sm:$0xff] %vm223_vm1, %v289_v30 }
  0x54   : > { %482 = vrot.lane.b32.xlu1 %v5184_v29, %s4948_s10  ;;  %323 = vst.msk [vmem:[#allocation2 + $0x111] sm:$0xff] %vm223_vm1, %v290_v31 }
  0x55   : > { %372 = vst.msk [vmem:[#allocation4 + $0x90] sm:$0xff] %vm223_vm1, %v5160_v24 }
  0x56   : > { %374 = vst.msk [vmem:[#allocation4 + $0xc0] sm:$0xff] %vm223_vm1, %v5171_v25 }
  0x57   : > { %376 = vst.msk [vmem:[#allocation4 + $0xf0] sm:$0xff] %vm223_vm1, %v5200_v33 }
  0x58   : > { %375 = vst.msk [vmem:[#allocation4 + $0xd8] sm:$0xff] %vm223_vm1, %v5157_v23  ;;  %v5218_v37 = vld [vmem:[#allocation2 + $0x98] sm:$0xff] }
  0x59   : > { %480 = vrot.lane.b32.xlu0 %v5198_v32, %s4948_s10  ;;  %326 = vst.msk [vmem:[#allocation2 + $0x139] sm:$0xff] %vm223_vm1, %v293_v34  ;;  %v5288_v53 = vld [vmem:[#allocation2 + $0x120] sm:$0xff] }
  0x5a   : > { %327 = vst.msk [vmem:[#allocation2 + $0x141] sm:$0xff] %vm223_vm1, %v294_v35  ;;  %v5278_v51 = vld [vmem:[#allocation2 + $0x108] sm:$0xff] }
  0x5b   : > { %478 = vrot.lane.b32.xlu2 %v5200_v33, %s4948_s10  ;;  %377 = vst.msk [vmem:[#allocation4 + $0x108] sm:$0xff] %vm223_vm1, %v5198_v32  ;;  %v5284_v52 = vld [vmem:[#allocation2 + $0x110] sm:$0xff]  ;;  %v793_v34 = vld [vmem:[#allocation2 + $0x61] sm:$0xff] }
  0x5c   : > { %488 = vrot.lane.b32.xlu1 %v5212_v36, %s4948_s10  ;;  %379 = vst.msk [vmem:[#allocation4 + $0x138] sm:$0xff] %vm223_vm1, %v5218_v37 }
  0x5d   : > { %378 = vst.msk [vmem:[#allocation4 + $0x120] sm:$0xff] %vm223_vm1, %v5184_v29 }
  0x5e   : > { %380 = vst.msk [vmem:[#allocation4 + $0x150] sm:$0xff] %vm223_vm1, %v5226_v38 }
  0x5f   : > { %382 = vst.msk [vmem:[#allocation4 + $0x180] sm:$0xff] %vm223_vm1, %v5230_v39 }
  0x60   : > { %381 = vst.msk [vmem:[#allocation4 + $0x168] sm:$0xff] %vm223_vm1, %v5212_v36  ;;  %v5292_v54 = vld [vmem:[#allocation2 + $0x138] sm:$0xff] }
  0x61   : > { %486 = vrot.lane.b32.xlu0 %v5226_v38, %s4948_s10  ;;  %319 = vst.msk [vmem:[#allocation2 + $0xe1] sm:$0xff] %vm223_vm1, %v286_v40  ;;  %v5296_v55 = vld [vmem:[#allocation2 + $0x140] sm:$0xff] }
  0x62   : > { %330 = vst.msk [vmem:[#allocation2 + $0x169] sm:$0xff] %vm223_vm1, %v297_v41  ;;  %v796_v40 = vld [vmem:[#allocation2 + $0x81] sm:$0xff] }
  0x63   : > { %484 = vrot.lane.b32.xlu2 %v5218_v37, %s4948_s10  ;;  %328 = vst.msk [vmem:[#allocation2 + $0x151] sm:$0xff] %vm223_vm1, %v295_v43  ;;  %v623_v43 = vld [vmem:[#allocation2 + $0x1a0] sm:$0xff] }
  0x64   : > { %494 = vrot.lane.b32.xlu1 %v5242_v42, %s4948_s10  ;;  %329 = vst.msk [vmem:[#allocation2 + $0x159] sm:$0xff] %vm223_vm1, %v296_v44 }
  0x65   : > { %383 = vst.msk [vmem:[#allocation4 + $0x198] sm:$0xff] %vm223_vm1, %v5253_v45 }
  0x66   : > { %384 = vst.msk [vmem:[#allocation4 + $0x1b0] sm:$0xff] %vm223_vm1, %v5242_v42 }
  0x67   : > { %386 = vst.msk [vmem:[#allocation4 + $0x1e0] sm:$0xff] %vm223_vm1, %v5258_v46 }
  0x68   : > { %387 = vst.msk [vmem:[#allocation4 + $0x1f8] sm:$0xff] %vm223_vm1, %v5262_v47  ;;  %v5273_v50 = vld [vmem:[#allocation2 + $0xe0] sm:$0xff] }
  0x69   : > { %492 = vrot.lane.b32.xlu0 %v5253_v45, %s4948_s10  ;;  %332 = vst.msk [vmem:[#allocation2 + $0x181] sm:$0xff] %vm223_vm1, %v299_v48  ;;  %v5308_v58 = vld [vmem:[#allocation2 + $0x168] sm:$0xff] }
  0x6a   : > { %333 = vst.msk [vmem:[#allocation2 + $0x189] sm:$0xff] %vm223_vm1, %v300_v49  ;;  %v5322_v60 = vld [vmem:[#allocation2 + $0x150] sm:$0xff] }
  0x6b   : > { %490 = vrot.lane.b32.xlu2 %v5230_v39, %s4948_s10  ;;  %385 = vst.msk [vmem:[#allocation4 + $0x1c8] sm:$0xff] %vm223_vm1, %v5273_v50  ;;  %v5305_v57 = vld [vmem:[#allocation2 + $0x158] sm:$0xff]  ;;  %v799_v49 = vld [vmem:[#allocation2 + $0xa9] sm:$0xff] }
  0x6c   : > { %500 = vrot.lane.b32.xlu1 %v5262_v47, %s4948_s10  ;;  %388 = vst.msk [vmem:[#allocation4 + $0x210] sm:$0xff] %vm223_vm1, %v5278_v51 }
  0x6d   : > { %389 = vst.msk [vmem:[#allocation4 + $0x228] sm:$0xff] %vm223_vm1, %v5284_v52 }
  0x6e   : > { %390 = vst.msk [vmem:[#allocation4 + $0x240] sm:$0xff] %vm223_vm1, %v5288_v53 }
  0x6f   : > { %392 = vst.msk [vmem:[#allocation4 + $0x270] sm:$0xff] %vm223_vm1, %v5292_v54 }
  0x70   : > { %393 = vst.msk [vmem:[#allocation4 + $0x288] sm:$0xff] %vm223_vm1, %v5296_v55  ;;  %v5352_v1 = vld [vmem:[#allocation2 + $0x180] sm:$0xff] }
  0x71   : > { %498 = vrot.lane.b32.xlu0 %v5258_v46, %s4948_s10  ;;  %325 = vst.msk [vmem:[#allocation2 + $0x129] sm:$0xff] %vm223_vm1, %v292_v56  ;;  %v5344_v63 = vld [vmem:[#allocation2 + $0x188] sm:$0xff] }
  0x72   : > { %395 = vst.msk [vmem:[#allocation4 + $0x2b8] sm:$0xff] %vm223_vm1, %v5305_v57  ;;  %v802_v56 = vld [vmem:[#allocation2 + $0xc9] sm:$0xff] }
  0x73   : > { %496 = vrot.lane.b32.xlu2 %v5273_v50, %s4948_s10  ;;  %396 = vst.msk [vmem:[#allocation4 + $0x2d0] sm:$0xff] %vm223_vm1, %v5308_v58 }
  0x74   : > { %506 = vrot.lane.b32.xlu1 %v5288_v53, %s4948_s10  ;;  %394 = vst.msk [vmem:[#allocation4 + $0x2a0] sm:$0xff] %vm223_vm1, %v5322_v60 }
  0x75   : > { %331 = vst.msk [vmem:[#allocation2 + $0x171] sm:$0xff] %vm223_vm1, %v298_v61 }
  0x76   : > { %366 = vst.msk [vmem:[#allocation4] sm:$0xff] %vm223_vm1, %v334_v3  ;;  %v805_v3 = vld [vmem:[#allocation2 + $0xf1] sm:$0xff] }
  0x77   : > { %367 = vst.msk [vmem:[#allocation4 + $0x18] sm:$0xff] %vm223_vm1, %v335_v5 }
  0x78   : > { %v5318_v59 = vld [vmem:[#allocation2 + $0x128] sm:$0xff]  ;;  %821 = vst.msk [vmem:[#allocation3] sm:$0xff] %vm223_vm1, %v5401_v13 }
  0x79   : > { %504 = vrot.lane.b32.xlu0 %v5284_v52, %s4948_s10  ;;  %391 = vst.msk [vmem:[#allocation4 + $0x258] sm:$0xff] %vm223_vm1, %v5318_v59 }
  0x7a   : > { %824 = vst.msk [vmem:[#allocation3 + $0x18] sm:$0xff] %vm223_vm1, %v788_v19  ;;  %v801_v19 = vld [vmem:[#allocation2 + $0xc1] sm:$0xff] }
  0x7b   : > { %502 = vrot.lane.b32.xlu2 %v5278_v51, %s4948_s10  ;;  %823 = vst.msk [vmem:[#allocation3 + $0x10] sm:$0xff] %vm223_vm1, %v787_v20  ;;  %v812_v20 = vld [vmem:[#allocation2 + $0x141] sm:$0xff] }
  0x7c   : > { %512 = vrot.lane.b32.xlu1 %v5296_v55, %s4948_s10  ;;  %v5340_v62 = vld [vmem:[#allocation2 + $0x170] sm:$0xff]  ;;  %829 = vst.msk [vmem:[#allocation3 + $0x40] sm:$0xff] %vm223_vm1, %v793_v34 }
  0x7d   : > { %397 = vst.msk [vmem:[#allocation4 + $0x2e8] sm:$0xff] %vm223_vm1, %v5340_v62 }
  0x7e   : > { %227 = vst.msk [vmem:[#allocation2 + $0x10] sm:$0x3] %vm226_vm3, %v4947_v0 }
  0x7f   : > { %v857_v18 = vld [vmem:[#allocation3] sm:$0xff]  ;;  %251 = vst.msk [vmem:[#allocation2 + $0x11] sm:$0x1] %vm232_vm0, %v4947_v0 }
  0x80   : > { %1344 = vst.msk [vmem:[#allocation3] sm:$0xff] %vm223_vm1, %v5413_v17 }
  0x81   : > { %510 = vrot.lane.b32.xlu0 %v5292_v54, %s4948_s10  ;;  %v5431_v27 = vld [vmem:[#allocation3 + $0x18] sm:$0xff]  ;;  %231 = vst.msk [vmem:[#allocation2 + $0x1a8] sm:$0x3] %vm226_vm3, %v4947_v0 }
  0x82   : > { %v5435_v28 = vld [vmem:[#allocation3 + $0x10] sm:$0xff]  ;;  %268 = vst.msk [vmem:[#allocation2 + $0x1a9] sm:$0x1] %vm232_vm0, %v4947_v0  ;;  %v622_v0 = vld [vmem:[#allocation2 + $0x198] sm:$0xff] }
  0x83   : > { %508 = vrot.lane.b32.xlu2 %v5318_v59, %s4948_s10  ;;  %832 = vst.msk [vmem:[#allocation3 + $0x58] sm:$0xff] %vm223_vm1, %v796_v40 }
  0x84   : > { %518 = vrot.lane.b32.xlu1 %v5308_v58, %s4948_s10  ;;  %835 = vst.msk [vmem:[#allocation3 + $0x70] sm:$0xff] %vm223_vm1, %v799_v49 }
  0x85   : > { %838 = vst.msk [vmem:[#allocation3 + $0x88] sm:$0xff] %vm223_vm1, %v802_v56 }
  0x86   : > { %841 = vst.msk [vmem:[#allocation3 + $0xa0] sm:$0xff] %vm223_vm1, %v805_v3 }
  0x87   : > { %837 = vst.msk [vmem:[#allocation3 + $0x80] sm:$0xff] %vm223_vm1, %v801_v19 }
  0x88   : > { %848 = vst.msk [vmem:[#allocation3 + $0xd8] sm:$0xff] %vm223_vm1, %v812_v20 }
  0x89   : > { %516 = vrot.lane.b32.xlu0 %v5305_v57, %s4948_s10 }
  0x8b   : > { %514 = vrot.lane.b32.xlu2 %v5322_v60, %s4948_s10 }
  0x8c   : > { %524 = vrot.lane.b32.xlu1 %v5344_v63, %s4948_s10  ;;  %v5583_v34 = vld [vmem:[#allocation3 + $0x88] sm:$0xff] }
  0x91   : > { %522 = vrot.lane.b32.xlu0 %v5352_v1, %s4948_s10 }
  0x93   : > { %520 = vrot.lane.b32.xlu2 %v5340_v62, %s4948_s10 }
  0x94   : > { %660 = vrot.lane.b32.xlu1 %v5160_v24, %s4949_s11  ;;  %v467_v4 = vpop.permute.xlu1 %466  ;;  %v1311_v24 = vld [vmem:[#allocation2 + $0x22] sm:$0xff] }
  0x95   : > { %561 = vst.msk [vmem:[#allocation4 + $0x30] sm:$0xff] %vm558_vm2, %v467_v4 }
  0x96   : > { %1347 = vst.msk [vmem:[#allocation3 + $0x18] sm:$0xff] %vm223_vm1, %v1311_v24 }
  0x99   : > { %658 = vrot.lane.b32.xlu0 %v5140_v15, %s4949_s11 }
  0x9b   : > { %656 = vrot.lane.b32.xlu2 %v5064_v2, %s4949_s11 }
  0x9c   : > { %666 = vrot.lane.b32.xlu1 %v5157_v23, %s4949_s11 }
  0xa1   : > { %664 = vrot.lane.b32.xlu0 %v5171_v25, %s4949_s11  ;;  %v1310_v25 = vld [vmem:[#allocation2 + $0x1a] sm:$0xff] }
  0xa2   : > { %1346 = vst.msk [vmem:[#allocation3 + $0x10] sm:$0xff] %vm223_vm1, %v1310_v25  ;;  %v5561_v25 = vld [vmem:[#allocation3 + $0x70] sm:$0xff] }
  0xa3   : > { %662 = vrot.lane.b32.xlu2 %v5174_v26, %s4949_s11  ;;  %v791_v26 = vld [vmem:[#allocation2 + $0x49] sm:$0xff] }
  0xa4   : > { %672 = vrot.lane.b32.xlu1 %v5184_v29, %s4949_s11  ;;  %827 = vst.msk [vmem:[#allocation3 + $0x30] sm:$0xff] %vm223_vm1, %v791_v26  ;;  %v790_v29 = vld [vmem:[#allocation2 + $0x39] sm:$0xff] }
  0xa5   : > { %v471_v6 = vpop.permute.xlu2 %470  ;;  %826 = vst.msk [vmem:[#allocation3 + $0x28] sm:$0xff] %vm223_vm1, %v790_v29  ;;  %v804_v29 = vld [vmem:[#allocation2 + $0xe1] sm:$0xff] }
  0xa6   : > { %563 = vst.msk [vmem:[#allocation4 + $0x60] sm:$0xff] %vm558_vm2, %v471_v6  ;;  %v5519_v6 = vld [vmem:[#allocation3 + $0x40] sm:$0xff] }
  0xa7   : > { %840 = vst.msk [vmem:[#allocation3 + $0x98] sm:$0xff] %vm223_vm1, %v804_v29 }
  0xa9   : > { %670 = vrot.lane.b32.xlu0 %v5198_v32, %s4949_s11 }
  0xab   : > { %668 = vrot.lane.b32.xlu2 %v5200_v33, %s4949_s11  ;;  %v794_v33 = vld [vmem:[#allocation2 + $0x69] sm:$0xff] }
  0xac   : > { %678 = vrot.lane.b32.xlu1 %v5212_v36, %s4949_s11  ;;  %830 = vst.msk [vmem:[#allocation3 + $0x48] sm:$0xff] %vm223_vm1, %v794_v33 }
  0xad   : > { %v473_v2 = vpop.permute.xlu2 %472 }
  0xae   : > { %564 = vst.msk [vmem:[#allocation4 + $0x78] sm:$0xff] %vm558_vm2, %v473_v2 }
  0xb1   : > { %676 = vrot.lane.b32.xlu0 %v5226_v38, %s4949_s11  ;;  %v797_v38 = vld [vmem:[#allocation2 + $0x91] sm:$0xff] }
  0xb2   : > { %833 = vst.msk [vmem:[#allocation3 + $0x60] sm:$0xff] %vm223_vm1, %v797_v38 }
  0xb3   : > { %v463_v7 = vpop.permute.xlu0 %462  ;;  %674 = vrot.lane.b32.xlu2 %v5218_v37, %s4949_s11 }
  0xb4   : > { %559 = vst.msk [vmem:[#allocation4] sm:$0xff] %vm558_vm2, %v463_v7  ;;  %684 = vrot.lane.b32.xlu1 %v5242_v42, %s4949_s11 }
  0xb5   : > { %v479_v8 = vpop.permute.xlu2 %478 }
  0xb6   : > { %v469_v9 = vpop.permute.xlu1 %468  ;;  %567 = vst.msk [vmem:[#allocation4 + $0xc0] sm:$0xff] %vm558_vm2, %v479_v8  ;;  %v798_v8 = vld [vmem:[#allocation2 + $0x99] sm:$0xff] }
  0xb7   : > { %562 = vst.msk [vmem:[#allocation4 + $0x48] sm:$0xff] %vm558_vm2, %v469_v9  ;;  %v809_v9 = vld [vmem:[#allocation2 + $0x121] sm:$0xff] }
  0xb8   : > { %834 = vst.msk [vmem:[#allocation3 + $0x68] sm:$0xff] %vm223_vm1, %v798_v8 }
  0xb9   : > { %682 = vrot.lane.b32.xlu0 %v5253_v45, %s4949_s11  ;;  %v1309_v45 = vld [vmem:[#allocation2 + $0xa] sm:$0xff]  ;;  %845 = vst.msk [vmem:[#allocation3 + $0xc0] sm:$0xff] %vm223_vm1, %v809_v9 }
  0xbb   : > { %v465_v10 = vpop.permute.xlu0 %464  ;;  %680 = vrot.lane.b32.xlu2 %v5230_v39, %s4949_s11  ;;  %v5464_v39 = vld [vmem:[#allocation2 + $0x9] sm:$0xff] }
  0xbc   : > { %560 = vst.msk [vmem:[#allocation4 + $0x18] sm:$0xff] %vm558_vm2, %v465_v10  ;;  %690 = vrot.lane.b32.xlu1 %v5262_v47, %s4949_s11  ;;  %v800_v47 = vld [vmem:[#allocation2 + $0xb1] sm:$0xff] }
  0xbd   : > { %v485_v11 = vpop.permute.xlu2 %484  ;;  %822 = vst.msk [vmem:[#allocation3 + $0x8] sm:$0xff] %vm223_vm1, %v5464_v39  ;;  %v5529_v10 = vld [vmem:[#allocation3 + $0x60] sm:$0xff] }
  0xbe   : > { %v477_v12 = vpop.permute.xlu1 %476  ;;  %570 = vst.msk [vmem:[#allocation4 + $0x108] sm:$0xff] %vm558_vm2, %v485_v11  ;;  %v808_v11 = vld [vmem:[#allocation2 + $0x111] sm:$0xff] }
  0xbf   : > { %566 = vst.msk [vmem:[#allocation4 + $0xa8] sm:$0xff] %vm558_vm2, %v477_v12 }
  0xc0   : > { %836 = vst.msk [vmem:[#allocation3 + $0x78] sm:$0xff] %vm223_vm1, %v800_v47 }
  0xc1   : > { %688 = vrot.lane.b32.xlu0 %v5258_v46, %s4949_s11  ;;  %v789_v46 = vld [vmem:[#allocation2 + $0x31] sm:$0xff]  ;;  %844 = vst.msk [vmem:[#allocation3 + $0xb8] sm:$0xff] %vm223_vm1, %v808_v11 }
  0xc2   : > { %825 = vst.msk [vmem:[#allocation3 + $0x20] sm:$0xff] %vm223_vm1, %v789_v46  ;;  %v5616_v46 = vld [vmem:[#allocation3 + $0xc0] sm:$0xff] }
  0xc3   : > { %v475_v14 = vpop.permute.xlu0 %474  ;;  %686 = vrot.lane.b32.xlu2 %v5273_v50, %s4949_s11 }
  0xc4   : > { %565 = vst.msk [vmem:[#allocation4 + $0x90] sm:$0xff] %vm558_vm2, %v475_v14  ;;  %696 = vrot.lane.b32.xlu1 %v5288_v53, %s4949_s11  ;;  %v858_v48 = vld [vmem:[#allocation3 + $0x8] sm:$0xff] }
  0xc5   : > { %v491_v15 = vpop.permute.xlu2 %490  ;;  %1345 = vst.msk [vmem:[#allocation3 + $0x8] sm:$0xff] %vm223_vm1, %v1309_v45  ;;  %v792_v53 = vld [vmem:[#allocation2 + $0x51] sm:$0xff]  ;;  %v810_v45 = vld [vmem:[#allocation2 + $0x129] sm:$0xff] }
  0xc6   : > { %v483_v16 = vpop.permute.xlu1 %482  ;;  %573 = vst.msk [vmem:[#allocation4 + $0x150] sm:$0xff] %vm558_vm2, %v491_v15  ;;  %v5539_v15 = vld [vmem:[#allocation3 + $0x58] sm:$0xff] }
  0xc7   : > { %569 = vst.msk [vmem:[#allocation4 + $0xf0] sm:$0xff] %vm558_vm2, %v483_v16 }
  0xc8   : > { %828 = vst.msk [vmem:[#allocation3 + $0x38] sm:$0xff] %vm223_vm1, %v792_v53  ;;  %v813_v53 = vld [vmem:[#allocation2 + $0x151] sm:$0xff] }
  0xc9   : > { %694 = vrot.lane.b32.xlu0 %v5284_v52, %s4949_s11  ;;  %v5505_v61 = vld [vmem:[#allocation3 + $0x20] sm:$0xff]  ;;  %846 = vst.msk [vmem:[#allocation3 + $0xc8] sm:$0xff] %vm223_vm1, %v810_v45 }
  0xca   : > { %849 = vst.msk [vmem:[#allocation3 + $0xe0] sm:$0xff] %vm223_vm1, %v813_v53  ;;  %v1343_v53 = vld [vmem:[#allocation2 + $0x1a2] sm:$0xff] }
  0xcb   : > { %v481_v21 = vpop.permute.xlu0 %480  ;;  %692 = vrot.lane.b32.xlu2 %v5278_v51, %s4949_s11 }
  0xcc   : > { %568 = vst.msk [vmem:[#allocation4 + $0xd8] sm:$0xff] %vm558_vm2, %v481_v21  ;;  %702 = vrot.lane.b32.xlu1 %v5296_v55, %s4949_s11  ;;  %v5490_v55 = vld [vmem:[#allocation3 + $0x30] sm:$0xff]  ;;  %v5549_v21 = vld [vmem:[#allocation3 + $0x78] sm:$0xff] }
  0xcd   : > { %v497_v22 = vpop.permute.xlu2 %496 }
  0xce   : > { %v489_v23 = vpop.permute.xlu1 %488  ;;  %576 = vst.msk [vmem:[#allocation4 + $0x198] sm:$0xff] %vm558_vm2, %v497_v22  ;;  %v811_v22 = vld [vmem:[#allocation2 + $0x139] sm:$0xff] }
  0xcf   : > { %572 = vst.msk [vmem:[#allocation4 + $0x138] sm:$0xff] %vm558_vm2, %v489_v23  ;;  %v5523_v7 = vld [vmem:[#allocation3 + $0x38] sm:$0xff] }
  0xd0   : > { %847 = vst.msk [vmem:[#allocation3 + $0xd0] sm:$0xff] %vm223_vm1, %v811_v22  ;;  %v1328_v22 = vld [vmem:[#allocation2 + $0xf2] sm:$0xff] }
  0xd1   : > { %700 = vrot.lane.b32.xlu0 %v5292_v54, %s4949_s11  ;;  %v803_v54 = vld [vmem:[#allocation2 + $0xd9] sm:$0xff]  ;;  %v5681_v9 = vld [vmem:[#allocation3 + $0xe0] sm:$0xff] }
  0xd2   : > { %839 = vst.msk [vmem:[#allocation3 + $0x90] sm:$0xff] %vm223_vm1, %v803_v54  ;;  %v5639_v54 = vld [vmem:[#allocation3 + $0xd8] sm:$0xff] }
  0xd3   : > { %v487_v30 = vpop.permute.xlu0 %486  ;;  %698 = vrot.lane.b32.xlu2 %v5318_v59, %s4949_s11  ;;  %v5499_v59 = vld [vmem:[#allocation3 + $0x28] sm:$0xff] }
  0xd4   : > { %571 = vst.msk [vmem:[#allocation4 + $0x120] sm:$0xff] %vm558_vm2, %v487_v30  ;;  %708 = vrot.lane.b32.xlu1 %v5308_v58, %s4949_s11  ;;  %v815_v30 = vld [vmem:[#allocation2 + $0x169] sm:$0xff] }
  0xd5   : > { %v503_v31 = vpop.permute.xlu2 %502  ;;  %851 = vst.msk [vmem:[#allocation3 + $0xf0] sm:$0xff] %vm223_vm1, %v815_v30 }
  0xd6   : > { %v495_v32 = vpop.permute.xlu1 %494  ;;  %579 = vst.msk [vmem:[#allocation4 + $0x1e0] sm:$0xff] %vm558_vm2, %v503_v31 }
  0xd7   : > { %575 = vst.msk [vmem:[#allocation4 + $0x180] sm:$0xff] %vm558_vm2, %v495_v32 }
  0xd9   : > { %706 = vrot.lane.b32.xlu0 %v5305_v57, %s4949_s11  ;;  %v5571_v31 = vld [vmem:[#allocation3 + $0x90] sm:$0xff] }
  0xdb   : > { %v493_v35 = vpop.permute.xlu0 %492  ;;  %704 = vrot.lane.b32.xlu2 %v5322_v60, %s4949_s11 }
  0xdc   : > { %574 = vst.msk [vmem:[#allocation4 + $0x168] sm:$0xff] %vm558_vm2, %v493_v35  ;;  %714 = vrot.lane.b32.xlu1 %v5344_v63, %s4949_s11  ;;  %v806_v63 = vld [vmem:[#allocation2 + $0xf9] sm:$0xff] }
  0xdd   : > { %v509_v36 = vpop.permute.xlu2 %508  ;;  %842 = vst.msk [vmem:[#allocation3 + $0xa8] sm:$0xff] %vm223_vm1, %v806_v63  ;;  %v816_v63 = vld [vmem:[#allocation2 + $0x171] sm:$0xff]  ;;  %v5663_v3 = vld [vmem:[#allocation3 + $0xf0] sm:$0xff] }
  0xde   : > { %v501_v37 = vpop.permute.xlu1 %500  ;;  %582 = vst.msk [vmem:[#allocation4 + $0x228] sm:$0xff] %vm558_vm2, %v509_v36  ;;  %v5587_v36 = vld [vmem:[#allocation3 + $0x80] sm:$0xff] }
  0xdf   : > { %578 = vst.msk [vmem:[#allocation4 + $0x1c8] sm:$0xff] %vm558_vm2, %v501_v37  ;;  %v807_v37 = vld [vmem:[#allocation2 + $0x109] sm:$0xff] }
  0xe0   : > { %843 = vst.msk [vmem:[#allocation3 + $0xb0] sm:$0xff] %vm223_vm1, %v807_v37  ;;  %v1336_v37 = vld [vmem:[#allocation2 + $0x152] sm:$0xff] }
  0xe1   : > { %712 = vrot.lane.b32.xlu0 %v5352_v1, %s4949_s11  ;;  %v5509_v1 = vld [vmem:[#allocation3 + $0x48] sm:$0xff]  ;;  %852 = vst.msk [vmem:[#allocation3 + $0xf8] sm:$0xff] %vm223_vm1, %v816_v63 }
  0xe2   : > { %1372 = vst.msk [vmem:[#allocation3 + $0xe0] sm:$0xff] %vm223_vm1, %v1336_v37 }
  0xe3   : > { %v499_v41 = vpop.permute.xlu0 %498  ;;  %710 = vrot.lane.b32.xlu2 %v5340_v62, %s4949_s11  ;;  %v795_v62 = vld [vmem:[#allocation2 + $0x79] sm:$0xff] }
  0xe4   : > { %577 = vst.msk [vmem:[#allocation4 + $0x1b0] sm:$0xff] %vm558_vm2, %v499_v41  ;;  %921 = vrot.lane.b32.xlu1 %v857_v18, %s4950_s12  ;;  %v5593_v38 = vld [vmem:[#allocation3 + $0xa8] sm:$0xff] }
  0xe5   : > { %v515_v42 = vpop.permute.xlu2 %514  ;;  %831 = vst.msk [vmem:[#allocation3 + $0x50] sm:$0xff] %vm223_vm1, %v795_v62  ;;  %v1313_v41 = vld [vmem:[#allocation2 + $0x3a] sm:$0xff] }
  0xe6   : > { %v507_v44 = vpop.permute.xlu1 %506  ;;  %585 = vst.msk [vmem:[#allocation4 + $0x270] sm:$0xff] %vm558_vm2, %v515_v42  ;;  %v5657_v62 = vld [vmem:[#allocation3 + $0xc8] sm:$0xff] }
  0xe7   : > { %581 = vst.msk [vmem:[#allocation4 + $0x210] sm:$0xff] %vm558_vm2, %v507_v44 }
  0xe8   : > { %1349 = vst.msk [vmem:[#allocation3 + $0x28] sm:$0xff] %vm223_vm1, %v1313_v41  ;;  %v5697_v20 = vld [vmem:[#allocation3 + $0xf8] sm:$0xff] }
  0xe9   : > { %718 = vrot.lane.b32.xlu0 %v623_v43, %s4949_s11  ;;  %v5606_v43 = vld [vmem:[#allocation3 + $0xa0] sm:$0xff] }
  0xea   : > { %1364 = vst.msk [vmem:[#allocation3 + $0xa0] sm:$0xff] %vm223_vm1, %v1328_v22 }
  0xeb   : > { %v505_v50 = vpop.permute.xlu0 %504  ;;  %716 = vrot.lane.b32.xlu2 %v622_v0, %s4949_s11  ;;  %v5610_v0 = vld [vmem:[#allocation3 + $0x98] sm:$0xff] }
  0xec   : > { %580 = vst.msk [vmem:[#allocation4 + $0x1f8] sm:$0xff] %vm558_vm2, %v505_v50  ;;  %927 = vrot.lane.b32.xlu1 %v5431_v27, %s4950_s12  ;;  %v5543_v18 = vld [vmem:[#allocation3 + $0x50] sm:$0xff]  ;;  %v5629_v50 = vld [vmem:[#allocation3 + $0xb8] sm:$0xff] }
  0xed   : > { %v521_v51 = vpop.permute.xlu2 %520 }
  0xee   : > { %v513_v52 = vpop.permute.xlu1 %512  ;;  %588 = vst.msk [vmem:[#allocation4 + $0x2b8] sm:$0xff] %vm558_vm2, %v521_v51 }
  0xef   : > { %584 = vst.msk [vmem:[#allocation4 + $0x258] sm:$0xff] %vm558_vm2, %v513_v52  ;;  %v5633_v52 = vld [vmem:[#allocation3 + $0xb0] sm:$0xff] }
  0xf1   : > { %925 = vrot.lane.b32.xlu0 %v5435_v28, %s4950_s12 }
  0xf3   : > { %v511_v57 = vpop.permute.xlu0 %510  ;;  %923 = vrot.lane.b32.xlu2 %v858_v48, %s4950_s12  ;;  %v1315_v48 = vld [vmem:[#allocation2 + $0x52] sm:$0xff] }
  0xf4   : > { %583 = vst.msk [vmem:[#allocation4 + $0x240] sm:$0xff] %vm558_vm2, %v511_v57  ;;  %933 = vrot.lane.b32.xlu1 %v5490_v55, %s4950_s12 }
  0xf5   : > { %v657_v58 = vpop.permute.xlu2 %656  ;;  %1351 = vst.msk [vmem:[#allocation3 + $0x38] sm:$0xff] %vm223_vm1, %v1315_v48  ;;  %v820_v48 = vld [vmem:[#allocation2 + $0x1a1] sm:$0xff] }
  0xf6   : > { %v519_v60 = vpop.permute.xlu1 %518  ;;  %753 = vst.msk [vmem:[#allocation4 + $0x8] sm:$0xff] %vm752_vm4, %v657_v58  ;;  %v5653_v58 = vld [vmem:[#allocation3 + $0xd0] sm:$0xff] }
  0xf7   : > { %587 = vst.msk [vmem:[#allocation4 + $0x2a0] sm:$0xff] %vm558_vm2, %v519_v60 }
  0xf8   : > { %1083 = vst.msk [vmem:[#allocation4 + $0x8] sm:$0xff] %vm223_vm1, %v5435_v28  ;;  %v5565_v28 = vld [vmem:[#allocation3 + $0x68] sm:$0xff] }
  0xf9   : > { %931 = vrot.lane.b32.xlu0 %v5499_v59, %s4950_s12  ;;  %856 = vst.msk [vmem:[#allocation3 + $0x118] sm:$0xff] %vm223_vm1, %v820_v48 }
  0xfb   : > { %v517_v4 = vpop.permute.xlu0 %516  ;;  %929 = vrot.lane.b32.xlu2 %v5505_v61, %s4950_s12 }
  0xfc   : > { %586 = vst.msk [vmem:[#allocation4 + $0x288] sm:$0xff] %vm558_vm2, %v517_v4  ;;  %939 = vrot.lane.b32.xlu1 %v5509_v1, %s4950_s12  ;;  %v5859_v22 = vld [vmem:[#allocation3 + $0x38] sm:$0xff] }
  0xfd   : > { %v663_v5 = vpop.permute.xlu2 %662  ;;  %1799 = vst.msk [vmem:[#allocation4 + $0x58] sm:$0xff] %vm223_vm1, %v5859_v22 }
  0xfe   : > { %v525_v2 = vpop.permute.xlu1 %524  ;;  %756 = vst.msk [vmem:[#allocation4 + $0x50] sm:$0xff] %vm752_vm4, %v663_v5 }
  0xff   : > { %590 = vst.msk [vmem:[#allocation4 + $0x2e8] sm:$0xff] %vm558_vm2, %v525_v2 }
 0x100   : > { %1086 = vst.msk [vmem:[#allocation4 + $0x50] sm:$0xff] %vm223_vm1, %v5499_v59 }
 0x101   : > { %937 = vrot.lane.b32.xlu0 %v5519_v6, %s4950_s12 }
 0x103   : > { %v523_v12 = vpop.permute.xlu0 %522  ;;  %935 = vrot.lane.b32.xlu2 %v5523_v7, %s4950_s12 }
 0x104   : > { %589 = vst.msk [vmem:[#allocation4 + $0x2d0] sm:$0xff] %vm558_vm2, %v523_v12  ;;  %945 = vrot.lane.b32.xlu1 %v5529_v10, %s4950_s12  ;;  %v1325_v12 = vld [vmem:[#allocation2 + $0xca] sm:$0xff] }
 0x105   : > { %v669_v14 = vpop.permute.xlu2 %668  ;;  %1361 = vst.msk [vmem:[#allocation3 + $0x88] sm:$0xff] %vm223_vm1, %v1325_v12  ;;  %v1312_v12 = vld [vmem:[#allocation2 + $0x32] sm:$0xff] }
 0x106   : > { %v661_v16 = vpop.permute.xlu1 %660  ;;  %759 = vst.msk [vmem:[#allocation4 + $0x98] sm:$0xff] %vm752_vm4, %v669_v14 }
 0x107   : > { %755 = vst.msk [vmem:[#allocation4 + $0x38] sm:$0xff] %vm752_vm4, %v661_v16  ;;  %v1324_v16 = vld [vmem:[#allocation2 + $0xc2] sm:$0xff] }
 0x108   : > { %1085 = vst.msk [vmem:[#allocation4 + $0x38] sm:$0xff] %vm223_vm1, %v5505_v61 }
 0x109   : > { %943 = vrot.lane.b32.xlu0 %v5539_v15, %s4950_s12  ;;  %1089 = vst.msk [vmem:[#allocation4 + $0x98] sm:$0xff] %vm223_vm1, %v5519_v6 }
 0x10a   : > { %1360 = vst.msk [vmem:[#allocation3 + $0x80] sm:$0xff] %vm223_vm1, %v1324_v16  ;;  %v1314_v16 = vld [vmem:[#allocation2 + $0x4a] sm:$0xff] }
 0x10b   : > { %v659_v23 = vpop.permute.xlu0 %658  ;;  %941 = vrot.lane.b32.xlu2 %v5543_v18, %s4950_s12  ;;  %1348 = vst.msk [vmem:[#allocation3 + $0x20] sm:$0xff] %vm223_vm1, %v1312_v12  ;;  %v1935_v12 = vld [vmem:[%s7633_s1 + $0x58] sm:$0xff] }
 0x10c   : > { %754 = vst.msk [vmem:[#allocation4 + $0x20] sm:$0xff] %vm752_vm4, %v659_v23  ;;  %951 = vrot.lane.b32.xlu1 %v5549_v21, %s4950_s12  ;;  %v1327_v23 = vld [vmem:[#allocation2 + $0xe2] sm:$0xff] }
 0x10d   : > { %1084 = vst.msk [vmem:[#allocation4 + $0x20] sm:$0xff] %vm223_vm1, %v5431_v27  ;;  %v675_v24 = vpop.permute.xlu2 %674  ;;  %v814_v27 = vld [vmem:[#allocation2 + $0x159] sm:$0xff] }
 0x10e   : > { %v667_v26 = vpop.permute.xlu1 %666  ;;  %762 = vst.msk [vmem:[#allocation4 + $0xe0] sm:$0xff] %vm752_vm4, %v675_v24 }
 0x10f   : > { %758 = vst.msk [vmem:[#allocation4 + $0x80] sm:$0xff] %vm752_vm4, %v667_v26  ;;  %v1331_v26 = vld [vmem:[#allocation2 + $0x112] sm:$0xff] }
 0x110   : > { %1088 = vst.msk [vmem:[#allocation4 + $0x80] sm:$0xff] %vm223_vm1, %v5523_v7 }
 0x111   : > { %949 = vrot.lane.b32.xlu0 %v5561_v25, %s4950_s12  ;;  %850 = vst.msk [vmem:[#allocation3 + $0xe8] sm:$0xff] %vm223_vm1, %v814_v27 }
 0x112   : > { %1092 = vst.msk [vmem:[#allocation4 + $0xe0] sm:$0xff] %vm223_vm1, %v5539_v15 }
 0x113   : > { %v665_v32 = vpop.permute.xlu0 %664  ;;  %947 = vrot.lane.b32.xlu2 %v5565_v28, %s4950_s12  ;;  %1363 = vst.msk [vmem:[#allocation3 + $0x98] sm:$0xff] %vm223_vm1, %v1327_v23  ;;  %v1317_v23 = vld [vmem:[#allocation2 + $0x6a] sm:$0xff] }
 0x114   : > { %757 = vst.msk [vmem:[#allocation4 + $0x68] sm:$0xff] %vm752_vm4, %v665_v32  ;;  %957 = vrot.lane.b32.xlu1 %v5571_v31, %s4950_s12 }
 0x115   : > { %v681_v33 = vpop.permute.xlu2 %680  ;;  %1087 = vst.msk [vmem:[#allocation4 + $0x68] sm:$0xff] %vm223_vm1, %v5490_v55 }
 0x116   : > { %v673_v35 = vpop.permute.xlu1 %672  ;;  %765 = vst.msk [vmem:[#allocation4 + $0x128] sm:$0xff] %vm752_vm4, %v681_v33  ;;  %v1337_v33 = vld [vmem:[#allocation2 + $0x15a] sm:$0xff] }
 0x117   : > { %761 = vst.msk [vmem:[#allocation4 + $0xc8] sm:$0xff] %vm752_vm4, %v673_v35 }
 0x118   : > { %1091 = vst.msk [vmem:[#allocation4 + $0xc8] sm:$0xff] %vm223_vm1, %v5543_v18  ;;  %v5677_v2 = vld [vmem:[#allocation3 + $0xe8] sm:$0xff] }
 0x119   : > { %955 = vrot.lane.b32.xlu0 %v5583_v34, %s4950_s12  ;;  %1095 = vst.msk [vmem:[#allocation4 + $0x128] sm:$0xff] %vm223_vm1, %v5561_v25 }
 0x11a   : > { %1367 = vst.msk [vmem:[#allocation3 + $0xb8] sm:$0xff] %vm223_vm1, %v1331_v26 }
 0x11b   : > { %v671_v40 = vpop.permute.xlu0 %670  ;;  %953 = vrot.lane.b32.xlu2 %v5587_v36, %s4950_s12  ;;  %1373 = vst.msk [vmem:[#allocation3 + $0xe8] sm:$0xff] %vm223_vm1, %v1337_v33 }
 0x11c   : > { %760 = vst.msk [vmem:[#allocation4 + $0xb0] sm:$0xff] %vm752_vm4, %v671_v40  ;;  %963 = vrot.lane.b32.xlu1 %v5593_v38, %s4950_s12 }
 0x11d   : > { %v687_v42 = vpop.permute.xlu2 %686  ;;  %1090 = vst.msk [vmem:[#allocation4 + $0xb0] sm:$0xff] %vm223_vm1, %v5509_v1 }
 0x11e   : > { %v679_v44 = vpop.permute.xlu1 %678  ;;  %768 = vst.msk [vmem:[#allocation4 + $0x170] sm:$0xff] %vm752_vm4, %v687_v42 }
 0x11f   : > { %764 = vst.msk [vmem:[#allocation4 + $0x110] sm:$0xff] %vm752_vm4, %v679_v44 }
 0x120   : > { %1098 = vst.msk [vmem:[#allocation4 + $0x170] sm:$0xff] %vm223_vm1, %v5583_v34 }
 0x121   : > { %961 = vrot.lane.b32.xlu0 %v5606_v43, %s4950_s12  ;;  %1094 = vst.msk [vmem:[#allocation4 + $0x110] sm:$0xff] %vm223_vm1, %v5565_v28 }
 0x122   : > { %1350 = vst.msk [vmem:[#allocation3 + $0x30] sm:$0xff] %vm223_vm1, %v1314_v16 }
 0x123   : > { %v677_v47 = vpop.permute.xlu0 %676  ;;  %959 = vrot.lane.b32.xlu2 %v5610_v0, %s4950_s12  ;;  %1353 = vst.msk [vmem:[#allocation3 + $0x48] sm:$0xff] %vm223_vm1, %v1317_v23  ;;  %v1933_v23 = vld [vmem:[%s7633_s1 + $0x48] sm:$0xff] }
 0x124   : > { %763 = vst.msk [vmem:[#allocation4 + $0xf8] sm:$0xff] %vm752_vm4, %v677_v47  ;;  %969 = vrot.lane.b32.xlu1 %v5616_v46, %s4950_s12 }
 0x125   : > { %v693_v49 = vpop.permute.xlu2 %692  ;;  %1093 = vst.msk [vmem:[#allocation4 + $0xf8] sm:$0xff] %vm223_vm1, %v5529_v10 }
 0x126   : > { %v685_v51 = vpop.permute.xlu1 %684  ;;  %771 = vst.msk [vmem:[#allocation4 + $0x1b8] sm:$0xff] %vm752_vm4, %v693_v49  ;;  %v1380_v49 = vld [vmem:[#allocation3] sm:$0xff] }
 0x127   : > { %767 = vst.msk [vmem:[#allocation4 + $0x158] sm:$0xff] %vm752_vm4, %v685_v51 }
 0x128   : > { %1097 = vst.msk [vmem:[#allocation4 + $0x158] sm:$0xff] %vm223_vm1, %v5587_v36 }
 0x129   : > { %967 = vrot.lane.b32.xlu0 %v5629_v50, %s4950_s12  ;;  %1101 = vst.msk [vmem:[#allocation4 + $0x1b8] sm:$0xff] %vm223_vm1, %v5606_v43 }
 0x12a   : > { %2947 = vst.msk [vmem:[#allocation3] sm:$0xff] %vm223_vm1, %v5401_v13 }
 0x12b   : > { %v683_v56 = vpop.permute.xlu0 %682  ;;  %965 = vrot.lane.b32.xlu2 %v5633_v52, %s4950_s12 }
 0x12c   : > { %766 = vst.msk [vmem:[#allocation4 + $0x140] sm:$0xff] %vm752_vm4, %v683_v56  ;;  %975 = vrot.lane.b32.xlu1 %v5639_v54, %s4950_s12 }
 0x12d   : > { %v699_v57 = vpop.permute.xlu2 %698  ;;  %1096 = vst.msk [vmem:[#allocation4 + $0x140] sm:$0xff] %vm223_vm1, %v5549_v21 }
 0x12e   : > { %v691_v60 = vpop.permute.xlu1 %690  ;;  %774 = vst.msk [vmem:[#allocation4 + $0x200] sm:$0xff] %vm752_vm4, %v699_v57 }
 0x12f   : > { %770 = vst.msk [vmem:[#allocation4 + $0x1a0] sm:$0xff] %vm752_vm4, %v691_v60  ;;  %v1381_v60 = vld [vmem:[#allocation3 + $0x8] sm:$0xff] }
 0x130   : > { %1100 = vst.msk [vmem:[#allocation4 + $0x1a0] sm:$0xff] %vm223_vm1, %v5610_v0 }
 0x131   : > { %973 = vrot.lane.b32.xlu0 %v5653_v58, %s4950_s12  ;;  %1104 = vst.msk [vmem:[#allocation4 + $0x200] sm:$0xff] %vm223_vm1, %v5629_v50  ;;  %v5806_v13 = vld [vmem:[#allocation3] sm:$0xff] }
 0x132   : > { %3467 = vst.msk [vmem:[#allocation3] sm:$0xff] %vm223_vm1, %v5413_v17 }
 0x133   : > { %v689_v4 = vpop.permute.xlu0 %688  ;;  %971 = vrot.lane.b32.xlu2 %v5657_v62, %s4950_s12  ;;  %2948 = vst.msk [vmem:[#allocation3 + $0x8] sm:$0xff] %vm223_vm1, %v5464_v39 }
 0x134   : > { %769 = vst.msk [vmem:[#allocation4 + $0x188] sm:$0xff] %vm752_vm4, %v689_v4  ;;  %981 = vrot.lane.b32.xlu1 %v5663_v3, %s4950_s12 }
 0x135   : > { %v705_v5 = vpop.permute.xlu2 %704  ;;  %1099 = vst.msk [vmem:[#allocation4 + $0x188] sm:$0xff] %vm223_vm1, %v5571_v31 }
 0x136   : > { %v697_v8 = vpop.permute.xlu1 %696  ;;  %777 = vst.msk [vmem:[#allocation4 + $0x248] sm:$0xff] %vm752_vm4, %v705_v5 }
 0x137   : > { %773 = vst.msk [vmem:[#allocation4 + $0x1e8] sm:$0xff] %vm752_vm4, %v697_v8 }
 0x138   : > { %1103 = vst.msk [vmem:[#allocation4 + $0x1e8] sm:$0xff] %vm223_vm1, %v5633_v52 }
 0x139   : > { %979 = vrot.lane.b32.xlu0 %v5677_v2, %s4950_s12  ;;  %1107 = vst.msk [vmem:[#allocation4 + $0x248] sm:$0xff] %vm223_vm1, %v5653_v58 }
 0x13b   : > { %v695_v11 = vpop.permute.xlu0 %694  ;;  %977 = vrot.lane.b32.xlu2 %v5681_v9, %s4950_s12 }
 0x13c   : > { %772 = vst.msk [vmem:[#allocation4 + $0x1d0] sm:$0xff] %vm752_vm4, %v695_v11  ;;  %1182 = vrot.lane.b32.xlu1 %v5499_v59, %s4948_s10 }
 0x13d   : > { %v711_v14 = vpop.permute.xlu2 %710  ;;  %1102 = vst.msk [vmem:[#allocation4 + $0x1d0] sm:$0xff] %vm223_vm1, %v5593_v38 }
 0x13e   : > { %v703_v19 = vpop.permute.xlu1 %702  ;;  %780 = vst.msk [vmem:[#allocation4 + $0x290] sm:$0xff] %vm752_vm4, %v711_v14 }
 0x13f   : > { %776 = vst.msk [vmem:[#allocation4 + $0x230] sm:$0xff] %vm752_vm4, %v703_v19  ;;  %v5847_v19 = vld [vmem:[#allocation3 + $0x88] sm:$0xff] }
 0x140   : > { %1106 = vst.msk [vmem:[#allocation4 + $0x230] sm:$0xff] %vm223_vm1, %v5657_v62 }
 0x141   : > { %1180 = vrot.lane.b32.xlu0 %v5505_v61, %s4948_s10  ;;  %1110 = vst.msk [vmem:[#allocation4 + $0x290] sm:$0xff] %vm223_vm1, %v5677_v2 }
 0x143   : > { %v701_v59 = vpop.permute.xlu0 %700  ;;  %983 = vrot.lane.b32.xlu2 %v5697_v20, %s4950_s12 }
 0x144   : > { %775 = vst.msk [vmem:[#allocation4 + $0x218] sm:$0xff] %vm752_vm4, %v701_v59  ;;  %1188 = vrot.lane.b32.xlu1 %v5519_v6, %s4948_s10 }
 0x145   : > { %v717_v61 = vpop.permute.xlu2 %716  ;;  %1105 = vst.msk [vmem:[#allocation4 + $0x218] sm:$0xff] %vm223_vm1, %v5616_v46 }
 0x146   : > { %v709_v24 = vpop.permute.xlu1 %708  ;;  %783 = vst.msk [vmem:[#allocation4 + $0x2d8] sm:$0xff] %vm752_vm4, %v717_v61 }
 0x147   : > { %779 = vst.msk [vmem:[#allocation4 + $0x278] sm:$0xff] %vm752_vm4, %v709_v24 }
 0x148   : > { %1109 = vst.msk [vmem:[#allocation4 + $0x278] sm:$0xff] %vm223_vm1, %v5681_v9 }
 0x149   : > { %1186 = vrot.lane.b32.xlu0 %v5523_v7, %s4948_s10  ;;  %v1330_v7 = vld [vmem:[#allocation2 + $0x10a] sm:$0xff] }
 0x14a   : > { %1366 = vst.msk [vmem:[#allocation3 + $0xb0] sm:$0xff] %vm223_vm1, %v1330_v7 }
 0x14b   : > { %v707_v6 = vpop.permute.xlu0 %706  ;;  %1184 = vrot.lane.b32.xlu2 %v5490_v55, %s4948_s10 }
 0x14c   : > { %778 = vst.msk [vmem:[#allocation4 + $0x260] sm:$0xff] %vm752_vm4, %v707_v6  ;;  %1194 = vrot.lane.b32.xlu1 %v5539_v15, %s4948_s10  ;;  %v1333_v15 = vld [vmem:[#allocation2 + $0x12a] sm:$0xff]  ;;  %v1316_v6 = vld [vmem:[#allocation2 + $0x62] sm:$0xff] }
 0x14d   : > { %v924_v29 = vpop.permute.xlu2 %923  ;;  %1108 = vst.msk [vmem:[#allocation4 + $0x260] sm:$0xff] %vm223_vm1, %v5639_v54 }
 0x14e   : > { %v715_v30 = vpop.permute.xlu1 %714  ;;  %1019 = vst.msk [vmem:[#allocation4 + $0x18] sm:$0xff] %vm1017_vm5, %v924_v29  ;;  %v5869_v29 = vld [vmem:[#allocation3 + $0xa0] sm:$0xff] }
 0x14f   : > { %782 = vst.msk [vmem:[#allocation4 + $0x2c0] sm:$0xff] %vm752_vm4, %v715_v30  ;;  %v1318_v30 = vld [vmem:[#allocation2 + $0x7a] sm:$0xff] }
 0x150   : > { %1112 = vst.msk [vmem:[#allocation4 + $0x2c0] sm:$0xff] %vm223_vm1, %v5697_v20 }
 0x151   : > { %1192 = vrot.lane.b32.xlu0 %v5543_v18, %s4948_s10  ;;  %1369 = vst.msk [vmem:[#allocation3 + $0xc8] sm:$0xff] %vm223_vm1, %v1333_v15  ;;  %v1320_v15 = vld [vmem:[#allocation2 + $0x92] sm:$0xff] }
 0x152   : > { %1352 = vst.msk [vmem:[#allocation3 + $0x40] sm:$0xff] %vm223_vm1, %v1316_v6  ;;  %v1932_v6 = vld [vmem:[%s7633_s1 + $0x40] sm:$0xff] }
 0x153   : > { %v713_v55 = vpop.permute.xlu0 %712  ;;  %1190 = vrot.lane.b32.xlu2 %v5509_v1, %s4948_s10  ;;  %1354 = vst.msk [vmem:[#allocation3 + $0x50] sm:$0xff] %vm223_vm1, %v1318_v30 }
 0x154   : > { %781 = vst.msk [vmem:[#allocation4 + $0x2a8] sm:$0xff] %vm752_vm4, %v713_v55  ;;  %1200 = vrot.lane.b32.xlu1 %v5561_v25, %s4948_s10  ;;  %v1326_v25 = vld [vmem:[#allocation2 + $0xda] sm:$0xff] }
 0x155   : > { %v930_v27 = vpop.permute.xlu2 %929  ;;  %1111 = vst.msk [vmem:[#allocation4 + $0x2a8] sm:$0xff] %vm223_vm1, %v5663_v3 }
 0x156   : > { %v922_v18 = vpop.permute.xlu1 %921  ;;  %1022 = vst.msk [vmem:[#allocation4 + $0x60] sm:$0xff] %vm1017_vm5, %v930_v27 }
 0x157   : > { %1018 = vst.msk [vmem:[#allocation4] sm:$0xff] %vm1017_vm5, %v922_v18  ;;  %v5878_v18 = vld [vmem:[#allocation3 + $0x18] sm:$0xff] }
 0x158   : > { %1362 = vst.msk [vmem:[#allocation3 + $0x90] sm:$0xff] %vm223_vm1, %v1326_v25  ;;  %v5882_v25 = vld [vmem:[#allocation3 + $0x98] sm:$0xff] }
 0x159   : > { %1198 = vrot.lane.b32.xlu0 %v5565_v28, %s4948_s10  ;;  %v817_v28 = vld [vmem:[#allocation2 + $0x181] sm:$0xff]  ;;  %1356 = vst.msk [vmem:[#allocation3 + $0x60] sm:$0xff] %vm223_vm1, %v1320_v15  ;;  %v1930_v15 = vld [vmem:[%s7633_s1 + $0x30] sm:$0xff] }
 0x15a   : > { %853 = vst.msk [vmem:[#allocation3 + $0x100] sm:$0xff] %vm223_vm1, %v817_v28  ;;  %v1323_v28 = vld [vmem:[#allocation2 + $0xb2] sm:$0xff] }
 0x15b   : > { %v719_v1 = vpop.permute.xlu0 %718  ;;  %1196 = vrot.lane.b32.xlu2 %v5529_v10, %s4948_s10  ;;  %1359 = vst.msk [vmem:[#allocation3 + $0x78] sm:$0xff] %vm223_vm1, %v1323_v28 }
 0x15c   : > { %784 = vst.msk [vmem:[#allocation4 + $0x2f0] sm:$0xff] %vm752_vm4, %v719_v1  ;;  %1206 = vrot.lane.b32.xlu1 %v5583_v34, %s4948_s10  ;;  %v1329_v34 = vld [vmem:[#allocation2 + $0xfa] sm:$0xff]  ;;  %v1319_v1 = vld [vmem:[#allocation2 + $0x82] sm:$0xff] }
 0x15d   : > { %v936_v32 = vpop.permute.xlu2 %935  ;;  %1365 = vst.msk [vmem:[#allocation3 + $0xa8] sm:$0xff] %vm223_vm1, %v1329_v34  ;;  %v1322_v34 = vld [vmem:[#allocation2 + $0xaa] sm:$0xff] }
 0x15e   : > { %v928_v35 = vpop.permute.xlu1 %927  ;;  %1025 = vst.msk [vmem:[#allocation4 + $0xa8] sm:$0xff] %vm1017_vm5, %v936_v32 }
 0x15f   : > { %1021 = vst.msk [vmem:[#allocation4 + $0x48] sm:$0xff] %vm1017_vm5, %v928_v35  ;;  %v5865_v26 = vld [vmem:[#allocation3 + $0x90] sm:$0xff] }
 0x160   : > { %1355 = vst.msk [vmem:[#allocation3 + $0x58] sm:$0xff] %vm223_vm1, %v1319_v1  ;;  %v1321_v35 = vld [vmem:[#allocation2 + $0x9a] sm:$0xff]  ;;  %v1339_v1 = vld [vmem:[#allocation2 + $0x172] sm:$0xff] }
 0x161   : > { %1204 = vrot.lane.b32.xlu0 %v5587_v36, %s4948_s10  ;;  %v819_v36 = vld [vmem:[#allocation2 + $0x199] sm:$0xff]  ;;  %v1144_v42 = vld [vmem:[#allocation3 + $0x100] sm:$0xff]  ;;  %1357 = vst.msk [vmem:[#allocation3 + $0x68] sm:$0xff] %vm223_vm1, %v1321_v35  ;;  %v1929_v35 = vld [vmem:[%s7633_s1 + $0x28] sm:$0xff] }
 0x162   : > { %855 = vst.msk [vmem:[#allocation3 + $0x110] sm:$0xff] %vm223_vm1, %v819_v36 }
 0x163   : > { %v926_v10 = vpop.permute.xlu0 %925  ;;  %1202 = vrot.lane.b32.xlu2 %v5549_v21, %s4948_s10  ;;  %1113 = vst.msk [vmem:[#allocation4 + $0x2d8] sm:$0xff] %vm223_vm1, %v1144_v42 }
 0x164   : > { %1020 = vst.msk [vmem:[#allocation4 + $0x30] sm:$0xff] %vm1017_vm5, %v926_v10  ;;  %1212 = vrot.lane.b32.xlu1 %v5606_v43, %s4948_s10  ;;  %v1332_v43 = vld [vmem:[#allocation2 + $0x122] sm:$0xff]  ;;  %v1401_v32 = vld [vmem:[#allocation3 + $0xa8] sm:$0xff] }
 0x165   : > { %v942_v40 = vpop.permute.xlu2 %941  ;;  %1368 = vst.msk [vmem:[#allocation3 + $0xc0] sm:$0xff] %vm223_vm1, %v1332_v43 }
 0x166   : > { %v934_v41 = vpop.permute.xlu1 %933  ;;  %1028 = vst.msk [vmem:[#allocation4 + $0xf0] sm:$0xff] %vm1017_vm5, %v942_v40  ;;  %v5895_v40 = vld [vmem:[#allocation3 + $0x20] sm:$0xff] }
 0x167   : > { %1024 = vst.msk [vmem:[#allocation4 + $0x90] sm:$0xff] %vm1017_vm5, %v934_v41  ;;  %v5900_v41 = vld [vmem:[#allocation3 + $0xb0] sm:$0xff] }
 0x168   : > { %1358 = vst.msk [vmem:[#allocation3 + $0x70] sm:$0xff] %vm223_vm1, %v1322_v34 }
 0x169   : > { %1210 = vrot.lane.b32.xlu0 %v5610_v0, %s4948_s10  ;;  %v1342_v0 = vld [vmem:[#allocation2 + $0x19a] sm:$0xff]  ;;  %1796 = vst.msk [vmem:[#allocation4 + $0x10] sm:$0xff] %vm223_vm1, %v5895_v40 }
 0x16a   : > { %v1146_v47 = vld [vmem:[#allocation3 + $0x110] sm:$0xff]  ;;  %1375 = vst.msk [vmem:[#allocation3 + $0xf8] sm:$0xff] %vm223_vm1, %v1339_v1 }
 0x16b   : > { %v932_v21 = vpop.permute.xlu0 %931  ;;  %1208 = vrot.lane.b32.xlu2 %v5571_v31, %s4948_s10  ;;  %1378 = vst.msk [vmem:[#allocation3 + $0x110] sm:$0xff] %vm223_vm1, %v1342_v0  ;;  %v5927_v0 = vld [vmem:[#allocation3 + $0x40] sm:$0xff] }
 0x16c   : > { %1023 = vst.msk [vmem:[#allocation4 + $0x78] sm:$0xff] %vm1017_vm5, %v932_v21  ;;  %1218 = vrot.lane.b32.xlu1 %v5629_v50, %s4948_s10 }
 0x16d   : > { %v948_v44 = vpop.permute.xlu2 %947  ;;  %1800 = vst.msk [vmem:[#allocation4 + $0x70] sm:$0xff] %vm223_vm1, %v5927_v0 }
 0x16e   : > { %v940_v45 = vpop.permute.xlu1 %939  ;;  %1031 = vst.msk [vmem:[#allocation4 + $0x138] sm:$0xff] %vm1017_vm5, %v948_v44  ;;  %v5916_v44 = vld [vmem:[#allocation3 + $0x48] sm:$0xff] }
 0x16f   : > { %1027 = vst.msk [vmem:[#allocation4 + $0xd8] sm:$0xff] %vm1017_vm5, %v940_v45 }
 0x170   : > { %1801 = vst.msk [vmem:[#allocation4 + $0x88] sm:$0xff] %vm223_vm1, %v5916_v44 }
 0x171   : > { %1216 = vrot.lane.b32.xlu0 %v5633_v52, %s4948_s10 }
 0x172   : > { %v1794_v52 = vld [vmem:[#allocation3 + $0x110] sm:$0xff] }
 0x173   : > { %v938_v31 = vpop.permute.xlu0 %937  ;;  %1214 = vrot.lane.b32.xlu2 %v5593_v38, %s4948_s10  ;;  %1826 = vst.msk [vmem:[#allocation4 + $0x2e0] sm:$0xff] %vm223_vm1, %v1794_v52  ;;  %v1147_v38 = vld [vmem:[#allocation3 + $0x118] sm:$0xff] }
 0x174   : > { %1026 = vst.msk [vmem:[#allocation4 + $0xc0] sm:$0xff] %vm1017_vm5, %v938_v31  ;;  %1224 = vrot.lane.b32.xlu1 %v5653_v58, %s4948_s10  ;;  %v5931_v31 = vld [vmem:[#allocation3 + $0xb8] sm:$0xff] }
 0x175   : > { %v954_v50 = vpop.permute.xlu2 %953  ;;  %2981 = vst.msk [vmem:[#allocation3 + $0x110] sm:$0xff] %vm223_vm1, %v819_v36 }
 0x176   : > { %v946_v51 = vpop.permute.xlu1 %945  ;;  %1034 = vst.msk [vmem:[#allocation4 + $0x180] sm:$0xff] %vm1017_vm5, %v954_v50 }
 0x177   : > { %1030 = vst.msk [vmem:[#allocation4 + $0x120] sm:$0xff] %vm1017_vm5, %v946_v51  ;;  %v5946_v51 = vld [vmem:[#allocation3 + $0x50] sm:$0xff] }
 0x178   : > { %1379 = vst.msk [vmem:[#allocation3 + $0x118] sm:$0xff] %vm223_vm1, %v1343_v53 }
 0x179   : > { %1222 = vrot.lane.b32.xlu0 %v5657_v62, %s4948_s10  ;;  %1802 = vst.msk [vmem:[#allocation4 + $0xa0] sm:$0xff] %vm223_vm1, %v5946_v51 }
 0x17b   : > { %v944_v56 = vpop.permute.xlu0 %943  ;;  %1220 = vrot.lane.b32.xlu2 %v5616_v46, %s4948_s10  ;;  %v818_v46 = vld [vmem:[#allocation2 + $0x189] sm:$0xff] }
 0x17c   : > { %1029 = vst.msk [vmem:[#allocation4 + $0x108] sm:$0xff] %vm1017_vm5, %v944_v56  ;;  %1230 = vrot.lane.b32.xlu1 %v5677_v2, %s4948_s10  ;;  %v5832_v2 = vld [vmem:[#allocation3 + $0x80] sm:$0xff]  ;;  %v5954_v56 = vld [vmem:[#allocation3 + $0x68] sm:$0xff] }
 0x17d   : > { %v960_v57 = vpop.permute.xlu2 %959  ;;  %854 = vst.msk [vmem:[#allocation3 + $0x108] sm:$0xff] %vm223_vm1, %v818_v46  ;;  %v1938_v46 = vld [vmem:[%s7633_s1 + $0x70] sm:$0xff] }
 0x17e   : > { %v952_v58 = vpop.permute.xlu1 %951  ;;  %1037 = vst.msk [vmem:[#allocation4 + $0x1c8] sm:$0xff] %vm1017_vm5, %v960_v57  ;;  %v5956_v57 = vld [vmem:[#allocation3 + $0x70] sm:$0xff] }
 0x17f   : > { %1033 = vst.msk [vmem:[#allocation4 + $0x168] sm:$0xff] %vm1017_vm5, %v952_v58  ;;  %v1795_v62 = vld [vmem:[#allocation3 + $0x118] sm:$0xff] }
 0x180   : > { %1827 = vst.msk [vmem:[#allocation4 + $0x2f8] sm:$0xff] %vm223_vm1, %v1795_v62 }
 0x181   : > { %1228 = vrot.lane.b32.xlu0 %v5681_v9, %s4948_s10  ;;  %2982 = vst.msk [vmem:[#allocation3 + $0x118] sm:$0xff] %vm223_vm1, %v820_v48 }
 0x182   : > { %1805 = vst.msk [vmem:[#allocation4 + $0xe8] sm:$0xff] %vm223_vm1, %v5954_v56 }
 0x183   : > { %v950_v63 = vpop.permute.xlu0 %949  ;;  %1226 = vrot.lane.b32.xlu2 %v5639_v54, %s4948_s10  ;;  %1806 = vst.msk [vmem:[#allocation4 + $0x100] sm:$0xff] %vm223_vm1, %v5956_v57 }
 0x184   : > { %1032 = vst.msk [vmem:[#allocation4 + $0x150] sm:$0xff] %vm1017_vm5, %v950_v63  ;;  %1236 = vrot.lane.b32.xlu1 %v1144_v42, %s4948_s10  ;;  %v1145_v4 = vld [vmem:[#allocation3 + $0x108] sm:$0xff]  ;;  %v5910_v42 = vld [vmem:[#allocation3 + $0x30] sm:$0xff] }
 0x185   : > { %v966_v17 = vpop.permute.xlu2 %965  ;;  %1114 = vst.msk [vmem:[#allocation4 + $0x2f0] sm:$0xff] %vm223_vm1, %v1145_v4 }
 0x186   : > { %v958_v39 = vpop.permute.xlu1 %957  ;;  %1040 = vst.msk [vmem:[#allocation4 + $0x210] sm:$0xff] %vm1017_vm5, %v966_v17  ;;  %v5975_v17 = vld [vmem:[#allocation3 + $0xc8] sm:$0xff] }
 0x187   : > { %1036 = vst.msk [vmem:[#allocation4 + $0x1b0] sm:$0xff] %vm1017_vm5, %v958_v39  ;;  %v1937_v39 = vld [vmem:[%s7633_s1 + $0x68] sm:$0xff] }
 0x188   : > { %1798 = vst.msk [vmem:[#allocation4 + $0x40] sm:$0xff] %vm223_vm1, %v5910_v42 }
 0x189   : > { %1234 = vrot.lane.b32.xlu0 %v5697_v20, %s4948_s10  ;;  %v5851_v20 = vld [vmem:[#allocation3 + $0x10] sm:$0xff] }
 0x18b   : > { %v956_v54 = vpop.permute.xlu0 %955  ;;  %1232 = vrot.lane.b32.xlu2 %v5663_v3, %s4948_s10  ;;  %v5841_v3 = vld [vmem:[#allocation3 + $0x28] sm:$0xff] }
 0x18c   : > { %1035 = vst.msk [vmem:[#allocation4 + $0x198] sm:$0xff] %vm1017_vm5, %v956_v54  ;;  %1240 = vrot.lane.b32.xlu1 %v1146_v47, %s4948_s10  ;;  %v1334_v54 = vld [vmem:[#allocation2 + $0x13a] sm:$0xff] }
 0x18d   : > { %v972_v5 = vpop.permute.xlu2 %971  ;;  %1797 = vst.msk [vmem:[#allocation4 + $0x28] sm:$0xff] %vm223_vm1, %v5841_v3 }
 0x18e   : > { %v964_v8 = vpop.permute.xlu1 %963  ;;  %1043 = vst.msk [vmem:[#allocation4 + $0x258] sm:$0xff] %vm1017_vm5, %v972_v5  ;;  %v5982_v5 = vld [vmem:[#allocation3 + $0x60] sm:$0xff] }
 0x18f   : > { %1039 = vst.msk [vmem:[#allocation4 + $0x1f8] sm:$0xff] %vm1017_vm5, %v964_v8  ;;  %v1936_v8 = vld [vmem:[%s7633_s1 + $0x60] sm:$0xff] }
 0x190   : > { %1370 = vst.msk [vmem:[#allocation3 + $0xd0] sm:$0xff] %vm223_vm1, %v1334_v54 }
 0x191   : > { %1476 = vrot.lane.b32.xlu0 %v5832_v2, %s4949_s11  ;;  %1804 = vst.msk [vmem:[#allocation4 + $0xd0] sm:$0xff] %vm223_vm1, %v5982_v5 }
 0x193   : > { %v962_v9 = vpop.permute.xlu0 %961  ;;  %1238 = vrot.lane.b32.xlu2 %v1145_v4, %s4948_s10  ;;  %v1335_v4 = vld [vmem:[#allocation2 + $0x142] sm:$0xff] }
 0x194   : > { %1038 = vst.msk [vmem:[#allocation4 + $0x1e0] sm:$0xff] %vm1017_vm5, %v962_v9  ;;  %1444 = vrot.lane.b32.xlu1 %v1380_v49, %s4949_s11  ;;  %v5935_v49 = vld [vmem:[#allocation3 + $0x58] sm:$0xff] }
 0x195   : > { %v978_v11 = vpop.permute.xlu2 %977  ;;  %1803 = vst.msk [vmem:[#allocation4 + $0xb8] sm:$0xff] %vm223_vm1, %v5935_v49  ;;  %v5990_v9 = vld [vmem:[#allocation3 + $0x78] sm:$0xff] }
 0x196   : > { %v970_v14 = vpop.permute.xlu1 %969  ;;  %1046 = vst.msk [vmem:[#allocation4 + $0x2a0] sm:$0xff] %vm1017_vm5, %v978_v11 }
 0x197   : > { %1042 = vst.msk [vmem:[#allocation4 + $0x240] sm:$0xff] %vm1017_vm5, %v970_v14  ;;  %v1934_v14 = vld [vmem:[%s7633_s1 + $0x50] sm:$0xff] }
 0x198   : > { %1371 = vst.msk [vmem:[#allocation3 + $0xd8] sm:$0xff] %vm223_vm1, %v1335_v4 }
 0x199   : > { %1242 = vrot.lane.b32.xlu0 %v1147_v38, %s4948_s10  ;;  %v5950_v38 = vld [vmem:[#allocation3 + $0xc0] sm:$0xff]  ;;  %1807 = vst.msk [vmem:[#allocation4 + $0x118] sm:$0xff] %vm223_vm1, %v5990_v9 }
 0x19b   : > { %v968_v59 = vpop.permute.xlu0 %967  ;;  %1478 = vrot.lane.b32.xlu2 %v5847_v19, %s4949_s11 }
 0x19c   : > { %1041 = vst.msk [vmem:[#allocation4 + $0x228] sm:$0xff] %vm1017_vm5, %v968_v59  ;;  %1448 = vrot.lane.b32.xlu1 %v5851_v20, %s4949_s11  ;;  %v1338_v59 = vld [vmem:[#allocation2 + $0x16a] sm:$0xff] }
 0x19d   : > { %v984_v61 = vpop.permute.xlu2 %983  ;;  %1374 = vst.msk [vmem:[#allocation3 + $0xf0] sm:$0xff] %vm223_vm1, %v1338_v59 }
 0x19e   : > { %v976_v24 = vpop.permute.xlu1 %975  ;;  %1049 = vst.msk [vmem:[#allocation4 + $0x2e8] sm:$0xff] %vm1017_vm5, %v984_v61 }
 0x19f   : > { %1045 = vst.msk [vmem:[#allocation4 + $0x288] sm:$0xff] %vm1017_vm5, %v976_v24  ;;  %v6013_v24 = vld [vmem:[#allocation3 + $0xd0] sm:$0xff]  ;;  %v6041_v28 = vld [vmem:[#allocation3 + $0xd8] sm:$0xff] }
 0x1a1   : > { %1446 = vrot.lane.b32.xlu0 %v1381_v60, %s4949_s11  ;;  %v1939_v60 = vld [vmem:[%s7633_s1 + $0x78] sm:$0xff] }
 0x1a2   : > { %4806 = vmatpush.msra.mxu1 %v1939_v60  ;;  %2060 = vmatpush.msra.mxu0 %v1939_v60 }
 0x1a3   : > { %v974_v7 = vpop.permute.xlu0 %973  ;;  %1480 = vrot.lane.b32.xlu2 %v5865_v26, %s4949_s11 }
 0x1a4   : > { %1044 = vst.msk [vmem:[#allocation4 + $0x270] sm:$0xff] %vm1017_vm5, %v974_v7  ;;  %1484 = vrot.lane.b32.xlu1 %v5869_v29, %s4949_s11  ;;  %4807 = vmatpush.msra.mxu1 %v1938_v46  ;;  %v6021_v7 = vld [vmem:[#allocation3 + $0xe8] sm:$0xff] }
 0x1a5   : > { %v1185_v55 = vpop.permute.xlu2 %1184  ;;  %2061 = vmatpush.msra.mxu0 %v1938_v46 }
 0x1a6   : > { %v982_v27 = vpop.permute.xlu1 %981  ;;  %1278 = vst.msk [vmem:[#allocation4 + $0x38] sm:$0xff] %vm558_vm2, %v1185_v55  ;;  %4808 = vmatpush.msra.mxu1 %v1937_v39  ;;  %v1931_v55 = vld [vmem:[%s7633_s1 + $0x38] sm:$0xff] }
 0x1a7   : > { %1048 = vst.msk [vmem:[#allocation4 + $0x2d0] sm:$0xff] %vm1017_vm5, %v982_v27  ;;  %2062 = vmatpush.msra.mxu0 %v1937_v39 }
 0x1a8   : > { %4809 = vmatpush.msra.mxu1 %v1936_v8 }
 0x1a9   : > { %1450 = vrot.lane.b32.xlu0 %v5878_v18, %s4949_s11  ;;  %2063 = vmatpush.msra.mxu0 %v1936_v8 }
 0x1aa   : > { %4810 = vmatpush.msra.mxu1 %v1935_v12 }
 0x1ab   : > { %v980_v33 = vpop.permute.xlu0 %979  ;;  %1482 = vrot.lane.b32.xlu2 %v5882_v25, %s4949_s11  ;;  %2064 = vmatpush.msra.mxu0 %v1935_v12 }
 0x1ac   : > { %1047 = vst.msk [vmem:[#allocation4 + $0x2b8] sm:$0xff] %vm1017_vm5, %v980_v33  ;;  %1486 = vrot.lane.b32.xlu1 %v1401_v32, %s4949_s11  ;;  %4811 = vmatpush.msra.mxu1 %v1934_v14  ;;  %v6034_v33 = vld [vmem:[#allocation3 + $0xe0] sm:$0xff] }
 0x1ad   : > { %v1191_v37 = vpop.permute.xlu2 %1190  ;;  %2065 = vmatpush.msra.mxu0 %v1934_v14 }
 0x1ae   : > { %v1183_v10 = vpop.permute.xlu1 %1182  ;;  %1281 = vst.msk [vmem:[#allocation4 + $0x80] sm:$0xff] %vm558_vm2, %v1191_v37  ;;  %4812 = vmatpush.msra.mxu1 %v1933_v23  ;;  %v1340_v37 = vld [vmem:[#allocation2 + $0x182] sm:$0xff] }
 0x1af   : > { %1277 = vst.msk [vmem:[#allocation4 + $0x20] sm:$0xff] %vm558_vm2, %v1183_v10  ;;  %2066 = vmatpush.msra.mxu0 %v1933_v23  ;;  %v1928_v10 = vld [vmem:[%s7633_s1 + $0x20] sm:$0xff] }
 0x1b0   : > { %4813 = vmatpush.msra.mxu1 %v1932_v6  ;;  %1376 = vst.msk [vmem:[#allocation3 + $0x100] sm:$0xff] %vm223_vm1, %v1340_v37 }
 0x1b1   : > { %1454 = vrot.lane.b32.xlu0 %v5841_v3, %s4949_s11  ;;  %2067 = vmatpush.msra.mxu0 %v1932_v6 }
 0x1b2   : > { %4814 = vmatpush.msra.mxu1 %v1931_v55 }
 0x1b3   : > { %v1181_v36 = vpop.permute.xlu0 %1180  ;;  %1452 = vrot.lane.b32.xlu2 %v5895_v40, %s4949_s11  ;;  %2068 = vmatpush.msra.mxu0 %v1931_v55 }
 0x1b4   : > { %1276 = vst.msk [vmem:[#allocation4 + $0x8] sm:$0xff] %vm558_vm2, %v1181_v36  ;;  %1488 = vrot.lane.b32.xlu1 %v5900_v41, %s4949_s11  ;;  %4815 = vmatpush.msra.mxu1 %v1930_v15  ;;  %v1927_v36 = vld [vmem:[%s7633_s1 + $0x18] sm:$0xff] }
 0x1b5   : > { %v1197_v21 = vpop.permute.xlu2 %1196  ;;  %2069 = vmatpush.msra.mxu0 %v1930_v15 }
 0x1b6   : > { %v1189_v43 = vpop.permute.xlu1 %1188  ;;  %1284 = vst.msk [vmem:[#allocation4 + $0xc8] sm:$0xff] %vm558_vm2, %v1197_v21  ;;  %4816 = vmatpush.msra.mxu1 %v1929_v35  ;;  %v1926_v21 = vld [vmem:[%s7633_s1 + $0x10] sm:$0xff] }
 0x1b7   : > { %1280 = vst.msk [vmem:[#allocation4 + $0x68] sm:$0xff] %vm558_vm2, %v1189_v43  ;;  %2070 = vmatpush.msra.mxu0 %v1929_v35 }
 0x1b8   : > { %4817 = vmatpush.msra.mxu1 %v1928_v10 }
 0x1b9   : > { %1458 = vrot.lane.b32.xlu0 %v5859_v22, %s4949_s11  ;;  %2071 = vmatpush.msra.mxu0 %v1928_v10  ;;  %v1946_v10 = vld [vmem:[%s7633_s1 + $0xb0] sm:$0xff] }
 0x1ba   : > { %4818 = vmatpush.msra.mxu1 %v1927_v36 }
 0x1bb   : > { %v1187_v45 = vpop.permute.xlu0 %1186  ;;  %1456 = vrot.lane.b32.xlu2 %v5910_v42, %s4949_s11  ;;  %2072 = vmatpush.msra.mxu0 %v1927_v36 }
 0x1bc   : > { %1279 = vst.msk [vmem:[#allocation4 + $0x50] sm:$0xff] %vm558_vm2, %v1187_v45  ;;  %1462 = vrot.lane.b32.xlu1 %v5916_v44, %s4949_s11  ;;  %4819 = vmatpush.msra.mxu1 %v1926_v21 }
 0x1bd   : > { %v1203_v47 = vpop.permute.xlu2 %1202  ;;  %2073 = vmatpush.msra.mxu0 %v1926_v21 }
 0x1be   : > { %v1195_v48 = vpop.permute.xlu1 %1194  ;;  %1287 = vst.msk [vmem:[#allocation4 + $0x110] sm:$0xff] %vm558_vm2, %v1203_v47  ;;  %v1925_v47 = vld [vmem:[%s7633_s1 + $0x8] sm:$0xff] }
 0x1bf   : > { %1283 = vst.msk [vmem:[#allocation4 + $0xb0] sm:$0xff] %vm558_vm2, %v1195_v48  ;;  %v6066_v48 = vld [vmem:[#allocation3 + $0xf8] sm:$0xff]  ;;  %4820 = vmatpush.msra.mxu1 %v1925_v47  ;;  %2074 = vmatpush.msra.mxu0 %v1925_v47 }
 0x1c1   : > { %1490 = vrot.lane.b32.xlu0 %v5931_v31, %s4949_s11 }
 0x1c3   : > { %v1193_v50 = vpop.permute.xlu0 %1192  ;;  %1460 = vrot.lane.b32.xlu2 %v5927_v0, %s4949_s11 }
 0x1c4   : > { %1282 = vst.msk [vmem:[#allocation4 + $0x98] sm:$0xff] %vm558_vm2, %v1193_v50  ;;  %1466 = vrot.lane.b32.xlu1 %v5935_v49, %s4949_s11  ;;  %v1341_v50 = vld [vmem:[#allocation2 + $0x18a] sm:$0xff] }
 0x1c5   : > { %v1209_v52 = vpop.permute.xlu2 %1208  ;;  %1377 = vst.msk [vmem:[#allocation3 + $0x108] sm:$0xff] %vm223_vm1, %v1341_v50 }
 0x1c6   : > { %v1201_v53 = vpop.permute.xlu1 %1200  ;;  %1290 = vst.msk [vmem:[#allocation4 + $0x158] sm:$0xff] %vm558_vm2, %v1209_v52 }
 0x1c7   : > { %1286 = vst.msk [vmem:[#allocation4 + $0xf8] sm:$0xff] %vm558_vm2, %v1201_v53  ;;  %v1955_v53 = vld [vmem:[%s7633_s1 + $0xf8] sm:$0xff] }
 0x1c9   : > { %1492 = vrot.lane.b32.xlu0 %v5950_v38, %s4949_s11 }
 0x1cb   : > { %v1199_v58 = vpop.permute.xlu0 %1198  ;;  %1464 = vrot.lane.b32.xlu2 %v5946_v51, %s4949_s11 }
 0x1cc   : > { %1285 = vst.msk [vmem:[#allocation4 + $0xe0] sm:$0xff] %vm558_vm2, %v1199_v58  ;;  %1470 = vrot.lane.b32.xlu1 %v5954_v56, %s4949_s11 }
 0x1cd   : > { %v1215_v62 = vpop.permute.xlu2 %1214 }
 0x1ce   : > { %v1207_v63 = vpop.permute.xlu1 %1206  ;;  %1293 = vst.msk [vmem:[#allocation4 + $0x1a0] sm:$0xff] %vm558_vm2, %v1215_v62  ;;  %v1954_v62 = vld [vmem:[%s7633_s1 + $0xf0] sm:$0xff] }
 0x1cf   : > { %1289 = vst.msk [vmem:[#allocation4 + $0x140] sm:$0xff] %vm558_vm2, %v1207_v63  ;;  %v6088_v63 = vld [vmem:[#allocation3 + $0xf0] sm:$0xff] }
 0x1d1   : > { %1494 = vrot.lane.b32.xlu0 %v5975_v17, %s4949_s11 }
 0x1d3   : > { %v1205_v11 = vpop.permute.xlu0 %1204  ;;  %1468 = vrot.lane.b32.xlu2 %v5982_v5, %s4949_s11 }
 0x1d4   : > { %1288 = vst.msk [vmem:[#allocation4 + $0x128] sm:$0xff] %vm558_vm2, %v1205_v11  ;;  %1474 = vrot.lane.b32.xlu1 %v5990_v9, %s4949_s11 }
 0x1d5   : > { %v1221_v16 = vpop.permute.xlu2 %1220 }
 0x1d6   : > { %v1213_v61 = vpop.permute.xlu1 %1212  ;;  %1296 = vst.msk [vmem:[#allocation4 + $0x1e8] sm:$0xff] %vm558_vm2, %v1221_v16 }
 0x1d7   : > { %1292 = vst.msk [vmem:[#allocation4 + $0x188] sm:$0xff] %vm558_vm2, %v1213_v61 }
 0x1d9   : > { %1472 = vrot.lane.b32.xlu0 %v5956_v57, %s4949_s11 }
 0x1db   : > { %v1211_v30 = vpop.permute.xlu0 %1210  ;;  %1496 = vrot.lane.b32.xlu2 %v6013_v24, %s4949_s11 }
 0x1dc   : > { %1291 = vst.msk [vmem:[#allocation4 + $0x170] sm:$0xff] %vm558_vm2, %v1211_v30  ;;  %1502 = vrot.lane.b32.xlu1 %v6021_v7, %s4949_s11 }
 0x1dd   : > { %v1227_v27 = vpop.permute.xlu2 %1226 }
 0x1de   : > { %v1219_v32 = vpop.permute.xlu1 %1218  ;;  %1299 = vst.msk [vmem:[#allocation4 + $0x230] sm:$0xff] %vm558_vm2, %v1227_v27 }
 0x1df   : > { %1295 = vst.msk [vmem:[#allocation4 + $0x1d0] sm:$0xff] %vm558_vm2, %v1219_v32 }
 0x1e1   : > { %1500 = vrot.lane.b32.xlu0 %v6034_v33, %s4949_s11 }
 0x1e3   : > { %v1217_v34 = vpop.permute.xlu0 %1216  ;;  %1498 = vrot.lane.b32.xlu2 %v6041_v28, %s4949_s11 }
 0x1e4   : > { %1294 = vst.msk [vmem:[#allocation4 + $0x1b8] sm:$0xff] %vm558_vm2, %v1217_v34  ;;  %1636 = vrot.lane.b32.xlu1 %v5851_v20, %s4950_s12  ;;  %v1924_v20 = vld [vmem:[%s7633_s1] sm:$0xff] }
 0x1e5   : > { %v1233_v43 = vpop.permute.xlu2 %1232  ;;  %4821 = vmatpush.msra.mxu1 %v1924_v20  ;;  %2075 = vmatpush.msra.mxu0 %v1924_v20 }
 0x1e6   : > { %v1225_v45 = vpop.permute.xlu1 %1224  ;;  %1302 = vst.msk [vmem:[#allocation4 + $0x278] sm:$0xff] %vm558_vm2, %v1233_v43  ;;  %v1945_v43 = vld [vmem:[%s7633_s1 + $0xa8] sm:$0xff] }
 0x1e7   : > { %1298 = vst.msk [vmem:[#allocation4 + $0x218] sm:$0xff] %vm558_vm2, %v1225_v45  ;;  %2173 = vmatpush.msrb.mxu1 %v1955_v53 }
 0x1e9   : > { %1506 = vrot.lane.b32.xlu0 %v6066_v48, %s4949_s11  ;;  %2174 = vmatpush.msrb.mxu1 %v1954_v62  ;;  %v1943_v62 = vld [vmem:[%s7633_s1 + $0x98] sm:$0xff] }
 0x1eb   : > { %v1223_v52 = vpop.permute.xlu0 %1222  ;;  %1504 = vrot.lane.b32.xlu2 %v6088_v63, %s4949_s11 }
 0x1ec   : > { %1297 = vst.msk [vmem:[#allocation4 + $0x200] sm:$0xff] %vm558_vm2, %v1223_v52  ;;  %1642 = vrot.lane.b32.xlu1 %v5841_v3, %s4950_s12  ;;  %v1944_v52 = vld [vmem:[%s7633_s1 + $0xa0] sm:$0xff] }
 0x1ed   : > { %v1239_v58 = vpop.permute.xlu2 %1238 }
 0x1ee   : > { %v1231_v60 = vpop.permute.xlu1 %1230  ;;  %1305 = vst.msk [vmem:[#allocation4 + $0x2c0] sm:$0xff] %vm558_vm2, %v1239_v58 }
 0x1ef   : > { %1301 = vst.msk [vmem:[#allocation4 + $0x260] sm:$0xff] %vm558_vm2, %v1231_v60 }
 0x1f1   : > { %1640 = vrot.lane.b32.xlu0 %v5895_v40, %s4950_s12 }
 0x1f3   : > { %v1229_v46 = vpop.permute.xlu0 %1228  ;;  %1638 = vrot.lane.b32.xlu2 %v5878_v18, %s4950_s12 }
 0x1f4   : > { %1300 = vst.msk [vmem:[#allocation4 + $0x248] sm:$0xff] %vm558_vm2, %v1229_v46  ;;  %1648 = vrot.lane.b32.xlu1 %v5927_v0, %s4950_s12  ;;  %v1953_v0 = vld [vmem:[%s7633_s1 + $0xe8] sm:$0xff] }
 0x1f5   : > { %v1479_v3 = vpop.permute.xlu2 %1478  ;;  %2175 = vmatpush.msrb.mxu1 %v1953_v0 }
 0x1f6   : > { %v1237_v39 = vpop.permute.xlu1 %1236  ;;  %1557 = vst.msk [vmem:[#allocation4 + $0x198] sm:$0xff] %vm752_vm4, %v1479_v3 }
 0x1f7   : > { %1304 = vst.msk [vmem:[#allocation4 + $0x2a8] sm:$0xff] %vm558_vm2, %v1237_v39 }
 0x1f9   : > { %1646 = vrot.lane.b32.xlu0 %v5859_v22, %s4950_s12 }
 0x1fb   : > { %v1235_v40 = vpop.permute.xlu0 %1234  ;;  %1644 = vrot.lane.b32.xlu2 %v5910_v42, %s4950_s12 }
 0x1fc   : > { %1303 = vst.msk [vmem:[#allocation4 + $0x290] sm:$0xff] %vm558_vm2, %v1235_v40  ;;  %1654 = vrot.lane.b32.xlu1 %v5935_v49, %s4950_s12  ;;  %v1952_v49 = vld [vmem:[%s7633_s1 + $0xe0] sm:$0xff] }
 0x1fd   : > { %v1481_v4 = vpop.permute.xlu2 %1480  ;;  %2176 = vmatpush.msrb.mxu1 %v1952_v49 }
 0x1fe   : > { %v1241_v54 = vpop.permute.xlu1 %1240  ;;  %1558 = vst.msk [vmem:[#allocation4 + $0x1b0] sm:$0xff] %vm752_vm4, %v1481_v4 }
 0x1ff   : > { %1306 = vst.msk [vmem:[#allocation4 + $0x2d8] sm:$0xff] %vm558_vm2, %v1241_v54  ;;  %v1942_v54 = vld [vmem:[%s7633_s1 + $0x90] sm:$0xff] }
 0x201   : > { %1652 = vrot.lane.b32.xlu0 %v5946_v51, %s4950_s12 }
 0x203   : > { %v1477_v22 = vpop.permute.xlu0 %1476  ;;  %1650 = vrot.lane.b32.xlu2 %v5916_v44, %s4950_s12 }
 0x204   : > { %1556 = vst.msk [vmem:[#allocation4 + $0x180] sm:$0xff] %vm752_vm4, %v1477_v22  ;;  %1660 = vrot.lane.b32.xlu1 %v5956_v57, %s4950_s12  ;;  %v1951_v57 = vld [vmem:[%s7633_s1 + $0xd8] sm:$0xff] }
 0x205   : > { %v1483_v8 = vpop.permute.xlu2 %1482  ;;  %2177 = vmatpush.msrb.mxu1 %v1951_v57 }
 0x206   : > { %v1445_v18 = vpop.permute.xlu1 %1444  ;;  %1559 = vst.msk [vmem:[#allocation4 + $0x1c8] sm:$0xff] %vm752_vm4, %v1483_v8 }
 0x207   : > { %1540 = vst.msk [vmem:[#allocation4] sm:$0xff] %vm752_vm4, %v1445_v18  ;;  %v1941_v18 = vld [vmem:[%s7633_s1 + $0x88] sm:$0xff] }
 0x209   : > { %1658 = vrot.lane.b32.xlu0 %v5954_v56, %s4950_s12  ;;  %v1879_v56 = vld [vmem:[#allocation4 + $0x198] sm:$0xff] }
 0x20b   : > { %v1243_v51 = vpop.permute.xlu0 %1242  ;;  %v1876_v11 = vld [vmem:[#allocation4 + $0x180] sm:$0xff]  ;;  %1656 = vrot.lane.b32.xlu2 %v5982_v5, %s4950_s12 }
 0x20c   : > { %1307 = vst.msk [vmem:[#allocation4 + $0x2f0] sm:$0xff] %vm558_vm2, %v1243_v51  ;;  %2124 = vmatmul.f32.vlgmr.msra.gmra.mxu1 %v1876_v11  ;;  %1666 = vrot.lane.b32.xlu1 %v5847_v19, %s4950_s12  ;;  %v1950_v19 = vld [vmem:[%s7633_s1 + $0xd0] sm:$0xff]  ;;  %v1959_v51 = vld [vmem:[%s7633_s1 + $0x118] sm:$0xff] }
 0x20d   : > { %v1453_v42 = vpop.permute.xlu2 %1452  ;;  %2178 = vmatpush.msrb.mxu1 %v1950_v19  ;;  %v1885_v30 = vld [vmem:[#allocation4 + $0x1c8] sm:$0xff]  ;;  %v1958_v11 = vld [vmem:[%s7633_s1 + $0x110] sm:$0xff]  ;;  %2298 = vmatpush.msra.mxu2 %v1959_v51  ;;  %v1830_v19 = vld [vmem:[#allocation4 + $0x10] sm:$0xff] }
 0x20e   : > { %v1828_v12 = vld [vmem:[#allocation4] sm:$0xff]  ;;  %v1449_v14 = vpop.permute.xlu1 %1448  ;;  %1544 = vst.msk [vmem:[#allocation4 + $0x60] sm:$0xff] %vm752_vm4, %v1453_v42  ;;  %4822 = vmatpush.msra.mxu3 %v1959_v51 }
 0x20f   : > { %2076 = vmatmul.f32.vlgmr.msra.gmra.mxu0 %v1828_v12  ;;  %1542 = vst.msk [vmem:[#allocation4 + $0x30] sm:$0xff] %vm752_vm4, %v1449_v14  ;;  %2299 = vmatpush.msra.mxu2 %v1958_v11  ;;  %v1940_v14 = vld [vmem:[%s7633_s1 + $0x80] sm:$0xff] }
 0x210   : > { %4823 = vmatpush.msra.mxu3 %v1958_v11 }
 0x211   : > { %1664 = vrot.lane.b32.xlu0 %v5832_v2, %s4950_s12  ;;  %v1882_v2 = vld [vmem:[#allocation4 + $0x1b0] sm:$0xff] }
 0x213   : > { %v1447_v16 = vpop.permute.xlu0 %1446  ;;  %1662 = vrot.lane.b32.xlu2 %v5990_v9, %s4950_s12  ;;  %v1948_v9 = vld [vmem:[%s7633_s1 + $0xc0] sm:$0xff] }
 0x214   : > { %1541 = vst.msk [vmem:[#allocation4 + $0x18] sm:$0xff] %vm752_vm4, %v1447_v16  ;;  %2127 = vmatmul.f32.gmra.mxu1 %v1879_v56  ;;  %1672 = vrot.lane.b32.xlu1 %v5869_v29, %s4950_s12  ;;  %v1949_v29 = vld [vmem:[%s7633_s1 + $0xc8] sm:$0xff]  ;;  %v1956_v16 = vld [vmem:[%s7633_s1 + $0x100] sm:$0xff] }
 0x215   : > { %v1457_v44 = vpop.permute.xlu2 %1456  ;;  %2179 = vmatpush.msrb.mxu1 %v1949_v29  ;;  %v1957_v56 = vld [vmem:[%s7633_s1 + $0x108] sm:$0xff] }
 0x216   : > { %v1485_v59 = vpop.permute.xlu1 %1484  ;;  %1546 = vst.msk [vmem:[#allocation4 + $0x90] sm:$0xff] %vm752_vm4, %v1457_v44  ;;  %2300 = vmatpush.msra.mxu2 %v1957_v56  ;;  %4824 = vmatpush.msra.mxu3 %v1957_v56 }
 0x217   : > { %1560 = vst.msk [vmem:[#allocation4 + $0x1e0] sm:$0xff] %vm752_vm4, %v1485_v59  ;;  %2180 = vmatpush.msrb.mxu1 %v1948_v9  ;;  %v1839_v9 = vld [vmem:[#allocation4 + $0x58] sm:$0xff] }
 0x218   : > { %2301 = vmatpush.msra.mxu2 %v1956_v16  ;;  %4825 = vmatpush.msra.mxu3 %v1956_v16  ;;  %v1779_v16 = vld [vmem:[#allocation3 + $0x98] sm:$0xff] }
 0x219   : > { %1670 = vrot.lane.b32.xlu0 %v5882_v25, %s4950_s12  ;;  %v1834_v25 = vld [vmem:[#allocation4 + $0x30] sm:$0xff]  ;;  %4735 = vmatmul.msk.f32.vlgmr.msra.gmra.mxu2 %vm223_vm1, %v1830_v19  ;;  %1811 = vst.msk [vmem:[#allocation4 + $0x178] sm:$0xff] %vm223_vm1, %v1779_v16 }
 0x21b   : > { %v1831_v61 = vld [vmem:[#allocation4 + $0x18] sm:$0xff]  ;;  %v1451_v23 = vpop.permute.xlu0 %1450  ;;  %1668 = vrot.lane.b32.xlu2 %v5865_v26, %s4950_s12  ;;  %v1947_v26 = vld [vmem:[%s7633_s1 + $0xb8] sm:$0xff] }
 0x21c   : > { %2079 = vmatmul.f32.gmra.mxu0 %v1831_v61  ;;  %2130 = vmatmul.f32.gmra.mxu1 %v1882_v2  ;;  %1543 = vst.msk [vmem:[#allocation4 + $0x48] sm:$0xff] %vm752_vm4, %v1451_v23  ;;  %v1833_v61 = vld [vmem:[#allocation4 + $0x28] sm:$0xff] }
 0x21d   : > { %v1461_v5 = vpop.permute.xlu2 %1460  ;;  %1678 = vrot.lane.b32.xlu1 %v5931_v31, %s4950_s12  ;;  %2181 = vmatpush.msrb.mxu1 %v1947_v26  ;;  %v1846_v20 = vld [vmem:[#allocation4 + $0x90] sm:$0xff] }
 0x21e   : > { %v1487_v6 = vpop.permute.xlu1 %1486  ;;  %1548 = vst.msk [vmem:[#allocation4 + $0xc0] sm:$0xff] %vm752_vm4, %v1461_v5  ;;  %v1888_v27 = vld [vmem:[#allocation4 + $0x1e0] sm:$0xff] }
 0x21f   : > { %1561 = vst.msk [vmem:[#allocation4 + $0x1f8] sm:$0xff] %vm752_vm4, %v1487_v6  ;;  %2182 = vmatpush.msrb.mxu1 %v1946_v10  ;;  %v1836_v6 = vld [vmem:[#allocation4 + $0x40] sm:$0xff] }
 0x221   : > { %1676 = vrot.lane.b32.xlu0 %v5900_v41, %s4950_s12  ;;  %2183 = vmatpush.msrb.mxu1 %v1945_v43  ;;  %v1851_v43 = vld [vmem:[#allocation4 + $0xb8] sm:$0xff] }
 0x222   : > { %4736 = vmatmul.msk.f32.gmra.mxu2 %vm223_vm1, %v1833_v61  ;;  %v1875_v61 = vld [vmem:[#allocation4 + $0x178] sm:$0xff] }
 0x223   : > { %v1455_v55 = vpop.permute.xlu0 %1454  ;;  %v1837_v41 = vld [vmem:[#allocation4 + $0x48] sm:$0xff]  ;;  %2184 = vmatpush.msrb.mxu1 %v1944_v52 }
 0x224   : > { %2082 = vmatmul.f32.gmra.mxu0 %v1834_v25  ;;  %2133 = vmatmul.f32.gmra.mxu1 %v1885_v30  ;;  %1545 = vst.msk [vmem:[#allocation4 + $0x78] sm:$0xff] %vm752_vm4, %v1455_v55 }
 0x225   : > { %v1465_v15 = vpop.permute.xlu2 %1464  ;;  %1684 = vrot.lane.b32.xlu1 %v6013_v24, %s4950_s12  ;;  %2185 = vmatpush.msrb.mxu1 %v1943_v62  ;;  %v1852_v0 = vld [vmem:[#allocation4 + $0xc0] sm:$0xff] }
 0x226   : > { %v1489_v31 = vpop.permute.xlu1 %1488  ;;  %1550 = vst.msk [vmem:[#allocation4 + $0xf0] sm:$0xff] %vm752_vm4, %v1465_v15  ;;  %v1891_v35 = vld [vmem:[#allocation4 + $0x1f8] sm:$0xff] }
 0x227   : > { %1562 = vst.msk [vmem:[#allocation4 + $0x210] sm:$0xff] %vm752_vm4, %v1489_v31  ;;  %2186 = vmatpush.msrb.mxu1 %v1942_v54 }
 0x229   : > { %1682 = vrot.lane.b32.xlu0 %v5975_v17, %s4950_s12  ;;  %v1840_v17 = vld [vmem:[#allocation4 + $0x60] sm:$0xff]  ;;  %2187 = vmatpush.msrb.mxu1 %v1941_v18 }
 0x22a   : > { %4737 = vmatmul.msk.f32.gmra.mxu2 %vm223_vm1, %v1836_v6 }
 0x22b   : > { %v1459_v1 = vpop.permute.xlu0 %1458  ;;  %2188 = vmatpush.msrb.mxu1 %v1940_v14 }
 0x22c   : > { %2085 = vmatmul.f32.gmra.mxu0 %v1837_v41  ;;  %2136 = vmatmul.f32.gmra.mxu1 %v1888_v27  ;;  %1547 = vst.msk [vmem:[#allocation4 + $0xa8] sm:$0xff] %vm752_vm4, %v1459_v1  ;;  %v1842_v27 = vld [vmem:[#allocation4 + $0x70] sm:$0xff] }
 0x22d   : > { %v1469_v32 = vpop.permute.xlu2 %1468  ;;  %1690 = vrot.lane.b32.xlu1 %v6021_v7, %s4950_s12  ;;  %v1858_v12 = vld [vmem:[#allocation4 + $0xf0] sm:$0xff] }
 0x22e   : > { %1552 = vst.msk [vmem:[#allocation4 + $0x120] sm:$0xff] %vm752_vm4, %v1469_v32  ;;  %v1463_v24 = vpop.permute.xlu1 %1462  ;;  %v1894_v36 = vld [vmem:[#allocation4 + $0x210] sm:$0xff] }
 0x22f   : > { %1549 = vst.msk [vmem:[#allocation4 + $0xd8] sm:$0xff] %vm752_vm4, %v1463_v24 }
 0x231   : > { %1688 = vrot.lane.b32.xlu0 %v6034_v33, %s4950_s12  ;;  %v1843_v33 = vld [vmem:[#allocation4 + $0x78] sm:$0xff] }
 0x232   : > { %4738 = vmatmul.msk.f32.gmra.mxu2 %vm223_vm1, %v1839_v9 }
 0x233   : > { %v1491_v37 = vpop.permute.xlu0 %1490  ;;  %v1849_v60 = vld [vmem:[#allocation4 + $0xa8] sm:$0xff] }
 0x234   : > { %2088 = vmatmul.f32.gmra.mxu0 %v1840_v17  ;;  %2139 = vmatmul.f32.gmra.mxu1 %v1891_v35  ;;  %1563 = vst.msk [vmem:[#allocation4 + $0x228] sm:$0xff] %vm752_vm4, %v1491_v37  ;;  %v1845_v17 = vld [vmem:[#allocation4 + $0x88] sm:$0xff] }
 0x235   : > { %v1497_v34 = vpop.permute.xlu2 %1496  ;;  %v1864_v5 = vld [vmem:[#allocation4 + $0x120] sm:$0xff] }
 0x236   : > { %1566 = vst.msk [vmem:[#allocation4 + $0x270] sm:$0xff] %vm752_vm4, %v1497_v34  ;;  %v1467_v7 = vpop.permute.xlu1 %1466  ;;  %v1855_v49 = vld [vmem:[#allocation4 + $0xd8] sm:$0xff]  ;;  %v1848_v34 = vld [vmem:[#allocation4 + $0xa0] sm:$0xff] }
 0x237   : > { %1551 = vst.msk [vmem:[#allocation4 + $0x108] sm:$0xff] %vm752_vm4, %v1467_v7 }
 0x239   : > { %1694 = vrot.lane.b32.xlu0 %v6066_v48, %s4950_s12 }
 0x23a   : > { %4739 = vmatmul.msk.f32.gmra.mxu2 %vm223_vm1, %v1842_v27  ;;  %v1782_v27 = vld [vmem:[#allocation3 + $0xb0] sm:$0xff] }
 0x23b   : > { %v1493_v21 = vpop.permute.xlu0 %1492  ;;  %v1897_v50 = vld [vmem:[#allocation4 + $0x228] sm:$0xff]  ;;  %1814 = vst.msk [vmem:[#allocation4 + $0x1c0] sm:$0xff] %vm223_vm1, %v1782_v27 }
 0x23c   : > { %2091 = vmatmul.f32.gmra.mxu0 %v1843_v33  ;;  %2142 = vmatmul.f32.gmra.mxu1 %v1894_v36  ;;  %1564 = vst.msk [vmem:[#allocation4 + $0x240] sm:$0xff] %vm752_vm4, %v1493_v21  ;;  %v1591_v21 = vld [vmem:[#allocation3 + $0xa8] sm:$0xff] }
 0x23d   : > { %v1499_v45 = vpop.permute.xlu2 %1498  ;;  %v1906_v22 = vld [vmem:[#allocation4 + $0x270] sm:$0xff]  ;;  %1674 = vrot.lane.b32.xlu2 %v1591_v21, %s4950_s12  ;;  %1813 = vst.msk [vmem:[#allocation4 + $0x1a8] sm:$0xff] %vm223_vm1, %v1591_v21 }
 0x23e   : > { %1567 = vst.msk [vmem:[#allocation4 + $0x288] sm:$0xff] %vm752_vm4, %v1499_v45  ;;  %v1471_v47 = vpop.permute.xlu1 %1470  ;;  %v1861_v2 = vld [vmem:[#allocation4 + $0x108] sm:$0xff] }
 0x23f   : > { %1553 = vst.msk [vmem:[#allocation4 + $0x138] sm:$0xff] %vm752_vm4, %v1471_v47 }
 0x242   : > { %4740 = vmatmul.msk.f32.gmra.mxu2 %vm223_vm1, %v1845_v17 }
 0x243   : > { %v1495_v48 = vpop.permute.xlu0 %1494  ;;  %v1900_v58 = vld [vmem:[#allocation4 + $0x240] sm:$0xff] }
 0x244   : > { %2094 = vmatmul.f32.gmra.mxu0 %v1846_v20  ;;  %2145 = vmatmul.f32.gmra.mxu1 %v1897_v50  ;;  %1565 = vst.msk [vmem:[#allocation4 + $0x258] sm:$0xff] %vm752_vm4, %v1495_v48  ;;  %v1854_v20 = vld [vmem:[#allocation4 + $0xd0] sm:$0xff] }
 0x245   : > { %v1505_v39 = vpop.permute.xlu2 %1504  ;;  %v1909_v42 = vld [vmem:[#allocation4 + $0x288] sm:$0xff]  ;;  %1680 = vrot.lane.b32.xlu2 %v5950_v38, %s4950_s12  ;;  %v1860_v38 = vld [vmem:[#allocation4 + $0x100] sm:$0xff] }
 0x246   : > { %v1475_v53 = vpop.permute.xlu1 %1474  ;;  %1570 = vst.msk [vmem:[#allocation4 + $0x2d0] sm:$0xff] %vm752_vm4, %v1505_v39  ;;  %v1867_v55 = vld [vmem:[#allocation4 + $0x138] sm:$0xff] }
 0x247   : > { %1555 = vst.msk [vmem:[#allocation4 + $0x168] sm:$0xff] %vm752_vm4, %v1475_v53 }
 0x24a   : > { %4741 = vmatmul.msk.f32.gmra.mxu2 %vm223_vm1, %v1848_v34  ;;  %v1783_v34 = vld [vmem:[#allocation3 + $0xb8] sm:$0xff] }
 0x24b   : > { %v1473_v46 = vpop.permute.xlu0 %1472  ;;  %v1903_v40 = vld [vmem:[#allocation4 + $0x258] sm:$0xff]  ;;  %1815 = vst.msk [vmem:[#allocation4 + $0x1d8] sm:$0xff] %vm223_vm1, %v1783_v34 }
 0x24c   : > { %2097 = vmatmul.f32.gmra.mxu0 %v1849_v60  ;;  %2148 = vmatmul.f32.gmra.mxu1 %v1900_v58  ;;  %1554 = vst.msk [vmem:[#allocation4 + $0x150] sm:$0xff] %vm752_vm4, %v1473_v46  ;;  %v1857_v58 = vld [vmem:[#allocation4 + $0xe8] sm:$0xff]  ;;  %v4080_v34 = vld [vmem:[%s7635_s3 + $0x108] sm:$0xff] }
 0x24d   : > { %v1639_v59 = vpop.permute.xlu2 %1638  ;;  %v1918_v25 = vld [vmem:[#allocation4 + $0x2d0] sm:$0xff]  ;;  %1686 = vrot.lane.b32.xlu2 %v6041_v28, %s4950_s12  ;;  %v1863_v28 = vld [vmem:[#allocation4 + $0x118] sm:$0xff] }
 0x24e   : > { %v1503_v3 = vpop.permute.xlu1 %1502  ;;  %1733 = vst.msk [vmem:[#allocation4 + $0x20] sm:$0xff] %vm1017_vm5, %v1639_v59  ;;  %v1873_v24 = vld [vmem:[#allocation4 + $0x168] sm:$0xff] }
 0x24f   : > { %1569 = vst.msk [vmem:[#allocation4 + $0x2b8] sm:$0xff] %vm752_vm4, %v1503_v3 }
 0x252   : > { %4742 = vmatmul.msk.f32.gmra.mxu2 %vm223_vm1, %v1851_v43 }
 0x253   : > { %v1501_v4 = vpop.permute.xlu0 %1500  ;;  %v1870_v41 = vld [vmem:[#allocation4 + $0x150] sm:$0xff] }
 0x254   : > { %2100 = vmatmul.f32.gmra.mxu0 %v1852_v0  ;;  %2151 = vmatmul.f32.gmra.mxu1 %v1903_v40  ;;  %1568 = vst.msk [vmem:[#allocation4 + $0x2a0] sm:$0xff] %vm752_vm4, %v1501_v4  ;;  %v1776_v0 = vld [vmem:[#allocation3 + $0x80] sm:$0xff] }
 0x255   : > { %v1645_v31 = vpop.permute.xlu2 %1644  ;;  %v1832_v37 = vld [vmem:[#allocation4 + $0x20] sm:$0xff]  ;;  %1692 = vrot.lane.b32.xlu2 %v6088_v63, %s4950_s12  ;;  %1808 = vst.msk [vmem:[#allocation4 + $0x130] sm:$0xff] %vm223_vm1, %v1776_v0  ;;  %v1785_v0 = vld [vmem:[#allocation3 + $0xc8] sm:$0xff] }
 0x256   : > { %v1637_v57 = vpop.permute.xlu1 %1636  ;;  %v1915_v23 = vld [vmem:[#allocation4 + $0x2b8] sm:$0xff]  ;;  %1736 = vst.msk [vmem:[#allocation4 + $0x68] sm:$0xff] %vm1017_vm5, %v1645_v31 }
 0x257   : > { %1732 = vst.msk [vmem:[#allocation4 + $0x8] sm:$0xff] %vm1017_vm5, %v1637_v57  ;;  %v1778_v57 = vld [vmem:[#allocation3 + $0x90] sm:$0xff] }
 0x258   : > { %1810 = vst.msk [vmem:[#allocation4 + $0x160] sm:$0xff] %vm223_vm1, %v1778_v57 }
 0x259   : > { %1817 = vst.msk [vmem:[#allocation4 + $0x208] sm:$0xff] %vm223_vm1, %v1785_v0 }
 0x25a   : > { %4743 = vmatmul.msk.f32.gmra.mxu2 %vm223_vm1, %v1854_v20  ;;  %v1603_v20 = vld [vmem:[#allocation3 + $0x108] sm:$0xff] }
 0x25b   : > { %v1507_v8 = vpop.permute.xlu0 %1506  ;;  %v1912_v44 = vld [vmem:[#allocation4 + $0x2a0] sm:$0xff]  ;;  %1825 = vst.msk [vmem:[#allocation4 + $0x2c8] sm:$0xff] %vm223_vm1, %v1603_v20 }
 0x25c   : > { %2103 = vmatmul.f32.gmra.mxu0 %v1855_v49  ;;  %2154 = vmatmul.f32.gmra.mxu1 %v1906_v22  ;;  %1571 = vst.msk [vmem:[#allocation4 + $0x2e8] sm:$0xff] %vm752_vm4, %v1507_v8  ;;  %v1866_v63 = vld [vmem:[#allocation4 + $0x130] sm:$0xff]  ;;  %v1777_v49 = vld [vmem:[#allocation3 + $0x88] sm:$0xff] }
 0x25d   : > { %v1651_v33 = vpop.permute.xlu2 %1650  ;;  %v1841_v52 = vld [vmem:[#allocation4 + $0x68] sm:$0xff]  ;;  %1809 = vst.msk [vmem:[#allocation4 + $0x148] sm:$0xff] %vm223_vm1, %v1777_v49  ;;  %1698 = vrot.lane.b32.xlu2 %v1603_v20, %s4950_s12 }
 0x25e   : > { %v1643_v30 = vpop.permute.xlu1 %1642  ;;  %v1829_v26 = vld [vmem:[#allocation4 + $0x8] sm:$0xff]  ;;  %1739 = vst.msk [vmem:[#allocation4 + $0xb0] sm:$0xff] %vm1017_vm5, %v1651_v33 }
 0x25f   : > { %1735 = vst.msk [vmem:[#allocation4 + $0x50] sm:$0xff] %vm1017_vm5, %v1643_v30  ;;  %v1872_v56 = vld [vmem:[#allocation4 + $0x160] sm:$0xff] }
 0x262   : > { %4744 = vmatmul.msk.f32.gmra.mxu2 %vm223_vm1, %v1857_v58 }
 0x263   : > { %v1641_v29 = vpop.permute.xlu0 %1640  ;;  %v1921_v15 = vld [vmem:[#allocation4 + $0x2e8] sm:$0xff] }
 0x264   : > { %2106 = vmatmul.f32.gmra.mxu0 %v1858_v12  ;;  %2157 = vmatmul.f32.gmra.mxu1 %v1909_v42  ;;  %1734 = vst.msk [vmem:[#allocation4 + $0x38] sm:$0xff] %vm1017_vm5, %v1641_v29  ;;  %v1869_v11 = vld [vmem:[#allocation4 + $0x148] sm:$0xff] }
 0x265   : > { %v1657_v62 = vpop.permute.xlu2 %1656  ;;  %v1850_v54 = vld [vmem:[#allocation4 + $0xb0] sm:$0xff] }
 0x266   : > { %v1649_v10 = vpop.permute.xlu1 %1648  ;;  %v1838_v47 = vld [vmem:[#allocation4 + $0x50] sm:$0xff]  ;;  %1742 = vst.msk [vmem:[#allocation4 + $0xf8] sm:$0xff] %vm1017_vm5, %v1657_v62 }
 0x267   : > { %1738 = vst.msk [vmem:[#allocation4 + $0x98] sm:$0xff] %vm1017_vm5, %v1649_v10  ;;  %v1884_v10 = vld [vmem:[#allocation4 + $0x1c0] sm:$0xff] }
 0x268   : > { %4753 = vmatmul.msk.f32.vlgmr.msra.gmra.mxu3 %vm223_vm1, %v1884_v10 }
 0x26a   : > { %4745 = vmatmul.msk.f32.gmra.mxu2 %vm223_vm1, %v1860_v38 }
 0x26b   : > { %v1647_v32 = vpop.permute.xlu0 %1646  ;;  %v1835_v36 = vld [vmem:[#allocation4 + $0x38] sm:$0xff] }
 0x26c   : > { %2109 = vmatmul.f32.gmra.mxu0 %v1861_v2  ;;  %2160 = vmatmul.f32.gmra.mxu1 %v1912_v44  ;;  %1737 = vst.msk [vmem:[#allocation4 + $0x80] sm:$0xff] %vm1017_vm5, %v1647_v32  ;;  %v1602_v2 = vld [vmem:[#allocation3 + $0x100] sm:$0xff] }
 0x26d   : > { %v1663_v51 = vpop.permute.xlu2 %1662  ;;  %v1859_v44 = vld [vmem:[#allocation4 + $0xf8] sm:$0xff]  ;;  %1696 = vrot.lane.b32.xlu1 %v1602_v2, %s4950_s12  ;;  %1824 = vst.msk [vmem:[#allocation4 + $0x2b0] sm:$0xff] %vm223_vm1, %v1602_v2 }
 0x26e   : > { %v1655_v53 = vpop.permute.xlu1 %1654  ;;  %v1847_v39 = vld [vmem:[#allocation4 + $0x98] sm:$0xff]  ;;  %1745 = vst.msk [vmem:[#allocation4 + $0x140] sm:$0xff] %vm1017_vm5, %v1663_v51 }
 0x26f   : > { %1741 = vst.msk [vmem:[#allocation4 + $0xe0] sm:$0xff] %vm1017_vm5, %v1655_v53 }
 0x272   : > { %4746 = vmatmul.msk.f32.gmra.mxu2 %vm223_vm1, %v1863_v28 }
 0x273   : > { %v1653_v50 = vpop.permute.xlu0 %1652  ;;  %v1844_v46 = vld [vmem:[#allocation4 + $0x80] sm:$0xff] }
 0x274   : > { %2112 = vmatmul.f32.gmra.mxu0 %v1864_v5  ;;  %2163 = vmatmul.f32.gmra.mxu1 %v1915_v23  ;;  %1740 = vst.msk [vmem:[#allocation4 + $0xc8] sm:$0xff] %vm1017_vm5, %v1653_v50  ;;  %v1780_v23 = vld [vmem:[#allocation3 + $0xa0] sm:$0xff]  ;;  %v1887_v50 = vld [vmem:[#allocation4 + $0x1d8] sm:$0xff] }
 0x275   : > { %1812 = vst.msk [vmem:[#allocation4 + $0x190] sm:$0xff] %vm223_vm1, %v1780_v23  ;;  %v1669_v6 = vpop.permute.xlu2 %1668  ;;  %4754 = vmatmul.msk.f32.gmra.mxu3 %vm223_vm1, %v1887_v50 }
 0x276   : > { %v1661_v22 = vpop.permute.xlu1 %1660  ;;  %v1856_v12 = vld [vmem:[#allocation4 + $0xe0] sm:$0xff]  ;;  %1748 = vst.msk [vmem:[#allocation4 + $0x188] sm:$0xff] %vm1017_vm5, %v1669_v6 }
 0x277   : > { %1744 = vst.msk [vmem:[#allocation4 + $0x128] sm:$0xff] %vm1017_vm5, %v1661_v22 }
 0x27a   : > { %4747 = vmatmul.msk.f32.gmra.mxu2 %vm223_vm1, %v1866_v63 }
 0x27b   : > { %v1659_v40 = vpop.permute.xlu0 %1658  ;;  %v1853_v18 = vld [vmem:[#allocation4 + $0xc8] sm:$0xff] }
 0x27c   : > { %2115 = vmatmul.f32.gmra.mxu0 %v1867_v55  ;;  %2166 = vmatmul.f32.gmra.mxu1 %v1918_v25  ;;  %1743 = vst.msk [vmem:[#allocation4 + $0x110] sm:$0xff] %vm1017_vm5, %v1659_v40  ;;  %v1878_v30 = vld [vmem:[#allocation4 + $0x190] sm:$0xff] }
 0x27d   : > { %v1877_v22 = vld [vmem:[#allocation4 + $0x188] sm:$0xff] }
 0x27e   : > { %v1667_v59 = vpop.permute.xlu1 %1666  ;;  %v1865_v9 = vld [vmem:[#allocation4 + $0x128] sm:$0xff] }
 0x27f   : > { %1747 = vst.msk [vmem:[#allocation4 + $0x170] sm:$0xff] %vm1017_vm5, %v1667_v59 }
 0x282   : > { %4748 = vmatmul.msk.f32.gmra.mxu2 %vm223_vm1, %v1869_v11 }
 0x283   : > { %v1665_v14 = vpop.permute.xlu0 %1664  ;;  %v1862_v5 = vld [vmem:[#allocation4 + $0x110] sm:$0xff] }
 0x284   : > { %2118 = vmatmul.f32.gmra.mxu0 %v1870_v41  ;;  %2169 = vmatmul.f32.gmra.mxu1 %v1921_v15  ;;  %1746 = vst.msk [vmem:[#allocation4 + $0x158] sm:$0xff] %vm1017_vm5, %v1665_v14  ;;  %v1881_v41 = vld [vmem:[#allocation4 + $0x1a8] sm:$0xff] }
 0x285   : > { %v1893_v14 = vld [vmem:[#allocation4 + $0x208] sm:$0xff] }
 0x286   : > { %v1874_v58 = vld [vmem:[#allocation4 + $0x170] sm:$0xff] }
 0x289   : > { %v6238_v1 = vpop.f32.mrf.mxu1 }
 0x28a   : > { %4749 = vmatmul.msk.f32.gmra.mxu2 %vm223_vm1, %v1872_v56  ;;  %v1786_v56 = vld [vmem:[#allocation3 + $0xd0] sm:$0xff] }
 0x28b   : > { %v1671_v31 = vpop.permute.xlu0 %1670  ;;  %v1871_v33 = vld [vmem:[#allocation4 + $0x158] sm:$0xff]  ;;  %1818 = vst.msk [vmem:[#allocation4 + $0x220] sm:$0xff] %vm223_vm1, %v1786_v56 }
 0x28c   : > { %2121 = vmatmul.f32.gmra.mxu0 %v1873_v24  ;;  %2189 = vmatmul.f32.vlgmr.msrb.gmra.mxu1 %v1829_v26  ;;  %v2077_v25 = vpop.f32.mrf.mxu0  ;;  %1749 = vst.msk [vmem:[#allocation4 + $0x1a0] sm:$0xff] %vm1017_vm5, %v1671_v31  ;;  %v1868_v24 = vld [vmem:[#allocation4 + $0x140] sm:$0xff] }
 0x291   : > { %v6242_v35 = vpop.f32.mrf.mxu1 }
 0x292   : > { %4750 = vmatmul.msk.f32.gmra.mxu2 %vm223_vm1, %v1875_v61 }
 0x294   : > { %2192 = vmatmul.f32.gmra.mxu1 %v1832_v37  ;;  %v1673_v37 = vpop.permute.xlu1 %1672 }
 0x295   : > { %1750 = vst.msk [vmem:[#allocation4 + $0x1b8] sm:$0xff] %vm1017_vm5, %v1673_v37 }
 0x299   : > { %v6246_v7 = vpop.f32.mrf.mxu1  ;;  %v2080_v26 = vpop.f32.mrf.mxu0 }
 0x29a   : > { %4751 = vmatmul.msk.f32.gmra.mxu2 %vm223_vm1, %v1878_v30  ;;  %v1896_v30 = vld [vmem:[#allocation4 + $0x220] sm:$0xff] }
 0x29c   : > { %2195 = vmatmul.f32.gmra.mxu1 %v1835_v36  ;;  %v2303_v15 = vpop.f32.mrf.mxu2 }
 0x2a1   : > { %v6252_v45 = vpop.f32.mrf.mxu1  ;;  %v2083_v21 = vpop.f32.mrf.mxu0 }
 0x2a2   : > { %4752 = vmatmul.msk.f32.gmra.mxu2 %vm223_vm1, %v1881_v41  ;;  %v1883_v41 = vld [vmem:[#allocation4 + $0x1b8] sm:$0xff] }
 0x2a4   : > { %2198 = vmatmul.f32.gmra.mxu1 %v1838_v47  ;;  %v1675_v47 = vpop.permute.xlu2 %1674 }
 0x2a5   : > { %v2306_v17 = vpop.f32.mrf.mxu2  ;;  %1751 = vst.msk [vmem:[#allocation4 + $0x1d0] sm:$0xff] %vm1017_vm5, %v1675_v47  ;;  %v4079_v47 = vld [vmem:[%s7635_s3 + $0x100] sm:$0xff] }
 0x2a9   : > { %v6258_v48 = vpop.f32.mrf.mxu1  ;;  %v6322_v62 = vpop.f32.mrf.mxu0 }
 0x2ac   : > { %2201 = vmatmul.f32.gmra.mxu1 %v1841_v52  ;;  %v1784_v52 = vld [vmem:[#allocation3 + $0xc0] sm:$0xff]  ;;  %v1681_v61 = vpop.permute.xlu2 %1680 }
 0x2ad   : > { %v6313_v43 = vpop.f32.mrf.mxu2  ;;  %1816 = vst.msk [vmem:[#allocation4 + $0x1f0] sm:$0xff] %vm223_vm1, %v1784_v52 }
 0x2ae   : > { %1754 = vst.msk [vmem:[#allocation4 + $0x218] sm:$0xff] %vm1017_vm5, %v1681_v61 }
 0x2b1   : > { %v6264_v60 = vpop.f32.mrf.mxu1  ;;  %v6336_v51 = vpop.f32.mrf.mxu0 }
 0x2b4   : > { %2204 = vmatmul.f32.gmra.mxu1 %v1844_v46  ;;  %v1677_v46 = vpop.permute.xlu0 %1676  ;;  %v1890_v40 = vld [vmem:[#allocation4 + $0x1f0] sm:$0xff] }
 0x2b5   : > { %1752 = vst.msk [vmem:[#allocation4 + $0x1e8] sm:$0xff] %vm1017_vm5, %v1677_v46  ;;  %v6325_v38 = vpop.f32.mrf.mxu2  ;;  %4755 = vmatmul.msk.f32.gmra.mxu3 %vm223_vm1, %v1890_v40  ;;  %v1788_v46 = vld [vmem:[#allocation3 + $0xe0] sm:$0xff] }
 0x2b6   : > { %1820 = vst.msk [vmem:[#allocation4 + $0x250] sm:$0xff] %vm223_vm1, %v1788_v46 }
 0x2b9   : > { %v6270_v3 = vpop.f32.mrf.mxu1 }
 0x2bc   : > { %2207 = vmatmul.f32.gmra.mxu1 %v1847_v39  ;;  %v6330_v39 = vld [vmem:[%s7634_s2] ss:$0 sm:$0xff]  ;;  %v1683_v10 = vpop.permute.xlu0 %1682 }
 0x2bd   : > { %v2078_v28 = vadd.f32 %v6330_v39, %v2077_v25  ;;  %v6338_v57 = vpop.f32.mrf.mxu2  ;;  %4756 = vmatmul.msk.f32.gmra.mxu3 %vm223_vm1, %v1893_v14  ;;  %v2084_v6 = vadd.f32 %v6330_v39, %v2083_v21  ;;  %v6346_v25 = vpop.f32.mrf.mxu0  ;;  %1755 = vst.msk [vmem:[#allocation4 + $0x230] sm:$0xff] %vm1017_vm5, %v1683_v10  ;;  %v2087_v50 = vadd.f32 %v6330_v39, %v6322_v62  ;;  %v1889_v14 = vld [vmem:[#allocation4 + $0x1e8] sm:$0xff]  ;;  %v1902_v56 = vld [vmem:[#allocation4 + $0x250] sm:$0xff] }
 0x2c1   : > { %v6275_v4 = vpop.f32.mrf.mxu1 }
 0x2c4   : > { %2210 = vmatmul.f32.gmra.mxu1 %v1850_v54 }
 0x2c5   : > { %v6350_v27 = vpop.f32.mrf.mxu2  ;;  %4757 = vmatmul.msk.f32.gmra.mxu3 %vm223_vm1, %v1896_v30 }
 0x2c9   : > { %v6280_v8 = vpop.f32.mrf.mxu1 }
 0x2cc   : > { %2213 = vmatmul.f32.gmra.mxu1 %v1853_v18  ;;  %v1679_v18 = vpop.permute.xlu1 %1678 }
 0x2cd   : > { %1753 = vst.msk [vmem:[#allocation4 + $0x200] sm:$0xff] %vm1017_vm5, %v1679_v18 }
 0x2d1   : > { %v6285_v42 = vpop.f32.mrf.mxu1 }
 0x2d4   : > { %2216 = vmatmul.f32.gmra.mxu1 %v1856_v12  ;;  %v2081_v12 = vadd.f32 %v6330_v39, %v2080_v26  ;;  %v4082_v26 = vld [vmem:[%s7635_s3 + $0x118] sm:$0xff] }
 0x2d5   : > { %4421 = vmatpush.msrb.mxu0 %v4082_v26  ;;  %v1892_v26 = vld [vmem:[#allocation4 + $0x200] sm:$0xff] }
 0x2d9   : > { %v6290_v19 = vpop.f32.mrf.mxu1 }
 0x2dc   : > { %2219 = vmatmul.f32.gmra.mxu1 %v1859_v44  ;;  %v1880_v44 = vld [vmem:[#allocation4 + $0x1a0] sm:$0xff] }
 0x2e1   : > { %v6297_v29 = vpop.f32.mrf.mxu1 }
 0x2e4   : > { %2222 = vmatmul.f32.gmra.mxu1 %v1862_v5 }
 0x2e9   : > { %v6301_v55 = vpop.f32.mrf.mxu1 }
 0x2ec   : > { %2225 = vmatmul.f32.gmra.mxu1 %v1865_v9  ;;  %v1787_v9 = vld [vmem:[#allocation3 + $0xd8] sm:$0xff] }
 0x2ed   : > { %1819 = vst.msk [vmem:[#allocation4 + $0x238] sm:$0xff] %vm223_vm1, %v1787_v9 }
 0x2f1   : > { %v6306_v32 = vpop.f32.mrf.mxu1 }
 0x2f4   : > { %2228 = vmatmul.f32.gmra.mxu1 %v1868_v24 }
 0x2f9   : > { %v6311_v36 = vpop.f32.mrf.mxu1 }
 0x2fc   : > { %2231 = vmatmul.f32.gmra.mxu1 %v1871_v33 }
 0x301   : > { %v6319_v53 = vpop.f32.mrf.mxu1 }
 0x304   : > { %2234 = vmatmul.f32.gmra.mxu1 %v1874_v58  ;;  %v1886_v58 = vld [vmem:[#allocation4 + $0x1d0] sm:$0xff] }
 0x309   : > { %v2190_v54 = vpop.f32.mrf.mxu1 }
 0x30a   : > { %v2191_v63 = vadd.f32 %v2190_v54, %v2078_v28  ;;  %v2095_v28 = vpop.f32.mrf.mxu0  ;;  %v6379_v54 = vpop.f32.mrf.mxu2 }
 0x30c   : > { %v2304_v49 = vadd.f32 %v2303_v15, %v2191_v63  ;;  %2237 = vmatmul.f32.gmra.mxu1 %v1877_v22  ;;  %v1685_v63 = vpop.permute.xlu1 %1684 }
 0x30d   : > { %1756 = vst.msk [vmem:[#allocation4 + $0x248] sm:$0xff] %vm1017_vm5, %v1685_v63 }
 0x30e   : > { %v2399_v11 = vmax.f32 %v2304_v49, 0.0 }
 0x310   : > { %2431 = vst.msk [vmem:[#allocation2 + $0x19] sm:$0xff] %vm223_vm1, %v2399_v11 }
 0x311   : > { %v2193_v16 = vpop.f32.mrf.mxu1 }
 0x312   : > { %v2194_v59 = vadd.f32 %v2193_v16, %v2081_v12  ;;  %v2090_v12 = vadd.f32 %v6330_v39, %v6336_v51 }
 0x314   : > { %v2307_v2 = vadd.f32 %v2306_v17, %v2194_v59  ;;  %2240 = vmatmul.f32.gmra.mxu1 %v1880_v44  ;;  %v4081_v17 = vld [vmem:[%s7635_s3 + $0x110] sm:$0xff]  ;;  %v1789_v44 = vld [vmem:[#allocation3 + $0xe8] sm:$0xff] }
 0x315   : > { %4422 = vmatpush.msrb.mxu0 %v4081_v17  ;;  %1821 = vst.msk [vmem:[#allocation4 + $0x268] sm:$0xff] %vm223_vm1, %v1789_v44 }
 0x316   : > { %v2400_v23 = vmax.f32 %v2307_v2, 0.0  ;;  %v2098_v2 = vpop.f32.mrf.mxu0 }
 0x317   : > { %v2527_v5 = vld [vmem:[#allocation2 + $0x18] sm:$0xff]  ;;  %4423 = vmatpush.msrb.mxu0 %v4080_v34 }
 0x318   : > { %2432 = vst.msk [vmem:[#allocation2 + $0x21] sm:$0xff] %vm223_vm1, %v2400_v23  ;;  %2591 = vrot.lane.b32.xlu0 %v2527_v5, %s4948_s10  ;;  %v2913_v15 = vld [vmem:[#allocation2 + $0x19] sm:$0xff]  ;;  %v6401_v23 = vpop.f32.mrf.mxu2 }
 0x319   : > { %v2196_v31 = vpop.f32.mrf.mxu1  ;;  %2497 = vst.msk [vmem:[#allocation4 + $0x30] sm:$0xff] %vm223_vm1, %v2527_v5  ;;  %4424 = vmatpush.msrb.mxu0 %v4079_v47 }
 0x31a   : > { %v2197_v24 = vadd.f32 %v2196_v31, %v2084_v6  ;;  %2949 = vst.msk [vmem:[#allocation3 + $0x10] sm:$0xff] %vm223_vm1, %v2913_v15  ;;  %v1687_v6 = vpop.permute.xlu2 %1686  ;;  %v2093_v31 = vadd.f32 %v6330_v39, %v6346_v25 }
 0x31b   : > { %1757 = vst.msk [vmem:[#allocation4 + $0x260] sm:$0xff] %vm1017_vm5, %v1687_v6 }
 0x31c   : > { %v2310_v37 = vadd.f32 %v6313_v43, %v2197_v24  ;;  %2243 = vmatmul.f32.gmra.mxu1 %v1883_v41  ;;  %v1899_v43 = vld [vmem:[#allocation4 + $0x238] sm:$0xff]  ;;  %v1905_v17 = vld [vmem:[#allocation4 + $0x268] sm:$0xff] }
 0x31d   : > { %4758 = vmatmul.msk.f32.gmra.mxu3 %vm223_vm1, %v1899_v43  ;;  %v2096_v43 = vadd.f32 %v6330_v39, %v2095_v28 }
 0x31e   : > { %v2401_v33 = vmax.f32 %v2310_v37, 0.0  ;;  %v1790_v37 = vld [vmem:[#allocation3 + $0xf0] sm:$0xff]  ;;  %v2101_v10 = vpop.f32.mrf.mxu0 }
 0x31f   : > { %v2528_v21 = vld [vmem:[#allocation2 + $0x20] sm:$0xff]  ;;  %1822 = vst.msk [vmem:[#allocation4 + $0x280] sm:$0xff] %vm223_vm1, %v1790_v37  ;;  %v1901_v37 = vld [vmem:[#allocation4 + $0x248] sm:$0xff] }
 0x320   : > { %2433 = vst.msk [vmem:[#allocation2 + $0x31] sm:$0xff] %vm223_vm1, %v2401_v33  ;;  %2593 = vrot.lane.b32.xlu1 %v2528_v21, %s4948_s10  ;;  %v3433_v20 = vld [vmem:[#allocation2 + $0x1a] sm:$0xff]  ;;  %v3434_v59 = vld [vmem:[#allocation2 + $0x22] sm:$0xff]  ;;  %v1689_v33 = vpop.permute.xlu0 %1688 }
 0x321   : > { %v2199_v52 = vpop.f32.mrf.mxu1  ;;  %2498 = vst.msk [vmem:[#allocation4 + $0x48] sm:$0xff] %vm223_vm1, %v2528_v21  ;;  %v2914_v40 = vld [vmem:[#allocation2 + $0x21] sm:$0xff] }
 0x322   : > { %v2200_v0 = vadd.f32 %v2199_v52, %v2087_v50  ;;  %v6377_v62 = vld [vmem:[#allocation3 + $0x10] sm:$0xff]  ;;  %2950 = vst.msk [vmem:[#allocation3 + $0x18] sm:$0xff] %vm223_vm1, %v2914_v40  ;;  %v6422_v50 = vpop.f32.mrf.mxu2  ;;  %v1895_v52 = vld [vmem:[#allocation4 + $0x218] sm:$0xff] }
 0x323   : > { %3469 = vst.msk [vmem:[#allocation3 + $0x10] sm:$0xff] %vm223_vm1, %v3433_v20 }
 0x324   : > { %v2313_v22 = vadd.f32 %v6325_v38, %v2200_v0  ;;  %2246 = vmatmul.f32.gmra.mxu1 %v1886_v58  ;;  %1758 = vst.msk [vmem:[#allocation4 + $0x278] sm:$0xff] %vm1017_vm5, %v1689_v33 }
 0x325   : > { %4759 = vmatmul.msk.f32.gmra.mxu3 %vm223_vm1, %v1902_v56 }
 0x326   : > { %v2402_v49 = vmax.f32 %v2313_v22, 0.0  ;;  %v1908_v0 = vld [vmem:[#allocation4 + $0x280] sm:$0xff]  ;;  %v1791_v22 = vld [vmem:[#allocation3 + $0xf8] sm:$0xff]  ;;  %v2104_v56 = vpop.f32.mrf.mxu0 }
 0x327   : > { %v6385_v18 = vld [vmem:[#allocation2 + $0x30] sm:$0xff]  ;;  %1823 = vst.msk [vmem:[#allocation4 + $0x298] sm:$0xff] %vm223_vm1, %v1791_v22 }
 0x328   : > { %v2915_v11 = vld [vmem:[#allocation2 + $0x31] sm:$0xff]  ;;  %2434 = vst.msk [vmem:[#allocation2 + $0x39] sm:$0xff] %vm223_vm1, %v2402_v49  ;;  %2595 = vrot.lane.b32.xlu2 %v6385_v18, %s4948_s10  ;;  %v1691_v49 = vpop.permute.xlu1 %1690 }
 0x329   : > { %2951 = vst.msk [vmem:[#allocation3 + $0x20] sm:$0xff] %vm223_vm1, %v2915_v11  ;;  %v2202_v38 = vpop.f32.mrf.mxu1  ;;  %v6397_v51 = vld [vmem:[#allocation3 + $0x18] sm:$0xff] }
 0x32a   : > { %v2203_v16 = vadd.f32 %v2202_v38, %v2090_v12  ;;  %2499 = vst.msk [vmem:[#allocation4 + $0x60] sm:$0xff] %vm223_vm1, %v6385_v18 }
 0x32b   : > { %3470 = vst.msk [vmem:[#allocation3 + $0x18] sm:$0xff] %vm223_vm1, %v3434_v59  ;;  %v1898_v59 = vld [vmem:[#allocation4 + $0x230] sm:$0xff] }
 0x32c   : > { %v2316_v61 = vadd.f32 %v6338_v57, %v2203_v16  ;;  %2249 = vmatmul.f32.gmra.mxu1 %v1889_v14  ;;  %1759 = vst.msk [vmem:[#allocation4 + $0x290] sm:$0xff] %vm1017_vm5, %v1691_v49  ;;  %v2099_v14 = vadd.f32 %v6330_v39, %v2098_v2 }
 0x32d   : > { %4760 = vmatmul.msk.f32.gmra.mxu3 %vm223_vm1, %v1905_v17 }
 0x32e   : > { %v2403_v5 = vmax.f32 %v2316_v61, 0.0  ;;  %v2330_v61 = vpop.f32.mrf.mxu2  ;;  %v1911_v2 = vld [vmem:[#allocation4 + $0x298] sm:$0xff]  ;;  %v2107_v33 = vpop.f32.mrf.mxu0 }
 0x32f   : > { %v6403_v30 = vld [vmem:[#allocation2 + $0x38] sm:$0xff] }
 0x330   : > { %v2916_v9 = vld [vmem:[#allocation2 + $0x39] sm:$0xff]  ;;  %2435 = vst.msk [vmem:[#allocation2 + $0x49] sm:$0xff] %vm223_vm1, %v2403_v5  ;;  %2597 = vrot.lane.b32.xlu0 %v6403_v30, %s4948_s10  ;;  %v6411_v57 = vld [vmem:[#allocation3 + $0x20] sm:$0xff] }
 0x331   : > { %v3435_v15 = vld [vmem:[#allocation2 + $0x32] sm:$0xff]  ;;  %2952 = vst.msk [vmem:[#allocation3 + $0x28] sm:$0xff] %vm223_vm1, %v2916_v9  ;;  %v2205_v41 = vpop.f32.mrf.mxu1  ;;  %v3436_v46 = vld [vmem:[#allocation2 + $0x3a] sm:$0xff] }
 0x332   : > { %v2206_v24 = vadd.f32 %v2205_v41, %v2093_v31  ;;  %3471 = vst.msk [vmem:[#allocation3 + $0x20] sm:$0xff] %vm223_vm1, %v3435_v15  ;;  %v1693_v31 = vpop.permute.xlu2 %1692 }
 0x333   : > { %2500 = vst.msk [vmem:[#allocation4 + $0x78] sm:$0xff] %vm223_vm1, %v6403_v30 }
 0x334   : > { %v2319_v25 = vadd.f32 %v6350_v27, %v2206_v24  ;;  %2252 = vmatmul.f32.gmra.mxu1 %v1892_v26  ;;  %1760 = vst.msk [vmem:[#allocation4 + $0x2a8] sm:$0xff] %vm1017_vm5, %v1693_v31  ;;  %v2102_v24 = vadd.f32 %v6330_v39, %v2101_v10 }
 0x335   : > { %4761 = vmatmul.msk.f32.gmra.mxu3 %vm223_vm1, %v1908_v0 }
 0x336   : > { %v2404_v34 = vmax.f32 %v2319_v25, 0.0  ;;  %v2333_v10 = vpop.f32.mrf.mxu2 }
 0x337   : > { %v6420_v21 = vld [vmem:[#allocation2 + $0x48] sm:$0xff] }
 0x338   : > { %v2917_v47 = vld [vmem:[#allocation2 + $0x49] sm:$0xff]  ;;  %2436 = vst.msk [vmem:[#allocation2 + $0x51] sm:$0xff] %vm223_vm1, %v2404_v34  ;;  %2599 = vrot.lane.b32.xlu1 %v6420_v21, %s4948_s10  ;;  %v6429_v27 = vld [vmem:[#allocation3 + $0x28] sm:$0xff]  ;;  %v1914_v34 = vld [vmem:[#allocation4 + $0x2b0] sm:$0xff] }
 0x339   : > { %2953 = vst.msk [vmem:[#allocation3 + $0x30] sm:$0xff] %vm223_vm1, %v2917_v47  ;;  %v2208_v20 = vpop.f32.mrf.mxu1  ;;  %v3887_v58 = vld [vmem:[#allocation3 + $0x20] sm:$0xff] }
 0x33a   : > { %v2209_v40 = vadd.f32 %v2208_v20, %v2096_v43  ;;  %3919 = vst.msk [vmem:[#allocation4 + $0x10] sm:$0xff] %vm223_vm1, %v3887_v58 }
 0x33b   : > { %3472 = vst.msk [vmem:[#allocation3 + $0x28] sm:$0xff] %vm223_vm1, %v3436_v46  ;;  %v1695_v46 = vpop.permute.xlu0 %1694 }
 0x33c   : > { %v2322_v28 = vadd.f32 %v6379_v54, %v2209_v40  ;;  %2255 = vmatmul.f32.gmra.mxu1 %v1895_v52  ;;  %2501 = vst.msk [vmem:[#allocation4 + $0x90] sm:$0xff] %vm223_vm1, %v6420_v21 }
 0x33d   : > { %4762 = vmatmul.msk.f32.gmra.mxu3 %vm223_vm1, %v1911_v2  ;;  %1761 = vst.msk [vmem:[#allocation4 + $0x2c0] sm:$0xff] %vm1017_vm5, %v1695_v46 }
 0x33e   : > { %v2405_v63 = vmax.f32 %v2322_v28, 0.0  ;;  %v2105_v28 = vadd.f32 %v6330_v39, %v2104_v56  ;;  %v2110_v56 = vpop.f32.mrf.mxu0 }
 0x33f   : > { %v6439_v11 = vld [vmem:[#allocation2 + $0x50] sm:$0xff] }
 0x340   : > { %v2918_v12 = vld [vmem:[#allocation2 + $0x51] sm:$0xff]  ;;  %2437 = vst.msk [vmem:[#allocation2 + $0x61] sm:$0xff] %vm223_vm1, %v2405_v63  ;;  %2601 = vrot.lane.b32.xlu2 %v6439_v11, %s4948_s10  ;;  %v6446_v54 = vld [vmem:[#allocation3 + $0x30] sm:$0xff] }
 0x341   : > { %v3437_v38 = vld [vmem:[#allocation2 + $0x4a] sm:$0xff]  ;;  %v3953_v16 = vld [vmem:[#allocation4 + $0x10] sm:$0xff]  ;;  %2954 = vst.msk [vmem:[#allocation3 + $0x38] sm:$0xff] %vm223_vm1, %v2918_v12  ;;  %v2211_v44 = vpop.f32.mrf.mxu1  ;;  %v3438_v47 = vld [vmem:[#allocation2 + $0x52] sm:$0xff] }
 0x342   : > { %4767 = vmatmul.msk.f32.vlgmr.msrb.gmra.mxu0 %vm223_vm1, %v3953_v16  ;;  %v2212_v5 = vadd.f32 %v2211_v44, %v2099_v14  ;;  %v3888_v6 = vld [vmem:[#allocation3 + $0x28] sm:$0xff]  ;;  %3473 = vst.msk [vmem:[#allocation3 + $0x30] sm:$0xff] %vm223_vm1, %v3437_v38  ;;  %v1904_v12 = vld [vmem:[#allocation4 + $0x260] sm:$0xff] }
 0x343   : > { %3920 = vst.msk [vmem:[#allocation4 + $0x28] sm:$0xff] %vm223_vm1, %v3888_v6  ;;  %v1917_v38 = vld [vmem:[#allocation4 + $0x2c8] sm:$0xff]  ;;  %v1697_v6 = vpop.permute.xlu1 %1696 }
 0x344   : > { %v2325_v9 = vadd.f32 %v6401_v23, %v2212_v5  ;;  %2258 = vmatmul.f32.gmra.mxu1 %v1898_v59  ;;  %2502 = vst.msk [vmem:[#allocation4 + $0xa8] sm:$0xff] %vm223_vm1, %v6439_v11  ;;  %v2336_v59 = vpop.f32.mrf.mxu2 }
 0x345   : > { %4763 = vmatmul.msk.f32.gmra.mxu3 %vm223_vm1, %v1914_v34  ;;  %1762 = vst.msk [vmem:[#allocation4 + $0x2d8] sm:$0xff] %vm1017_vm5, %v1697_v6 }
 0x346   : > { %v2406_v15 = vmax.f32 %v2325_v9, 0.0 }
 0x347   : > { %v6456_v41 = vld [vmem:[#allocation2 + $0x60] sm:$0xff] }
 0x348   : > { %v2919_v26 = vld [vmem:[#allocation2 + $0x61] sm:$0xff]  ;;  %2438 = vst.msk [vmem:[#allocation2 + $0x69] sm:$0xff] %vm223_vm1, %v2406_v15  ;;  %2603 = vrot.lane.b32.xlu0 %v6456_v41, %s4948_s10  ;;  %v2108_v15 = vadd.f32 %v6330_v39, %v2107_v33  ;;  %v1699_v33 = vpop.permute.xlu2 %1698 }
 0x349   : > { %v6463_v23 = vld [vmem:[#allocation3 + $0x38] sm:$0xff]  ;;  %2955 = vst.msk [vmem:[#allocation3 + $0x40] sm:$0xff] %vm223_vm1, %v2919_v26  ;;  %v2214_v17 = vpop.f32.mrf.mxu1  ;;  %v3889_v25 = vld [vmem:[#allocation3 + $0x30] sm:$0xff] }
 0x34a   : > { %v3956_v43 = vld [vmem:[#allocation4 + $0x28] sm:$0xff]  ;;  %v2215_v20 = vadd.f32 %v2214_v17, %v2102_v24  ;;  %3921 = vst.msk [vmem:[#allocation4 + $0x40] sm:$0xff] %vm223_vm1, %v3889_v25  ;;  %v1907_v26 = vld [vmem:[#allocation4 + $0x278] sm:$0xff]  ;;  %v1920_v17 = vld [vmem:[#allocation4 + $0x2e0] sm:$0xff] }
 0x34b   : > { %4768 = vmatmul.msk.f32.gmra.mxu0 %vm223_vm1, %v3956_v43  ;;  %3474 = vst.msk [vmem:[#allocation3 + $0x38] sm:$0xff] %vm223_vm1, %v3438_v47  ;;  %v2113_v43 = vpop.f32.mrf.mxu0 }
 0x34c   : > { %v2328_v52 = vadd.f32 %v6422_v50, %v2215_v20  ;;  %2261 = vmatmul.f32.gmra.mxu1 %v1901_v37  ;;  %2503 = vst.msk [vmem:[#allocation4 + $0xc0] sm:$0xff] %vm223_vm1, %v6456_v41  ;;  %v2114_v6 = vadd.f32 %v6330_v39, %v2113_v43 }
 0x34d   : > { %4764 = vmatmul.msk.f32.gmra.mxu3 %vm223_vm1, %v1917_v38  ;;  %1763 = vst.msk [vmem:[#allocation4 + $0x2f0] sm:$0xff] %vm1017_vm5, %v1699_v33  ;;  %v2463_v33 = vld [vmem:[#allocation2] sm:$0xff] }
 0x34e   : > { %v2407_v58 = vmax.f32 %v2328_v52, 0.0  ;;  %2495 = vst.msk [vmem:[#allocation4] sm:$0xff] %vm223_vm1, %v2463_v33 }
 0x34f   : > { %v6473_v40 = vld [vmem:[#allocation2 + $0x68] sm:$0xff] }
 0x350   : > { %v2920_v0 = vld [vmem:[#allocation2 + $0x69] sm:$0xff]  ;;  %2439 = vst.msk [vmem:[#allocation2 + $0x79] sm:$0xff] %vm223_vm1, %v2407_v58  ;;  %2605 = vrot.lane.b32.xlu1 %v6473_v40, %s4948_s10 }
 0x351   : > { %v3439_v22 = vld [vmem:[#allocation2 + $0x62] sm:$0xff]  ;;  %v6480_v50 = vld [vmem:[#allocation3 + $0x40] sm:$0xff]  ;;  %2956 = vst.msk [vmem:[#allocation3 + $0x48] sm:$0xff] %vm223_vm1, %v2920_v0  ;;  %v2217_v49 = vpop.f32.mrf.mxu1  ;;  %v2339_v0 = vpop.f32.mrf.mxu2 }
 0x352   : > { %v3959_v63 = vld [vmem:[#allocation4 + $0x40] sm:$0xff]  ;;  %v2218_v14 = vadd.f32 %v2217_v49, %v2105_v28  ;;  %v3890_v16 = vld [vmem:[#allocation3 + $0x38] sm:$0xff]  ;;  %3475 = vst.msk [vmem:[#allocation3 + $0x40] sm:$0xff] %vm223_vm1, %v3439_v22  ;;  %v2111_v22 = vadd.f32 %v6330_v39, %v2110_v56  ;;  %v1910_v49 = vld [vmem:[#allocation4 + $0x290] sm:$0xff] }
 0x353   : > { %4769 = vmatmul.msk.f32.gmra.mxu0 %vm223_vm1, %v3959_v63  ;;  %3922 = vst.msk [vmem:[#allocation4 + $0x58] sm:$0xff] %vm223_vm1, %v3890_v16  ;;  %v3440_v37 = vld [vmem:[#allocation2 + $0x6a] sm:$0xff] }
 0x354   : > { %v2331_v44 = vadd.f32 %v2330_v61, %v2218_v14  ;;  %2264 = vmatmul.f32.gmra.mxu1 %v1904_v12  ;;  %2504 = vst.msk [vmem:[#allocation4 + $0xd8] sm:$0xff] %vm223_vm1, %v6473_v40  ;;  %v1923_v12 = vld [vmem:[#allocation4 + $0x2f8] sm:$0xff] }
 0x355   : > { %4765 = vmatmul.msk.f32.gmra.mxu3 %vm223_vm1, %v1920_v17 }
 0x356   : > { %v2408_v5 = vmax.f32 %v2331_v44, 0.0 }
 0x357   : > { %v6489_v2 = vld [vmem:[#allocation2 + $0x78] sm:$0xff] }
 0x358   : > { %v2921_v9 = vld [vmem:[#allocation2 + $0x79] sm:$0xff]  ;;  %2440 = vst.msk [vmem:[#allocation2 + $0x81] sm:$0xff] %vm223_vm1, %v2408_v5  ;;  %2607 = vrot.lane.b32.xlu2 %v6489_v2, %s4948_s10 }
 0x359   : > { %v6496_v61 = vld [vmem:[#allocation3 + $0x48] sm:$0xff]  ;;  %2957 = vst.msk [vmem:[#allocation3 + $0x50] sm:$0xff] %vm223_vm1, %v2921_v9  ;;  %v2220_v31 = vpop.f32.mrf.mxu1  ;;  %v3891_v24 = vld [vmem:[#allocation3 + $0x40] sm:$0xff]  ;;  %v2116_v9 = vpop.f32.mrf.mxu0 }
 0x35a   : > { %v3962_v25 = vld [vmem:[#allocation4 + $0x58] sm:$0xff]  ;;  %v2221_v34 = vadd.f32 %v2220_v31, %v2108_v15  ;;  %3923 = vst.msk [vmem:[#allocation4 + $0x70] sm:$0xff] %vm223_vm1, %v3891_v24  ;;  %v1913_v31 = vld [vmem:[#allocation4 + $0x2a8] sm:$0xff]  ;;  %v2342_v24 = vpop.f32.mrf.mxu2 }
 0x35b   : > { %4770 = vmatmul.msk.f32.gmra.mxu0 %vm223_vm1, %v3962_v25  ;;  %3476 = vst.msk [vmem:[#allocation3 + $0x48] sm:$0xff] %vm223_vm1, %v3440_v37 }
 0x35c   : > { %v2334_v47 = vadd.f32 %v2333_v10, %v2221_v34  ;;  %2267 = vmatmul.f32.gmra.mxu1 %v1907_v26  ;;  %2505 = vst.msk [vmem:[#allocation4 + $0xf0] sm:$0xff] %vm223_vm1, %v6489_v2 }
 0x35d   : > { %4766 = vmatmul.msk.f32.gmra.mxu3 %vm223_vm1, %v1923_v12 }
 0x35e   : > { %v2409_v20 = vmax.f32 %v2334_v47, 0.0 }
 0x35f   : > { %v6506_v52 = vld [vmem:[#allocation2 + $0x80] sm:$0xff] }
 0x360   : > { %v2922_v58 = vld [vmem:[#allocation2 + $0x81] sm:$0xff]  ;;  %2441 = vst.msk [vmem:[#allocation2 + $0x91] sm:$0xff] %vm223_vm1, %v2409_v20  ;;  %2609 = vrot.lane.b32.xlu0 %v6506_v52, %s4948_s10 }
 0x361   : > { %v3441_v46 = vld [vmem:[#allocation2 + $0x7a] sm:$0xff]  ;;  %2958 = vst.msk [vmem:[#allocation3 + $0x58] sm:$0xff] %vm223_vm1, %v2922_v58  ;;  %v2223_v63 = vpop.f32.mrf.mxu1  ;;  %v3442_v17 = vld [vmem:[#allocation2 + $0x82] sm:$0xff] }
 0x362   : > { %v6512_v10 = vld [vmem:[#allocation3 + $0x50] sm:$0xff]  ;;  %v2224_v38 = vadd.f32 %v2223_v63, %v2111_v22  ;;  %v3892_v14 = vld [vmem:[#allocation3 + $0x48] sm:$0xff]  ;;  %2506 = vst.msk [vmem:[#allocation4 + $0x108] sm:$0xff] %vm223_vm1, %v6506_v52  ;;  %v1916_v63 = vld [vmem:[#allocation4 + $0x2c0] sm:$0xff] }
 0x363   : > { %v3965_v28 = vld [vmem:[#allocation4 + $0x70] sm:$0xff]  ;;  %3477 = vst.msk [vmem:[#allocation3 + $0x50] sm:$0xff] %vm223_vm1, %v3441_v46  ;;  %v2117_v46 = vadd.f32 %v6330_v39, %v2116_v9 }
 0x364   : > { %4771 = vmatmul.msk.f32.gmra.mxu0 %vm223_vm1, %v3965_v28  ;;  %3924 = vst.msk [vmem:[#allocation4 + $0x88] sm:$0xff] %vm223_vm1, %v3892_v14  ;;  %v2337_v16 = vadd.f32 %v2336_v59, %v2224_v38  ;;  %2270 = vmatmul.f32.gmra.mxu1 %v1910_v49  ;;  %v2119_v38 = vpop.f32.mrf.mxu0  ;;  %v2345_v14 = vpop.f32.mrf.mxu2 }
 0x366   : > { %v2410_v56 = vmax.f32 %v2337_v16, 0.0 }
 0x367   : > { %v6521_v44 = vld [vmem:[#allocation2 + $0x90] sm:$0xff] }
 0x368   : > { %v2923_v5 = vld [vmem:[#allocation2 + $0x91] sm:$0xff]  ;;  %2442 = vst.msk [vmem:[#allocation2 + $0x99] sm:$0xff] %vm223_vm1, %v2410_v56  ;;  %2611 = vrot.lane.b32.xlu1 %v6521_v44, %s4948_s10  ;;  %v6527_v15 = vld [vmem:[#allocation3 + $0x58] sm:$0xff] }
 0x369   : > { %2959 = vst.msk [vmem:[#allocation3 + $0x60] sm:$0xff] %vm223_vm1, %v2923_v5  ;;  %v2226_v59 = vpop.f32.mrf.mxu1  ;;  %v2464_v56 = vld [vmem:[#allocation2 + $0x8] sm:$0xff] }
 0x36a   : > { %v3893_v26 = vld [vmem:[#allocation3 + $0x50] sm:$0xff]  ;;  %v2227_v25 = vadd.f32 %v2226_v59, %v2114_v6  ;;  %3478 = vst.msk [vmem:[#allocation3 + $0x58] sm:$0xff] %vm223_vm1, %v3442_v17  ;;  %v2120_v59 = vadd.f32 %v6330_v39, %v2119_v38 }
 0x36b   : > { %v3968_v37 = vld [vmem:[#allocation4 + $0x88] sm:$0xff]  ;;  %3925 = vst.msk [vmem:[#allocation4 + $0xa0] sm:$0xff] %vm223_vm1, %v3893_v26 }
 0x36c   : > { %4772 = vmatmul.msk.f32.gmra.mxu0 %vm223_vm1, %v3968_v37  ;;  %v2340_v34 = vadd.f32 %v2339_v0, %v2227_v25  ;;  %2273 = vmatmul.f32.gmra.mxu1 %v1913_v31  ;;  %2507 = vst.msk [vmem:[#allocation4 + $0x120] sm:$0xff] %vm223_vm1, %v6521_v44 }
 0x36d   : > { %2496 = vst.msk [vmem:[#allocation4 + $0x18] sm:$0xff] %vm223_vm1, %v2464_v56 }
 0x36e   : > { %v2411_v47 = vmax.f32 %v2340_v34, 0.0 }
 0x36f   : > { %v6536_v43 = vld [vmem:[#allocation2 + $0x98] sm:$0xff] }
 0x370   : > { %v2924_v20 = vld [vmem:[#allocation2 + $0x99] sm:$0xff]  ;;  %2443 = vst.msk [vmem:[#allocation2 + $0xa9] sm:$0xff] %vm223_vm1, %v2411_v47  ;;  %2613 = vrot.lane.b32.xlu2 %v6536_v43, %s4948_s10  ;;  %v6542_v0 = vld [vmem:[#allocation3 + $0x60] sm:$0xff]  ;;  %v2122_v47 = vpop.f32.mrf.mxu0 }
 0x371   : > { %v3443_v58 = vld [vmem:[#allocation2 + $0x92] sm:$0xff]  ;;  %2960 = vst.msk [vmem:[#allocation3 + $0x68] sm:$0xff] %vm223_vm1, %v2924_v20  ;;  %v2229_v28 = vpop.f32.mrf.mxu1  ;;  %v3894_v12 = vld [vmem:[#allocation3 + $0x58] sm:$0xff]  ;;  %v3444_v37 = vld [vmem:[#allocation2 + $0x9a] sm:$0xff]  ;;  %v2348_v20 = vpop.f32.mrf.mxu2 }
 0x372   : > { %v3971_v22 = vld [vmem:[#allocation4 + $0xa0] sm:$0xff]  ;;  %v2230_v49 = vadd.f32 %v2229_v28, %v2117_v46  ;;  %3479 = vst.msk [vmem:[#allocation3 + $0x60] sm:$0xff] %vm223_vm1, %v3443_v58 }
 0x373   : > { %3926 = vst.msk [vmem:[#allocation4 + $0xb8] sm:$0xff] %vm223_vm1, %v3894_v12 }
 0x374   : > { %4773 = vmatmul.msk.f32.gmra.mxu0 %vm223_vm1, %v3971_v22  ;;  %v2343_v16 = vadd.f32 %v2342_v24, %v2230_v49  ;;  %2276 = vmatmul.f32.gmra.mxu1 %v1916_v63  ;;  %2508 = vst.msk [vmem:[#allocation4 + $0x138] sm:$0xff] %vm223_vm1, %v6536_v43  ;;  %v1919_v24 = vld [vmem:[#allocation4 + $0x2d8] sm:$0xff]  ;;  %v6567_v63 = vpop.f32.mrf.mxu3  ;;  %v2123_v49 = vadd.f32 %v6330_v39, %v2122_v47 }
 0x376   : > { %v2412_v5 = vmax.f32 %v2343_v16, 0.0  ;;  %v1922_v16 = vld [vmem:[#allocation4 + $0x2f0] sm:$0xff] }
 0x377   : > { %v6551_v6 = vld [vmem:[#allocation2 + $0xa8] sm:$0xff] }
 0x378   : > { %v2925_v9 = vld [vmem:[#allocation2 + $0xa9] sm:$0xff]  ;;  %2444 = vst.msk [vmem:[#allocation2 + $0xb1] sm:$0xff] %vm223_vm1, %v2412_v5  ;;  %2615 = vrot.lane.b32.xlu0 %v6551_v6, %s4948_s10  ;;  %v6557_v31 = vld [vmem:[#allocation3 + $0x68] sm:$0xff] }
 0x379   : > { %2961 = vst.msk [vmem:[#allocation3 + $0x70] sm:$0xff] %vm223_vm1, %v2925_v9  ;;  %v2232_v26 = vpop.f32.mrf.mxu1  ;;  %v3895_v17 = vld [vmem:[#allocation3 + $0x60] sm:$0xff] }
 0x37a   : > { %v3974_v25 = vld [vmem:[#allocation4 + $0xb8] sm:$0xff]  ;;  %v2233_v34 = vadd.f32 %v2232_v26, %v2120_v59  ;;  %3927 = vst.msk [vmem:[#allocation4 + $0xd0] sm:$0xff] %vm223_vm1, %v3895_v17 }
 0x37b   : > { %3480 = vst.msk [vmem:[#allocation3 + $0x68] sm:$0xff] %vm223_vm1, %v3444_v37  ;;  %v2351_v37 = vpop.f32.mrf.mxu2 }
 0x37c   : > { %4774 = vmatmul.msk.f32.gmra.mxu0 %vm223_vm1, %v3974_v25  ;;  %v2346_v33 = vadd.f32 %v2345_v14, %v2233_v34  ;;  %2279 = vmatmul.f32.gmra.mxu1 %v1919_v24  ;;  %2509 = vst.msk [vmem:[#allocation4 + $0x150] sm:$0xff] %vm223_vm1, %v6551_v6  ;;  %v2126_v25 = vadd.f32 %v6330_v39, %v6238_v1 }
 0x37e   : > { %v2413_v58 = vmax.f32 %v2346_v33, 0.0 }
 0x37f   : > { %v6565_v46 = vld [vmem:[#allocation2 + $0xb0] sm:$0xff] }
 0x380   : > { %v2926_v22 = vld [vmem:[#allocation2 + $0xb1] sm:$0xff]  ;;  %2445 = vst.msk [vmem:[#allocation2 + $0xc1] sm:$0xff] %vm223_vm1, %v2413_v58  ;;  %2617 = vrot.lane.b32.xlu1 %v6565_v46, %s4948_s10  ;;  %v6573_v12 = vld [vmem:[#allocation3 + $0x70] sm:$0xff] }
 0x381   : > { %v3445_v28 = vld [vmem:[#allocation2 + $0xaa] sm:$0xff]  ;;  %2962 = vst.msk [vmem:[#allocation3 + $0x78] sm:$0xff] %vm223_vm1, %v2926_v22  ;;  %v3977_v38 = vld [vmem:[#allocation4 + $0xd0] sm:$0xff]  ;;  %v2235_v14 = vpop.f32.mrf.mxu1 }
 0x382   : > { %v2236_v56 = vadd.f32 %v2235_v14, %v2123_v49  ;;  %v2596_v5 = vpop.permute.xlu2 %2595  ;;  %v3896_v9 = vld [vmem:[#allocation3 + $0x68] sm:$0xff]  ;;  %3481 = vst.msk [vmem:[#allocation3 + $0x70] sm:$0xff] %vm223_vm1, %v3445_v28 }
 0x383   : > { %2689 = vst.msk [vmem:[#allocation4 + $0x30] sm:$0xff] %vm558_vm2, %v2596_v5  ;;  %v3446_v28 = vld [vmem:[#allocation2 + $0xb2] sm:$0xff]  ;;  %v2129_v5 = vadd.f32 %v6330_v39, %v6242_v35 }
 0x384   : > { %4775 = vmatmul.msk.f32.gmra.mxu0 %vm223_vm1, %v3977_v38  ;;  %v2349_v59 = vadd.f32 %v2348_v20, %v2236_v56  ;;  %2282 = vmatmul.f32.gmra.mxu1 %v1922_v16  ;;  %3928 = vst.msk [vmem:[#allocation4 + $0xe8] sm:$0xff] %vm223_vm1, %v3896_v9  ;;  %v6592_v20 = vpop.f32.mrf.mxu3 }
 0x385   : > { %2510 = vst.msk [vmem:[#allocation4 + $0x168] sm:$0xff] %vm223_vm1, %v6565_v46 }
 0x386   : > { %v2414_v26 = vmax.f32 %v2349_v59, 0.0 }
 0x387   : > { %v6582_v24 = vld [vmem:[#allocation2 + $0xc0] sm:$0xff] }
 0x388   : > { %v2927_v17 = vld [vmem:[#allocation2 + $0xc1] sm:$0xff]  ;;  %2446 = vst.msk [vmem:[#allocation2 + $0xc9] sm:$0xff] %vm223_vm1, %v2414_v26  ;;  %2619 = vrot.lane.b32.xlu2 %v6582_v24, %s4948_s10 }
 0x389   : > { %2963 = vst.msk [vmem:[#allocation3 + $0x80] sm:$0xff] %vm223_vm1, %v2927_v17  ;;  %v2238_v34 = vpop.f32.mrf.mxu1  ;;  %v3897_v33 = vld [vmem:[#allocation3 + $0x70] sm:$0xff]  ;;  %v6590_v47 = vld [vmem:[#allocation3 + $0x78] sm:$0xff]  ;;  %v2354_v17 = vpop.f32.mrf.mxu2 }
 0x38a   : > { %v2239_v58 = vadd.f32 %v2238_v34, %v2126_v25  ;;  %v2592_v22 = vpop.permute.xlu0 %2591  ;;  %3929 = vst.msk [vmem:[#allocation4 + $0x100] sm:$0xff] %vm223_vm1, %v3897_v33 }
 0x38b   : > { %v3980_v49 = vld [vmem:[#allocation4 + $0xe8] sm:$0xff]  ;;  %2687 = vst.msk [vmem:[#allocation4] sm:$0xff] %vm558_vm2, %v2592_v22 }
 0x38c   : > { %4776 = vmatmul.msk.f32.gmra.mxu0 %vm223_vm1, %v3980_v49  ;;  %v2352_v1 = vadd.f32 %v2351_v37, %v2239_v58  ;;  %3482 = vst.msk [vmem:[#allocation3 + $0x78] sm:$0xff] %vm223_vm1, %v3446_v28  ;;  %v6609_v33 = vpop.f32.mrf.mxu3  ;;  %v2132_v49 = vadd.f32 %v6330_v39, %v6246_v7 }
 0x38d   : > { %2511 = vst.msk [vmem:[#allocation4 + $0x180] sm:$0xff] %vm223_vm1, %v6582_v24 }
 0x38e   : > { %v2415_v38 = vmax.f32 %v2352_v1, 0.0 }
 0x38f   : > { %v2542_v14 = vld [vmem:[#allocation2 + $0xc8] sm:$0xff] }
 0x390   : > { %v2928_v16 = vld [vmem:[#allocation2 + $0xc9] sm:$0xff]  ;;  %2447 = vst.msk [vmem:[#allocation2 + $0xd9] sm:$0xff] %vm223_vm1, %v2415_v38  ;;  %2621 = vrot.lane.b32.xlu0 %v2542_v14, %s4948_s10 }
 0x391   : > { %v3447_v56 = vld [vmem:[#allocation2 + $0xc2] sm:$0xff]  ;;  %v6604_v9 = vld [vmem:[#allocation3 + $0x80] sm:$0xff]  ;;  %2964 = vst.msk [vmem:[#allocation3 + $0x88] sm:$0xff] %vm223_vm1, %v2928_v16  ;;  %v2241_v26 = vpop.f32.mrf.mxu1 }
 0x392   : > { %v3983_v59 = vld [vmem:[#allocation4 + $0x100] sm:$0xff]  ;;  %v2242_v37 = vadd.f32 %v2241_v26, %v2129_v5  ;;  %v2594_v25 = vpop.permute.xlu1 %2593  ;;  %3483 = vst.msk [vmem:[#allocation3 + $0x80] sm:$0xff] %vm223_vm1, %v3447_v56 }
 0x393   : > { %2688 = vst.msk [vmem:[#allocation4 + $0x18] sm:$0xff] %vm558_vm2, %v2594_v25  ;;  %v3898_v34 = vld [vmem:[#allocation3 + $0x78] sm:$0xff] }
 0x394   : > { %4777 = vmatmul.msk.f32.gmra.mxu0 %vm223_vm1, %v3983_v59  ;;  %v2355_v35 = vadd.f32 %v2354_v17, %v2242_v37  ;;  %3930 = vst.msk [vmem:[#allocation4 + $0x118] sm:$0xff] %vm223_vm1, %v3898_v34  ;;  %v6626_v26 = vpop.f32.mrf.mxu3 }
 0x395   : > { %2512 = vst.msk [vmem:[#allocation4 + $0x198] sm:$0xff] %vm223_vm1, %v2542_v14  ;;  %v3448_v14 = vld [vmem:[#allocation2 + $0xca] sm:$0xff] }
 0x396   : > { %v2416_v58 = vmax.f32 %v2355_v35, 0.0  ;;  %v2135_v35 = vadd.f32 %v6330_v39, %v6252_v45 }
 0x397   : > { %v2543_v22 = vld [vmem:[#allocation2 + $0xd8] sm:$0xff] }
 0x398   : > { %v2929_v28 = vld [vmem:[#allocation2 + $0xd9] sm:$0xff]  ;;  %2448 = vst.msk [vmem:[#allocation2 + $0xe1] sm:$0xff] %vm223_vm1, %v2416_v58  ;;  %2623 = vrot.lane.b32.xlu1 %v2543_v22, %s4948_s10 }
 0x399   : > { %2965 = vst.msk [vmem:[#allocation3 + $0x90] sm:$0xff] %vm223_vm1, %v2929_v28  ;;  %v2244_v1 = vpop.f32.mrf.mxu1  ;;  %v3899_v38 = vld [vmem:[#allocation3 + $0x80] sm:$0xff]  ;;  %v6619_v16 = vld [vmem:[#allocation3 + $0x88] sm:$0xff] }
 0x39a   : > { %v2245_v56 = vadd.f32 %v2244_v1, %v2132_v49  ;;  %v2602_v5 = vpop.permute.xlu2 %2601  ;;  %3931 = vst.msk [vmem:[#allocation4 + $0x130] sm:$0xff] %vm223_vm1, %v3899_v38 }
 0x39b   : > { %v3986_v59 = vld [vmem:[#allocation4 + $0x118] sm:$0xff]  ;;  %2692 = vst.msk [vmem:[#allocation4 + $0x78] sm:$0xff] %vm558_vm2, %v2602_v5 }
 0x39c   : > { %4778 = vmatmul.msk.f32.gmra.mxu0 %vm223_vm1, %v3986_v59  ;;  %v2358_v7 = vadd.f32 %v6567_v63, %v2245_v56  ;;  %3484 = vst.msk [vmem:[#allocation3 + $0x88] sm:$0xff] %vm223_vm1, %v3448_v14  ;;  %v2369_v5 = vpop.f32.mrf.mxu3  ;;  %v2138_v14 = vadd.f32 %v6330_v39, %v6258_v48 }
 0x39d   : > { %2513 = vst.msk [vmem:[#allocation4 + $0x1b0] sm:$0xff] %vm223_vm1, %v2543_v22 }
 0x39e   : > { %v2417_v17 = vmax.f32 %v2358_v7, 0.0 }
 0x39f   : > { %v2544_v37 = vld [vmem:[#allocation2 + $0xe0] sm:$0xff] }
 0x3a0   : > { %v2930_v25 = vld [vmem:[#allocation2 + $0xe1] sm:$0xff]  ;;  %2449 = vst.msk [vmem:[#allocation2 + $0xf1] sm:$0xff] %vm223_vm1, %v2417_v17  ;;  %2787 = vrot.lane.b32.xlu1 %v6420_v21, %s4949_s11  ;;  %2625 = vrot.lane.b32.xlu2 %v2544_v37, %s4948_s10 }
 0x3a1   : > { %v3449_v34 = vld [vmem:[#allocation2 + $0xda] sm:$0xff]  ;;  %2966 = vst.msk [vmem:[#allocation3 + $0x98] sm:$0xff] %vm223_vm1, %v2930_v25  ;;  %v2247_v22 = vpop.f32.mrf.mxu1  ;;  %v3450_v25 = vld [vmem:[#allocation2 + $0xe2] sm:$0xff] }
 0x3a2   : > { %v6635_v63 = vld [vmem:[#allocation3 + $0x90] sm:$0xff]  ;;  %v2248_v28 = vadd.f32 %v2247_v22, %v2135_v35  ;;  %v2598_v49 = vpop.permute.xlu0 %2597  ;;  %2514 = vst.msk [vmem:[#allocation4 + $0x1c8] sm:$0xff] %vm223_vm1, %v2544_v37 }
 0x3a3   : > { %v3989_v58 = vld [vmem:[#allocation4 + $0x130] sm:$0xff]  ;;  %3485 = vst.msk [vmem:[#allocation3 + $0x90] sm:$0xff] %vm223_vm1, %v3449_v34  ;;  %v3900_v45 = vld [vmem:[#allocation3 + $0x88] sm:$0xff] }
 0x3a4   : > { %2690 = vst.msk [vmem:[#allocation4 + $0x48] sm:$0xff] %vm558_vm2, %v2598_v49  ;;  %4779 = vmatmul.msk.f32.gmra.mxu0 %vm223_vm1, %v3989_v58  ;;  %v2361_v1 = vadd.f32 %v6592_v20, %v2248_v28  ;;  %v2141_v28 = vadd.f32 %v6330_v39, %v6264_v60 }
 0x3a5   : > { %3932 = vst.msk [vmem:[#allocation4 + $0x148] sm:$0xff] %vm223_vm1, %v3900_v45 }
 0x3a6   : > { %v2418_v21 = vmax.f32 %v2361_v1, 0.0  ;;  %v2372_v1 = vpop.f32.mrf.mxu3 }
 0x3a7   : > { %v2545_v38 = vld [vmem:[#allocation2 + $0xf0] sm:$0xff] }
 0x3a8   : > { %v2931_v56 = vld [vmem:[#allocation2 + $0xf1] sm:$0xff]  ;;  %2450 = vst.msk [vmem:[#allocation2 + $0xf9] sm:$0xff] %vm223_vm1, %v2418_v21  ;;  %2627 = vrot.lane.b32.xlu0 %v2545_v38, %s4948_s10  ;;  %2783 = vrot.lane.b32.xlu2 %v6385_v18, %s4949_s11  ;;  %v6651_v7 = vld [vmem:[#allocation3 + $0x98] sm:$0xff] }
 0x3a9   : > { %2967 = vst.msk [vmem:[#allocation3 + $0xa0] sm:$0xff] %vm223_vm1, %v2931_v56  ;;  %v2250_v20 = vpop.f32.mrf.mxu1 }
 0x3aa   : > { %v3901_v59 = vld [vmem:[#allocation3 + $0x90] sm:$0xff]  ;;  %v2251_v17 = vadd.f32 %v2250_v20, %v2138_v14  ;;  %v2600_v37 = vpop.permute.xlu1 %2599  ;;  %3486 = vst.msk [vmem:[#allocation3 + $0x98] sm:$0xff] %vm223_vm1, %v3450_v25  ;;  %v2144_v20 = vadd.f32 %v6330_v39, %v6270_v3 }
 0x3ab   : > { %3933 = vst.msk [vmem:[#allocation4 + $0x160] sm:$0xff] %vm223_vm1, %v3901_v59 }
 0x3ac   : > { %v3992_v34 = vld [vmem:[#allocation4 + $0x148] sm:$0xff]  ;;  %2691 = vst.msk [vmem:[#allocation4 + $0x60] sm:$0xff] %vm558_vm2, %v2600_v37  ;;  %v2364_v48 = vadd.f32 %v6609_v33, %v2251_v17 }
 0x3ad   : > { %4780 = vmatmul.msk.f32.gmra.mxu0 %vm223_vm1, %v3992_v34  ;;  %2515 = vst.msk [vmem:[#allocation4 + $0x1e0] sm:$0xff] %vm223_vm1, %v2545_v38 }
 0x3ae   : > { %v2419_v18 = vmax.f32 %v2364_v48, 0.0 }
 0x3af   : > { %v2546_v35 = vld [vmem:[#allocation2 + $0xf8] sm:$0xff] }
 0x3b0   : > { %v2932_v58 = vld [vmem:[#allocation2 + $0xf9] sm:$0xff]  ;;  %2451 = vst.msk [vmem:[#allocation2 + $0x109] sm:$0xff] %vm223_vm1, %v2419_v18  ;;  %2629 = vrot.lane.b32.xlu1 %v2546_v35, %s4948_s10  ;;  %2785 = vrot.lane.b32.xlu0 %v6403_v30, %s4949_s11  ;;  %v6665_v49 = vld [vmem:[#allocation3 + $0xa0] sm:$0xff] }
 0x3b1   : > { %v3451_v22 = vld [vmem:[#allocation2 + $0xf2] sm:$0xff]  ;;  %2968 = vst.msk [vmem:[#allocation3 + $0xa8] sm:$0xff] %vm223_vm1, %v2932_v58  ;;  %2789 = vrot.lane.b32.xlu2 %v6439_v11, %s4949_s11  ;;  %v2253_v45 = vpop.f32.mrf.mxu1  ;;  %v3902_v60 = vld [vmem:[#allocation3 + $0x98] sm:$0xff]  ;;  %v3452_v3 = vld [vmem:[#allocation2 + $0xfa] sm:$0xff] }
 0x3b2   : > { %v3995_v33 = vld [vmem:[#allocation4 + $0x160] sm:$0xff]  ;;  %v2254_v21 = vadd.f32 %v2253_v45, %v2141_v28  ;;  %v2608_v38 = vpop.permute.xlu2 %2607  ;;  %3487 = vst.msk [vmem:[#allocation3 + $0xa0] sm:$0xff] %vm223_vm1, %v3451_v22  ;;  %v6695_v58 = vld [vmem:[%s7634_s2] ss:$0 sm:$0xff] }
 0x3b3   : > { %2695 = vst.msk [vmem:[#allocation4 + $0xc0] sm:$0xff] %vm558_vm2, %v2608_v38  ;;  %v2147_v22 = vadd.f32 %v6695_v58, %v6275_v4 }
 0x3b4   : > { %v2367_v30 = vadd.f32 %v6626_v26, %v2254_v21  ;;  %3934 = vst.msk [vmem:[#allocation4 + $0x178] sm:$0xff] %vm223_vm1, %v3902_v60 }
 0x3b5   : > { %4781 = vmatmul.msk.f32.gmra.mxu0 %vm223_vm1, %v3995_v33  ;;  %2516 = vst.msk [vmem:[#allocation4 + $0x1f8] sm:$0xff] %vm223_vm1, %v2546_v35 }
 0x3b6   : > { %v2420_v56 = vmax.f32 %v2367_v30, 0.0 }
 0x3b7   : > { %v2547_v14 = vld [vmem:[#allocation2 + $0x108] sm:$0xff] }
 0x3b8   : > { %v2933_v11 = vld [vmem:[#allocation2 + $0x109] sm:$0xff]  ;;  %2452 = vst.msk [vmem:[#allocation2 + $0x111] sm:$0xff] %vm223_vm1, %v2420_v56  ;;  %2793 = vrot.lane.b32.xlu1 %v6473_v40, %s4949_s11  ;;  %2791 = vrot.lane.b32.xlu0 %v6456_v41, %s4949_s11  ;;  %v6685_v17 = vld [vmem:[#allocation3 + $0xa8] sm:$0xff]  ;;  %v2375_v40 = vpop.f32.mrf.mxu3 }
 0x3b9   : > { %2969 = vst.msk [vmem:[#allocation3 + $0xb0] sm:$0xff] %vm223_vm1, %v2933_v11  ;;  %2631 = vrot.lane.b32.xlu2 %v2547_v14, %s4948_s10  ;;  %v2256_v26 = vpop.f32.mrf.mxu1  ;;  %v3903_v59 = vld [vmem:[#allocation3 + $0xa0] sm:$0xff] }
 0x3ba   : > { %v2257_v37 = vadd.f32 %v2256_v26, %v2144_v20  ;;  %v2604_v25 = vpop.permute.xlu0 %2603  ;;  %3935 = vst.msk [vmem:[#allocation4 + $0x190] sm:$0xff] %vm223_vm1, %v3903_v59  ;;  %v3432_v59 = vld [vmem:[#allocation2 + $0xa] sm:$0xff] }
 0x3bb   : > { %v3998_v39 = vld [vmem:[#allocation4 + $0x178] sm:$0xff]  ;;  %2693 = vst.msk [vmem:[#allocation4 + $0x90] sm:$0xff] %vm558_vm2, %v2604_v25 }
 0x3bc   : > { %v2370_v41 = vadd.f32 %v2369_v5, %v2257_v37  ;;  %3488 = vst.msk [vmem:[#allocation3 + $0xa8] sm:$0xff] %vm223_vm1, %v3452_v3 }
 0x3bd   : > { %4782 = vmatmul.msk.f32.gmra.mxu0 %vm223_vm1, %v3998_v39  ;;  %2517 = vst.msk [vmem:[#allocation4 + $0x210] sm:$0xff] %vm223_vm1, %v2547_v14 }
 0x3be   : > { %v2421_v34 = vmax.f32 %v2370_v41, 0.0 }
 0x3bf   : > { %v2548_v48 = vld [vmem:[#allocation2 + $0x110] sm:$0xff] }
 0x3c0   : > { %v2934_v18 = vld [vmem:[#allocation2 + $0x111] sm:$0xff]  ;;  %2453 = vst.msk [vmem:[#allocation2 + $0x121] sm:$0xff] %vm223_vm1, %v2421_v34  ;;  %2799 = vrot.lane.b32.xlu1 %v6521_v44, %s4949_s11  ;;  %2633 = vrot.lane.b32.xlu0 %v2548_v48, %s4948_s10  ;;  %v6703_v5 = vld [vmem:[#allocation3 + $0xb0] sm:$0xff]  ;;  %v2378_v38 = vpop.f32.mrf.mxu3 }
 0x3c1   : > { %v3453_v35 = vld [vmem:[#allocation2 + $0x10a] sm:$0xff]  ;;  %v4001_v28 = vld [vmem:[#allocation4 + $0x190] sm:$0xff]  ;;  %2970 = vst.msk [vmem:[#allocation3 + $0xb8] sm:$0xff] %vm223_vm1, %v2934_v18  ;;  %2795 = vrot.lane.b32.xlu2 %v6489_v2, %s4949_s11  ;;  %v2259_v33 = vpop.f32.mrf.mxu1  ;;  %v2150_v2 = vadd.f32 %v6695_v58, %v6280_v8  ;;  %v6725_v8 = vld [vmem:[#allocation3 + $0x8] sm:$0xff] }
 0x3c2   : > { %v2260_v45 = vadd.f32 %v2259_v33, %v2147_v22  ;;  %v2606_v21 = vpop.permute.xlu1 %2605  ;;  %3489 = vst.msk [vmem:[#allocation3 + $0xb0] sm:$0xff] %vm223_vm1, %v3453_v35  ;;  %v3454_v37 = vld [vmem:[#allocation2 + $0x112] sm:$0xff] }
 0x3c3   : > { %2694 = vst.msk [vmem:[#allocation4 + $0xa8] sm:$0xff] %vm558_vm2, %v2606_v21  ;;  %v3904_v4 = vld [vmem:[#allocation3 + $0xa8] sm:$0xff] }
 0x3c4   : > { %v2373_v44 = vadd.f32 %v2372_v1, %v2260_v45  ;;  %3936 = vst.msk [vmem:[#allocation4 + $0x1a8] sm:$0xff] %vm223_vm1, %v3904_v4  ;;  %v2156_v4 = vadd.f32 %v6695_v58, %v6290_v19 }
 0x3c5   : > { %4783 = vmatmul.msk.f32.gmra.mxu0 %vm223_vm1, %v4001_v28  ;;  %2518 = vst.msk [vmem:[#allocation4 + $0x228] sm:$0xff] %vm223_vm1, %v2548_v48  ;;  %v2153_v48 = vadd.f32 %v6695_v58, %v6285_v42 }
 0x3c6   : > { %v2422_v60 = vmax.f32 %v2373_v44, 0.0  ;;  %3468 = vst.msk [vmem:[#allocation3 + $0x8] sm:$0xff] %vm223_vm1, %v3432_v59 }
 0x3c7   : > { %v2549_v30 = vld [vmem:[#allocation2 + $0x120] sm:$0xff] }
 0x3c8   : > { %v2935_v56 = vld [vmem:[#allocation2 + $0x121] sm:$0xff]  ;;  %2454 = vst.msk [vmem:[#allocation2 + $0x129] sm:$0xff] %vm223_vm1, %v2422_v60  ;;  %2635 = vrot.lane.b32.xlu1 %v2549_v30, %s4948_s10  ;;  %2797 = vrot.lane.b32.xlu0 %v6506_v52, %s4949_s11  ;;  %v2381_v34 = vpop.f32.mrf.mxu3 }
 0x3c9   : > { %2971 = vst.msk [vmem:[#allocation3 + $0xc0] sm:$0xff] %vm223_vm1, %v2935_v56  ;;  %2801 = vrot.lane.b32.xlu2 %v6536_v43, %s4949_s11  ;;  %v2262_v1 = vpop.f32.mrf.mxu1  ;;  %v3905_v14 = vld [vmem:[#allocation3 + $0xb0] sm:$0xff]  ;;  %v6722_v11 = vld [vmem:[#allocation3 + $0xb8] sm:$0xff] }
 0x3ca   : > { %v2263_v20 = vadd.f32 %v2262_v1, %v2150_v2  ;;  %v2614_v26 = vpop.permute.xlu2 %2613  ;;  %3937 = vst.msk [vmem:[#allocation4 + $0x1c0] sm:$0xff] %vm223_vm1, %v3905_v14 }
 0x3cb   : > { %v4004_v25 = vld [vmem:[#allocation4 + $0x1a8] sm:$0xff]  ;;  %2698 = vst.msk [vmem:[#allocation4 + $0x108] sm:$0xff] %vm558_vm2, %v2614_v26 }
 0x3cc   : > { %v2376_v52 = vadd.f32 %v2375_v40, %v2263_v20  ;;  %3490 = vst.msk [vmem:[#allocation3 + $0xb8] sm:$0xff] %vm223_vm1, %v3454_v37  ;;  %v2159_v37 = vadd.f32 %v6695_v58, %v6297_v29 }
 0x3cd   : > { %4784 = vmatmul.msk.f32.gmra.mxu0 %vm223_vm1, %v4004_v25  ;;  %2519 = vst.msk [vmem:[#allocation4 + $0x240] sm:$0xff] %vm223_vm1, %v2549_v30 }
 0x3ce   : > { %v2423_v43 = vmax.f32 %v2376_v52, 0.0 }
 0x3cf   : > { %v2550_v3 = vld [vmem:[#allocation2 + $0x128] sm:$0xff] }
 0x3d0   : > { %v2936_v39 = vld [vmem:[#allocation2 + $0x129] sm:$0xff]  ;;  %2455 = vst.msk [vmem:[#allocation2 + $0x139] sm:$0xff] %vm223_vm1, %v2423_v43  ;;  %2805 = vrot.lane.b32.xlu1 %v6565_v46, %s4949_s11  ;;  %2803 = vrot.lane.b32.xlu0 %v6551_v6, %s4949_s11  ;;  %v2384_v60 = vpop.f32.mrf.mxu3 }
 0x3d1   : > { %v3455_v41 = vld [vmem:[#allocation2 + $0x122] sm:$0xff]  ;;  %v6739_v40 = vld [vmem:[#allocation3 + $0xc0] sm:$0xff]  ;;  %2972 = vst.msk [vmem:[#allocation3 + $0xc8] sm:$0xff] %vm223_vm1, %v2936_v39  ;;  %2637 = vrot.lane.b32.xlu2 %v2550_v3, %s4948_s10  ;;  %v2265_v35 = vpop.f32.mrf.mxu1 }
 0x3d2   : > { %v4007_v18 = vld [vmem:[#allocation4 + $0x1c0] sm:$0xff]  ;;  %v2266_v22 = vadd.f32 %v2265_v35, %v2153_v48  ;;  %v2610_v28 = vpop.permute.xlu0 %2609  ;;  %3491 = vst.msk [vmem:[#allocation3 + $0xc0] sm:$0xff] %vm223_vm1, %v3455_v41  ;;  %v6779_v48 = vld [vmem:[#allocation3 + $0x10] sm:$0xff] }
 0x3d3   : > { %2696 = vst.msk [vmem:[#allocation4 + $0xd8] sm:$0xff] %vm558_vm2, %v2610_v28  ;;  %v3906_v42 = vld [vmem:[#allocation3 + $0xb8] sm:$0xff]  ;;  %v3503_v6 = vld [vmem:[#allocation3] sm:$0xff] }
 0x3d4   : > { %v2379_v46 = vadd.f32 %v2378_v38, %v2266_v22  ;;  %3938 = vst.msk [vmem:[#allocation4 + $0x1d8] sm:$0xff] %vm223_vm1, %v3906_v42  ;;  %v3456_v19 = vld [vmem:[#allocation2 + $0x12a] sm:$0xff]  ;;  %v2162_v22 = vadd.f32 %v6695_v58, %v6301_v55 }
 0x3d5   : > { %4785 = vmatmul.msk.f32.gmra.mxu0 %vm223_vm1, %v4007_v18  ;;  %2520 = vst.msk [vmem:[#allocation4 + $0x258] sm:$0xff] %vm223_vm1, %v2550_v3 }
 0x3d6   : > { %v2424_v33 = vmax.f32 %v2379_v46, 0.0 }
 0x3d7   : > { %v2551_v45 = vld [vmem:[#allocation2 + $0x138] sm:$0xff] }
 0x3d8   : > { %v2937_v21 = vld [vmem:[#allocation2 + $0x139] sm:$0xff]  ;;  %2456 = vst.msk [vmem:[#allocation2 + $0x141] sm:$0xff] %vm223_vm1, %v2424_v33  ;;  %3567 = vrot.lane.b32.xlu1 %v3503_v6, %s4949_s11  ;;  %2639 = vrot.lane.b32.xlu0 %v2551_v45, %s4948_s10  ;;  %v2387_v41 = vpop.f32.mrf.mxu3 }
 0x3d9   : > { %2973 = vst.msk [vmem:[#allocation3 + $0xd0] sm:$0xff] %vm223_vm1, %v2937_v21  ;;  %2807 = vrot.lane.b32.xlu2 %v6582_v24, %s4949_s11  ;;  %v2268_v44 = vpop.f32.mrf.mxu1  ;;  %v3907_v38 = vld [vmem:[#allocation3 + $0xc0] sm:$0xff]  ;;  %v6756_v30 = vld [vmem:[#allocation3 + $0xc8] sm:$0xff] }
 0x3da   : > { %v2269_v56 = vadd.f32 %v2268_v44, %v2156_v4  ;;  %v2612_v2 = vpop.permute.xlu1 %2611  ;;  %3939 = vst.msk [vmem:[#allocation4 + $0x1f0] sm:$0xff] %vm223_vm1, %v3907_v38  ;;  %v6797_v44 = vld [vmem:[#allocation3 + $0x18] sm:$0xff]  ;;  %v3504_v38 = vld [vmem:[#allocation3 + $0x8] sm:$0xff] }
 0x3db   : > { %v4010_v1 = vld [vmem:[#allocation4 + $0x1d8] sm:$0xff]  ;;  %2697 = vst.msk [vmem:[#allocation4 + $0xf0] sm:$0xff] %vm558_vm2, %v2612_v2 }
 0x3dc   : > { %v2382_v14 = vadd.f32 %v2381_v34, %v2269_v56  ;;  %3492 = vst.msk [vmem:[#allocation3 + $0xc8] sm:$0xff] %vm223_vm1, %v3456_v19  ;;  %v2165_v19 = vadd.f32 %v6695_v58, %v6306_v32 }
 0x3dd   : > { %4786 = vmatmul.msk.f32.gmra.mxu0 %vm223_vm1, %v4010_v1  ;;  %2521 = vst.msk [vmem:[#allocation4 + $0x270] sm:$0xff] %vm223_vm1, %v2551_v45 }
 0x3de   : > { %v2425_v24 = vmax.f32 %v2382_v14, 0.0 }
 0x3df   : > { %v2552_v20 = vld [vmem:[#allocation2 + $0x140] sm:$0xff] }
 0x3e0   : > { %v2938_v26 = vld [vmem:[#allocation2 + $0x141] sm:$0xff]  ;;  %2457 = vst.msk [vmem:[#allocation2 + $0x151] sm:$0xff] %vm223_vm1, %v2425_v24  ;;  %2641 = vrot.lane.b32.xlu1 %v2552_v20, %s4948_s10  ;;  %3047 = vrot.lane.b32.xlu0 %v5806_v13, %s4950_s12  ;;  %v2390_v21 = vpop.f32.mrf.mxu3 }
 0x3e1   : > { %v3457_v59 = vld [vmem:[#allocation2 + $0x13a] sm:$0xff]  ;;  %2974 = vst.msk [vmem:[#allocation3 + $0xd8] sm:$0xff] %vm223_vm1, %v2938_v26  ;;  %3303 = vrot.lane.b32.xlu2 %v6411_v57, %s4948_s10  ;;  %v2271_v43 = vpop.f32.mrf.mxu1  ;;  %v3458_v55 = vld [vmem:[#allocation2 + $0x142] sm:$0xff] }
 0x3e2   : > { %v6769_v25 = vld [vmem:[#allocation3 + $0xd0] sm:$0xff]  ;;  %v2272_v3 = vadd.f32 %v2271_v43, %v2159_v37  ;;  %v2620_v39 = vpop.permute.xlu2 %2619  ;;  %2522 = vst.msk [vmem:[#allocation4 + $0x288] sm:$0xff] %vm223_vm1, %v2552_v20 }
 0x3e3   : > { %v4013_v52 = vld [vmem:[#allocation4 + $0x1f0] sm:$0xff]  ;;  %3493 = vst.msk [vmem:[#allocation3 + $0xd0] sm:$0xff] %vm223_vm1, %v3457_v59  ;;  %v3908_v29 = vld [vmem:[#allocation3 + $0xc8] sm:$0xff] }
 0x3e4   : > { %2701 = vst.msk [vmem:[#allocation4 + $0x150] sm:$0xff] %vm558_vm2, %v2620_v39  ;;  %v2385_v13 = vadd.f32 %v2384_v60, %v2272_v3  ;;  %v2168_v39 = vadd.f32 %v6695_v58, %v6311_v36 }
 0x3e5   : > { %4787 = vmatmul.msk.f32.gmra.mxu0 %vm223_vm1, %v4013_v52  ;;  %3940 = vst.msk [vmem:[#allocation4 + $0x208] sm:$0xff] %vm223_vm1, %v3908_v29 }
 0x3e6   : > { %v2426_v34 = vmax.f32 %v2385_v13, 0.0 }
 0x3e7   : > { %v2553_v18 = vld [vmem:[#allocation2 + $0x150] sm:$0xff] }
 0x3e8   : > { %v2939_v35 = vld [vmem:[#allocation2 + $0x151] sm:$0xff]  ;;  %2458 = vst.msk [vmem:[#allocation2 + $0x159] sm:$0xff] %vm223_vm1, %v2426_v34  ;;  %3049 = vrot.lane.b32.xlu1 %v6725_v8, %s4950_s12  ;;  %3759 = vrot.lane.b32.xlu0 %v6779_v48, %s4950_s12  ;;  %v6790_v46 = vld [vmem:[#allocation3 + $0xd8] sm:$0xff]  ;;  %v2393_v3 = vpop.f32.mrf.mxu3 }
 0x3e9   : > { %2975 = vst.msk [vmem:[#allocation3 + $0xe0] sm:$0xff] %vm223_vm1, %v2939_v35  ;;  %2643 = vrot.lane.b32.xlu2 %v2553_v18, %s4948_s10  ;;  %v2274_v28 = vpop.f32.mrf.mxu1 }
 0x3ea   : > { %v3909_v42 = vld [vmem:[#allocation3 + $0xd0] sm:$0xff]  ;;  %v2275_v6 = vadd.f32 %v2274_v28, %v2162_v22  ;;  %v2616_v33 = vpop.permute.xlu0 %2615  ;;  %3494 = vst.msk [vmem:[#allocation3 + $0xd8] sm:$0xff] %vm223_vm1, %v3458_v55  ;;  %v6827_v22 = vpop.f32.mrf.mxu0 }
 0x3eb   : > { %3941 = vst.msk [vmem:[#allocation4 + $0x220] sm:$0xff] %vm223_vm1, %v3909_v42 }
 0x3ec   : > { %v4016_v45 = vld [vmem:[#allocation4 + $0x208] sm:$0xff]  ;;  %2699 = vst.msk [vmem:[#allocation4 + $0x120] sm:$0xff] %vm558_vm2, %v2616_v33  ;;  %v2388_v8 = vadd.f32 %v2387_v41, %v2275_v6 }
 0x3ed   : > { %4788 = vmatmul.msk.f32.gmra.mxu0 %vm223_vm1, %v4016_v45  ;;  %2523 = vst.msk [vmem:[#allocation4 + $0x2a0] sm:$0xff] %vm223_vm1, %v2553_v18  ;;  %v2171_v45 = vadd.f32 %v6695_v58, %v6319_v53 }
 0x3ee   : > { %v2427_v4 = vmax.f32 %v2388_v8, 0.0 }
 0x3ef   : > { %v2554_v60 = vld [vmem:[#allocation2 + $0x158] sm:$0xff] }
 0x3f0   : > { %v2940_v56 = vld [vmem:[#allocation2 + $0x159] sm:$0xff]  ;;  %2459 = vst.msk [vmem:[#allocation2 + $0x169] sm:$0xff] %vm223_vm1, %v2427_v4  ;;  %3761 = vrot.lane.b32.xlu1 %v6797_v44, %s4950_s12  ;;  %2645 = vrot.lane.b32.xlu0 %v2554_v60, %s4948_s10  ;;  %v6805_v1 = vld [vmem:[#allocation3 + $0xe0] sm:$0xff] }
 0x3f1   : > { %v3459_v2 = vld [vmem:[#allocation2 + $0x152] sm:$0xff]  ;;  %2976 = vst.msk [vmem:[#allocation3 + $0xe8] sm:$0xff] %vm223_vm1, %v2940_v56  ;;  %3569 = vrot.lane.b32.xlu2 %v3504_v38, %s4949_s11  ;;  %v2277_v24 = vpop.f32.mrf.mxu1  ;;  %v3910_v32 = vld [vmem:[#allocation3 + $0xd8] sm:$0xff]  ;;  %v3460_v36 = vld [vmem:[#allocation2 + $0x15a] sm:$0xff]  ;;  %v2396_v38 = vpop.f32.mrf.mxu3 }
 0x3f2   : > { %v4019_v14 = vld [vmem:[#allocation4 + $0x220] sm:$0xff]  ;;  %v2278_v20 = vadd.f32 %v2277_v24, %v2165_v19  ;;  %v2618_v26 = vpop.permute.xlu1 %2617  ;;  %3495 = vst.msk [vmem:[#allocation3 + $0xe0] sm:$0xff] %vm223_vm1, %v3459_v2  ;;  %v6849_v2 = vpop.f32.mrf.mxu0 }
 0x3f3   : > { %2700 = vst.msk [vmem:[#allocation4 + $0x138] sm:$0xff] %vm558_vm2, %v2618_v26 }
 0x3f4   : > { %v2391_v59 = vadd.f32 %v2390_v21, %v2278_v20  ;;  %3942 = vst.msk [vmem:[#allocation4 + $0x238] sm:$0xff] %vm223_vm1, %v3910_v32  ;;  %v3697_v20 = vld [vmem:[#allocation3 + $0x20] sm:$0xff] }
 0x3f5   : > { %4789 = vmatmul.msk.f32.gmra.mxu0 %vm223_vm1, %v4019_v14  ;;  %2524 = vst.msk [vmem:[#allocation4 + $0x2b8] sm:$0xff] %vm223_vm1, %v2554_v60 }
 0x3f6   : > { %v2428_v37 = vmax.f32 %v2391_v59, 0.0 }
 0x3f7   : > { %v2555_v52 = vld [vmem:[#allocation2 + $0x168] sm:$0xff] }
 0x3f8   : > { %v2941_v43 = vld [vmem:[#allocation2 + $0x169] sm:$0xff]  ;;  %2460 = vst.msk [vmem:[#allocation2 + $0x171] sm:$0xff] %vm223_vm1, %v2428_v37  ;;  %2647 = vrot.lane.b32.xlu1 %v2555_v52, %s4948_s10  ;;  %3305 = vrot.lane.b32.xlu0 %v6429_v27, %s4948_s10  ;;  %v6823_v13 = vld [vmem:[#allocation3 + $0xe8] sm:$0xff] }
 0x3f9   : > { %2977 = vst.msk [vmem:[#allocation3 + $0xf0] sm:$0xff] %vm223_vm1, %v2941_v43  ;;  %3051 = vrot.lane.b32.xlu2 %v6377_v62, %s4950_s12  ;;  %v2280_v29 = vpop.f32.mrf.mxu1  ;;  %v3911_v41 = vld [vmem:[#allocation3 + $0xe0] sm:$0xff] }
 0x3fa   : > { %v2281_v34 = vadd.f32 %v2280_v29, %v2168_v39  ;;  %v2626_v18 = vpop.permute.xlu2 %2625  ;;  %3943 = vst.msk [vmem:[#allocation4 + $0x250] sm:$0xff] %vm223_vm1, %v3911_v41 }
 0x3fb   : > { %v4022_v35 = vld [vmem:[#allocation4 + $0x238] sm:$0xff]  ;;  %2704 = vst.msk [vmem:[#allocation4 + $0x198] sm:$0xff] %vm558_vm2, %v2626_v18 }
 0x3fc   : > { %v2394_v28 = vadd.f32 %v2393_v3, %v2281_v34  ;;  %3496 = vst.msk [vmem:[#allocation3 + $0xe8] sm:$0xff] %vm223_vm1, %v3460_v36  ;;  %v6868_v3 = vpop.f32.mrf.mxu0 }
 0x3fd   : > { %4790 = vmatmul.msk.f32.gmra.mxu0 %vm223_vm1, %v4022_v35  ;;  %2525 = vst.msk [vmem:[#allocation4 + $0x2d0] sm:$0xff] %vm223_vm1, %v2555_v52 }
 0x3fe   : > { %v2429_v42 = vmax.f32 %v2394_v28, 0.0  ;;  %v3698_v28 = vld [vmem:[#allocation3 + $0x28] sm:$0xff] }
 0x3ff   : > { %v2556_v6 = vld [vmem:[#allocation2 + $0x170] sm:$0xff] }
 0x400   : > { %v2942_v33 = vld [vmem:[#allocation2 + $0x171] sm:$0xff]  ;;  %2461 = vst.msk [vmem:[#allocation2 + $0x181] sm:$0xff] %vm223_vm1, %v2429_v42  ;;  %3307 = vrot.lane.b32.xlu1 %v6446_v54, %s4948_s10  ;;  %3571 = vrot.lane.b32.xlu0 %v6779_v48, %s4949_s11  ;;  %v6839_v8 = vld [vmem:[#allocation3 + $0xf0] sm:$0xff] }
 0x401   : > { %v3461_v55 = vld [vmem:[#allocation2 + $0x16a] sm:$0xff]  ;;  %v4025_v21 = vld [vmem:[#allocation4 + $0x250] sm:$0xff]  ;;  %2978 = vst.msk [vmem:[#allocation3 + $0xf8] sm:$0xff] %vm223_vm1, %v2942_v33  ;;  %2649 = vrot.lane.b32.xlu2 %v2556_v6, %s4948_s10  ;;  %v2283_v4 = vpop.f32.mrf.mxu1  ;;  %v3462_v37 = vld [vmem:[#allocation2 + $0x172] sm:$0xff] }
 0x402   : > { %v2284_v60 = vadd.f32 %v2283_v4, %v2171_v45  ;;  %v2622_v56 = vpop.permute.xlu0 %2621  ;;  %v2784_v53 = vpop.permute.xlu2 %2783  ;;  %3497 = vst.msk [vmem:[#allocation3 + $0xf0] sm:$0xff] %vm223_vm1, %v3461_v55 }
 0x403   : > { %2702 = vst.msk [vmem:[#allocation4 + $0x168] sm:$0xff] %vm558_vm2, %v2622_v56  ;;  %v3912_v58 = vld [vmem:[#allocation3 + $0xe8] sm:$0xff]  ;;  %v4060_v56 = vld [vmem:[%s7635_s3 + $0x68] sm:$0xff] }
 0x404   : > { %2879 = vst.msk [vmem:[#allocation4 + $0x8] sm:$0xff] %vm752_vm4, %v2784_v53  ;;  %v2397_v48 = vadd.f32 %v2396_v38, %v2284_v60  ;;  %v6893_v33 = vpop.f32.mrf.mxu0  ;;  %v3699_v38 = vld [vmem:[#allocation3 + $0x30] sm:$0xff]  ;;  %v4061_v60 = vld [vmem:[%s7635_s3 + $0x70] sm:$0xff] }
 0x405   : > { %4791 = vmatmul.msk.f32.gmra.mxu0 %vm223_vm1, %v4025_v21  ;;  %3207 = vst.msk [vmem:[#allocation4 + $0x8] sm:$0xff] %vm223_vm1, %v6377_v62 }
 0x406   : > { %v2430_v19 = vmax.f32 %v2397_v48, 0.0  ;;  %3944 = vst.msk [vmem:[#allocation4 + $0x268] sm:$0xff] %vm223_vm1, %v3912_v58 }
 0x407   : > { %v2557_v14 = vld [vmem:[#allocation2 + $0x180] sm:$0xff]  ;;  %2526 = vst.msk [vmem:[#allocation4 + $0x2e8] sm:$0xff] %vm223_vm1, %v2556_v6 }
 0x408   : > { %v2943_v24 = vld [vmem:[#allocation2 + $0x181] sm:$0xff]  ;;  %2462 = vst.msk [vmem:[#allocation2 + $0x189] sm:$0xff] %vm223_vm1, %v2430_v19  ;;  %3573 = vrot.lane.b32.xlu1 %v6797_v44, %s4949_s11  ;;  %2651 = vrot.lane.b32.xlu0 %v2557_v14, %s4948_s10 }
 0x409   : > { %2979 = vst.msk [vmem:[#allocation3 + $0x100] sm:$0xff] %vm223_vm1, %v2943_v24  ;;  %3763 = vrot.lane.b32.xlu2 %v3697_v20, %s4950_s12  ;;  %v3913_v62 = vld [vmem:[#allocation3 + $0xf0] sm:$0xff]  ;;  %v6861_v59 = vld [vmem:[#allocation3 + $0xf8] sm:$0xff]  ;;  %v4078_v24 = vld [vmem:[%s7635_s3 + $0xf8] sm:$0xff] }
 0x40a   : > { %v2624_v26 = vpop.permute.xlu1 %2623  ;;  %3945 = vst.msk [vmem:[#allocation4 + $0x280] sm:$0xff] %vm223_vm1, %v3913_v62  ;;  %v4077_v62 = vld [vmem:[%s7635_s3 + $0xf0] sm:$0xff]  ;;  %4296 = vmatpush.msrb.mxu2 %v4078_v24  ;;  %v4068_v24 = vld [vmem:[%s7635_s3 + $0xa8] sm:$0xff] }
 0x40b   : > { %2703 = vst.msk [vmem:[#allocation4 + $0x180] sm:$0xff] %vm558_vm2, %v2624_v26  ;;  %v2790_v32 = vpop.permute.xlu2 %2789  ;;  %v4057_v26 = vld [vmem:[%s7635_s3 + $0x50] sm:$0xff] }
 0x40c   : > { %2882 = vst.msk [vmem:[#allocation4 + $0x50] sm:$0xff] %vm752_vm4, %v2790_v32  ;;  %v6916_v14 = vpop.f32.mrf.mxu0  ;;  %4297 = vmatpush.msrb.mxu2 %v4077_v62  ;;  %v3702_v62 = vld [vmem:[#allocation3 + $0x48] sm:$0xff] }
 0x40d   : > { %v4028_v44 = vld [vmem:[#allocation4 + $0x268] sm:$0xff]  ;;  %3210 = vst.msk [vmem:[#allocation4 + $0x50] sm:$0xff] %vm223_vm1, %v6429_v27 }
 0x40e   : > { %4792 = vmatmul.msk.f32.gmra.mxu0 %vm223_vm1, %v4028_v44  ;;  %3498 = vst.msk [vmem:[#allocation3 + $0xf8] sm:$0xff] %vm223_vm1, %v3462_v37 }
 0x40f   : > { %v2944_v52 = vld [vmem:[#allocation2 + $0x189] sm:$0xff] }
 0x410   : > { %v3463_v43 = vld [vmem:[#allocation2 + $0x182] sm:$0xff]  ;;  %2980 = vst.msk [vmem:[#allocation3 + $0x108] sm:$0xff] %vm223_vm1, %v2944_v52  ;;  %3053 = vrot.lane.b32.xlu0 %v6397_v51, %s4950_s12  ;;  %v6873_v29 = vld [vmem:[#allocation3 + $0x100] sm:$0xff] }
 0x411   : > { %v2558_v39 = vld [vmem:[#allocation2 + $0x188] sm:$0xff]  ;;  %3309 = vrot.lane.b32.xlu2 %v6463_v23, %s4948_s10  ;;  %3499 = vst.msk [vmem:[#allocation3 + $0x100] sm:$0xff] %vm223_vm1, %v3463_v43  ;;  %v4031_v34 = vld [vmem:[#allocation4 + $0x280] sm:$0xff] }
 0x412   : > { %2653 = vrot.lane.b32.xlu1 %v2558_v39, %s4948_s10  ;;  %v2788_v41 = vpop.permute.xlu1 %2787  ;;  %v3464_v35 = vld [vmem:[#allocation2 + $0x18a] sm:$0xff] }
 0x413   : > { %2881 = vst.msk [vmem:[#allocation4 + $0x38] sm:$0xff] %vm752_vm4, %v2788_v41  ;;  %v2632_v18 = vpop.permute.xlu2 %2631  ;;  %v4076_v43 = vld [vmem:[%s7635_s3 + $0xe8] sm:$0xff]  ;;  %v4075_v41 = vld [vmem:[%s7635_s3 + $0xe0] sm:$0xff] }
 0x414   : > { %3209 = vst.msk [vmem:[#allocation4 + $0x38] sm:$0xff] %vm223_vm1, %v6411_v57  ;;  %v4056_v39 = vld [vmem:[%s7635_s3 + $0x48] sm:$0xff]  ;;  %4298 = vmatpush.msrb.mxu2 %v4076_v43  ;;  %v4065_v43 = vld [vmem:[%s7635_s3 + $0x90] sm:$0xff] }
 0x415   : > { %2707 = vst.msk [vmem:[#allocation4 + $0x1e0] sm:$0xff] %vm558_vm2, %v2632_v18  ;;  %v3914_v36 = vld [vmem:[#allocation3 + $0xf8] sm:$0xff]  ;;  %v4055_v18 = vld [vmem:[%s7635_s3 + $0x40] sm:$0xff] }
 0x416   : > { %4793 = vmatmul.msk.f32.gmra.mxu0 %vm223_vm1, %v4031_v34  ;;  %3946 = vst.msk [vmem:[#allocation4 + $0x298] sm:$0xff] %vm223_vm1, %v3914_v36  ;;  %v6957_v34 = vpop.f32.mrf.mxu0  ;;  %v4074_v36 = vld [vmem:[%s7635_s3 + $0xd8] sm:$0xff]  ;;  %4299 = vmatpush.msrb.mxu2 %v4075_v41  ;;  %v4063_v41 = vld [vmem:[%s7635_s3 + $0x80] sm:$0xff] }
 0x417   : > { %v6885_v42 = vld [vmem:[#allocation3 + $0x108] sm:$0xff] }
 0x418   : > { %3765 = vrot.lane.b32.xlu0 %v3698_v28, %s4950_s12  ;;  %v3915_v6 = vld [vmem:[#allocation3 + $0x100] sm:$0xff]  ;;  %3500 = vst.msk [vmem:[#allocation3 + $0x108] sm:$0xff] %vm223_vm1, %v3464_v35  ;;  %v4054_v35 = vld [vmem:[%s7635_s3 + $0x38] sm:$0xff]  ;;  %4300 = vmatpush.msrb.mxu2 %v4074_v36  ;;  %v3703_v36 = vld [vmem:[#allocation3 + $0x50] sm:$0xff] }
 0x419   : > { %3575 = vrot.lane.b32.xlu2 %v3697_v20, %s4949_s11  ;;  %3947 = vst.msk [vmem:[#allocation4 + $0x2b0] sm:$0xff] %vm223_vm1, %v3915_v6  ;;  %v3700_v20 = vld [vmem:[#allocation3 + $0x38] sm:$0xff] }
 0x41a   : > { %3055 = vrot.lane.b32.xlu1 %v6411_v57, %s4950_s12  ;;  %v2628_v55 = vpop.permute.xlu0 %2627  ;;  %v4062_v57 = vld [vmem:[%s7635_s3 + $0x78] sm:$0xff] }
 0x41b   : > { %2705 = vst.msk [vmem:[#allocation4 + $0x1b0] sm:$0xff] %vm558_vm2, %v2628_v55  ;;  %v2796_v45 = vpop.permute.xlu2 %2795  ;;  %4183 = vmatpush.msrb.mxu3 %v4062_v57  ;;  %v4052_v57 = vld [vmem:[%s7635_s3 + $0x28] sm:$0xff] }
 0x41c   : > { %2885 = vst.msk [vmem:[#allocation4 + $0x98] sm:$0xff] %vm752_vm4, %v2796_v45  ;;  %v4053_v45 = vld [vmem:[%s7635_s3 + $0x30] sm:$0xff] }
 0x41d   : > { %v4034_v21 = vld [vmem:[#allocation4 + $0x298] sm:$0xff]  ;;  %3213 = vst.msk [vmem:[#allocation4 + $0x98] sm:$0xff] %vm223_vm1, %v6480_v50  ;;  %4184 = vmatpush.msrb.mxu3 %v4061_v60  ;;  %v4051_v60 = vld [vmem:[%s7635_s3 + $0x20] sm:$0xff] }
 0x41e   : > { %4794 = vmatmul.msk.f32.gmra.mxu0 %vm223_vm1, %v4034_v21  ;;  %v4072_v21 = vld [vmem:[%s7635_s3 + $0xc8] sm:$0xff] }
 0x41f   : > { %v3916_v4 = vld [vmem:[#allocation3 + $0x108] sm:$0xff]  ;;  %4185 = vmatpush.msrb.mxu3 %v4060_v56 }
 0x420   : > { %3311 = vrot.lane.b32.xlu0 %v6480_v50, %s4948_s10  ;;  %3948 = vst.msk [vmem:[#allocation4 + $0x2c8] sm:$0xff] %vm223_vm1, %v3916_v4  ;;  %v4037_v48 = vld [vmem:[#allocation4 + $0x2b0] sm:$0xff]  ;;  %v3701_v4 = vld [vmem:[#allocation3 + $0x40] sm:$0xff]  ;;  %v4070_v56 = vld [vmem:[%s7635_s3 + $0xb8] sm:$0xff] }
 0x421   : > { %3057 = vrot.lane.b32.xlu2 %v6429_v27, %s4950_s12  ;;  %v4059_v27 = vld [vmem:[%s7635_s3 + $0x60] sm:$0xff] }
 0x422   : > { %3767 = vrot.lane.b32.xlu1 %v3699_v38, %s4950_s12  ;;  %v2630_v53 = vpop.permute.xlu1 %2629  ;;  %v2786_v58 = vpop.permute.xlu0 %2785  ;;  %4186 = vmatpush.msrb.mxu3 %v4059_v27  ;;  %v4049_v27 = vld [vmem:[%s7635_s3 + $0x10] sm:$0xff] }
 0x423   : > { %2706 = vst.msk [vmem:[#allocation4 + $0x1c8] sm:$0xff] %vm558_vm2, %v2630_v53  ;;  %v2802_v19 = vpop.permute.xlu2 %2801  ;;  %v4050_v53 = vld [vmem:[%s7635_s3 + $0x18] sm:$0xff] }
 0x424   : > { %2880 = vst.msk [vmem:[#allocation4 + $0x20] sm:$0xff] %vm752_vm4, %v2786_v58 }
 0x425   : > { %3208 = vst.msk [vmem:[#allocation4 + $0x20] sm:$0xff] %vm223_vm1, %v6397_v51  ;;  %v4058_v51 = vld [vmem:[%s7635_s3 + $0x58] sm:$0xff] }
 0x426   : > { %4795 = vmatmul.msk.f32.gmra.mxu0 %vm223_vm1, %v4037_v48  ;;  %2888 = vst.msk [vmem:[#allocation4 + $0xe0] sm:$0xff] %vm752_vm4, %v2802_v19  ;;  %4187 = vmatpush.msrb.mxu3 %v4058_v51  ;;  %v4067_v51 = vld [vmem:[%s7635_s3 + $0xa0] sm:$0xff] }
 0x427   : > { %3216 = vst.msk [vmem:[#allocation4 + $0xe0] sm:$0xff] %vm223_vm1, %v6527_v15  ;;  %v4040_v44 = vld [vmem:[#allocation4 + $0x2c8] sm:$0xff] }
 0x428   : > { %3577 = vrot.lane.b32.xlu0 %v3698_v28, %s4949_s11  ;;  %4188 = vmatpush.msrb.mxu3 %v4057_v26  ;;  %v4073_v28 = vld [vmem:[%s7635_s3 + $0xd0] sm:$0xff]  ;;  %v4047_v26 = vld [vmem:[%s7635_s3] sm:$0xff] }
 0x429   : > { %3769 = vrot.lane.b32.xlu2 %v3700_v20, %s4950_s12  ;;  %4301 = vmatpush.msrb.mxu2 %v4073_v28 }
 0x42a   : > { %3313 = vrot.lane.b32.xlu1 %v6496_v61, %s4948_s10  ;;  %v2794_v32 = vpop.permute.xlu1 %2793  ;;  %v2792_v37 = vpop.permute.xlu0 %2791  ;;  %4189 = vmatpush.msrb.mxu3 %v4056_v39  ;;  %v4878_v39 = vld [vmem:[%s7635_s3 + $0x118] sm:$0xff] }
 0x42b   : > { %2884 = vst.msk [vmem:[#allocation4 + $0x80] sm:$0xff] %vm752_vm4, %v2794_v32  ;;  %v2638_v52 = vpop.permute.xlu2 %2637  ;;  %4302 = vmatpush.msrb.mxu2 %v4072_v21  ;;  %v4066_v32 = vld [vmem:[%s7635_s3 + $0x98] sm:$0xff] }
 0x42c   : > { %3212 = vst.msk [vmem:[#allocation4 + $0x80] sm:$0xff] %vm223_vm1, %v6463_v23  ;;  %4190 = vmatpush.msrb.mxu3 %v4055_v18  ;;  %v4879_v18 = vld [vmem:[%s7635_s3 + $0x110] sm:$0xff] }
 0x42d   : > { %2883 = vst.msk [vmem:[#allocation4 + $0x68] sm:$0xff] %vm752_vm4, %v2792_v37 }
 0x42e   : > { %4796 = vmatmul.msk.f32.gmra.mxu0 %vm223_vm1, %v4040_v44  ;;  %3211 = vst.msk [vmem:[#allocation4 + $0x68] sm:$0xff] %vm223_vm1, %v6446_v54  ;;  %4191 = vmatpush.msrb.mxu3 %v4054_v35 }
 0x42f   : > { %2710 = vst.msk [vmem:[#allocation4 + $0x228] sm:$0xff] %vm558_vm2, %v2638_v52 }
 0x430   : > { %3059 = vrot.lane.b32.xlu0 %v6446_v54, %s4950_s12  ;;  %4192 = vmatpush.msrb.mxu3 %v4053_v45 }
 0x431   : > { %3315 = vrot.lane.b32.xlu2 %v6512_v10, %s4948_s10 }
 0x432   : > { %3579 = vrot.lane.b32.xlu1 %v3699_v38, %s4949_s11  ;;  %v2800_v6 = vpop.permute.xlu1 %2799  ;;  %v2634_v55 = vpop.permute.xlu0 %2633  ;;  %v4071_v38 = vld [vmem:[%s7635_s3 + $0xc0] sm:$0xff]  ;;  %4193 = vmatpush.msrb.mxu3 %v4052_v57 }
 0x433   : > { %2887 = vst.msk [vmem:[#allocation4 + $0xc8] sm:$0xff] %vm752_vm4, %v2800_v6  ;;  %v2808_v54 = vpop.permute.xlu2 %2807  ;;  %4303 = vmatpush.msrb.mxu2 %v4071_v38  ;;  %v4880_v6 = vld [vmem:[%s7635_s3 + $0x108] sm:$0xff] }
 0x434   : > { %3215 = vst.msk [vmem:[#allocation4 + $0xc8] sm:$0xff] %vm223_vm1, %v6512_v10  ;;  %4194 = vmatpush.msrb.mxu3 %v4051_v60 }
 0x435   : > { %2708 = vst.msk [vmem:[#allocation4 + $0x1f8] sm:$0xff] %vm558_vm2, %v2634_v55  ;;  %4304 = vmatpush.msrb.mxu2 %v4070_v56 }
 0x436   : > { %2891 = vst.msk [vmem:[#allocation4 + $0x128] sm:$0xff] %vm752_vm4, %v2808_v54  ;;  %4195 = vmatpush.msrb.mxu3 %v4050_v53  ;;  %v4881_v54 = vld [vmem:[%s7635_s3 + $0x100] sm:$0xff]  ;;  %v3705_v53 = vld [vmem:[#allocation3 + $0x60] sm:$0xff] }
 0x437   : > { %3219 = vst.msk [vmem:[#allocation4 + $0x128] sm:$0xff] %vm223_vm1, %v6573_v12 }
 0x438   : > { %3771 = vrot.lane.b32.xlu0 %v3701_v4, %s4950_s12  ;;  %4196 = vmatpush.msrb.mxu3 %v4049_v27  ;;  %v3706_v27 = vld [vmem:[#allocation3 + $0x68] sm:$0xff] }
 0x439   : > { %3581 = vrot.lane.b32.xlu2 %v3700_v20, %s4949_s11  ;;  %v4048_v20 = vld [vmem:[%s7635_s3 + $0x8] sm:$0xff] }
 0x43a   : > { %3061 = vrot.lane.b32.xlu1 %v6463_v23, %s4950_s12  ;;  %v2636_v58 = vpop.permute.xlu1 %2635  ;;  %v2798_v48 = vpop.permute.xlu0 %2797  ;;  %v4069_v23 = vld [vmem:[%s7635_s3 + $0xb0] sm:$0xff]  ;;  %4197 = vmatpush.msrb.mxu3 %v4048_v20 }
 0x43b   : > { %2709 = vst.msk [vmem:[#allocation4 + $0x210] sm:$0xff] %vm558_vm2, %v2636_v58  ;;  %v3304_v19 = vpop.permute.xlu2 %3303  ;;  %4305 = vmatpush.msrb.mxu2 %v4069_v23 }
 0x43c   : > { %2886 = vst.msk [vmem:[#allocation4 + $0xb0] sm:$0xff] %vm752_vm4, %v2798_v48  ;;  %4198 = vmatpush.msrb.mxu3 %v4047_v26 }
 0x43d   : > { %3214 = vst.msk [vmem:[#allocation4 + $0xb0] sm:$0xff] %vm223_vm1, %v6496_v61  ;;  %4306 = vmatpush.msrb.mxu2 %v4068_v24 }
 0x43e   : > { %3399 = vst.msk [vmem:[#allocation4 + $0x8] sm:$0xff] %vm558_vm2, %v3304_v19  ;;  %4826 = vmatpush.msra.mxu3 %v4878_v39  ;;  %v2732_v39 = vld [vmem:[#allocation2 + $0xc8] sm:$0xff] }
 0x43f   : > { %4307 = vmatpush.msrb.mxu2 %v4067_v51 }
 0x440   : > { %3317 = vrot.lane.b32.xlu0 %v6527_v15, %s4948_s10  ;;  %4827 = vmatpush.msra.mxu3 %v4879_v18 }
 0x441   : > { %3063 = vrot.lane.b32.xlu2 %v6480_v50, %s4950_s12  ;;  %4308 = vmatpush.msrb.mxu2 %v4066_v32  ;;  %v4064_v50 = vld [vmem:[%s7635_s3 + $0x88] sm:$0xff] }
 0x442   : > { %3773 = vrot.lane.b32.xlu1 %v3702_v62, %s4950_s12  ;;  %v2806_v37 = vpop.permute.xlu1 %2805  ;;  %v2804_v44 = vpop.permute.xlu0 %2803  ;;  %4828 = vmatpush.msra.mxu3 %v4880_v6 }
 0x443   : > { %2890 = vst.msk [vmem:[#allocation4 + $0x110] sm:$0xff] %vm752_vm4, %v2806_v37  ;;  %v2644_v52 = vpop.permute.xlu2 %2643  ;;  %4309 = vmatpush.msrb.mxu2 %v4065_v43  ;;  %v3707_v37 = vld [vmem:[#allocation3 + $0x70] sm:$0xff] }
 0x444   : > { %3218 = vst.msk [vmem:[#allocation4 + $0x110] sm:$0xff] %vm223_vm1, %v6557_v31  ;;  %4829 = vmatpush.msra.mxu3 %v4881_v54 }
 0x445   : > { %2889 = vst.msk [vmem:[#allocation4 + $0xf8] sm:$0xff] %vm752_vm4, %v2804_v44  ;;  %4310 = vmatpush.msrb.mxu2 %v4064_v50 }
 0x446   : > { %3217 = vst.msk [vmem:[#allocation4 + $0xf8] sm:$0xff] %vm223_vm1, %v6542_v0 }
 0x447   : > { %2713 = vst.msk [vmem:[#allocation4 + $0x270] sm:$0xff] %vm558_vm2, %v2644_v52  ;;  %4311 = vmatpush.msrb.mxu2 %v4063_v41  ;;  %v3708_v41 = vld [vmem:[#allocation3 + $0x78] sm:$0xff] }
 0x448   : > { %3583 = vrot.lane.b32.xlu0 %v3701_v4, %s4949_s11  ;;  %v3704_v4 = vld [vmem:[#allocation3 + $0x58] sm:$0xff] }
 0x449   : > { %3775 = vrot.lane.b32.xlu2 %v3703_v36, %s4950_s12 }
 0x44a   : > { %3319 = vrot.lane.b32.xlu1 %v6542_v0, %s4948_s10  ;;  %v3568_v35 = vpop.permute.xlu1 %3567  ;;  %v2640_v28 = vpop.permute.xlu0 %2639 }
 0x44b   : > { %2711 = vst.msk [vmem:[#allocation4 + $0x240] sm:$0xff] %vm558_vm2, %v2640_v28  ;;  %v3570_v55 = vpop.permute.xlu2 %3569 }
 0x450   : > { %3065 = vrot.lane.b32.xlu0 %v6496_v61, %s4950_s12 }
 0x451   : > { %3321 = vrot.lane.b32.xlu2 %v6557_v31, %s4948_s10 }
 0x452   : > { %3585 = vrot.lane.b32.xlu1 %v3702_v62, %s4949_s11  ;;  %v2642_v45 = vpop.permute.xlu1 %2641  ;;  %v3048_v21 = vpop.permute.xlu0 %3047 }
 0x453   : > { %2712 = vst.msk [vmem:[#allocation4 + $0x258] sm:$0xff] %vm558_vm2, %v2642_v45  ;;  %v3052_v57 = vpop.permute.xlu2 %3051  ;;  %v3709_v45 = vld [vmem:[#allocation3 + $0x80] sm:$0xff] }
 0x454   : > { %3143 = vst.msk [vmem:[#allocation4] sm:$0xff] %vm1017_vm5, %v3048_v21 }
 0x455   : > { %3663 = vst.msk [vmem:[#allocation4] sm:$0xff] %vm752_vm4, %v3568_v35  ;;  %v2733_v35 = vld [vmem:[#allocation2 + $0xd8] sm:$0xff] }
 0x456   : > { %3145 = vst.msk [vmem:[#allocation4 + $0x30] sm:$0xff] %vm1017_vm5, %v3052_v57 }
 0x458   : > { %3777 = vrot.lane.b32.xlu0 %v3704_v4, %s4950_s12 }
 0x459   : > { %3587 = vrot.lane.b32.xlu2 %v3703_v36, %s4949_s11 }
 0x45a   : > { %3067 = vrot.lane.b32.xlu1 %v6512_v10, %s4950_s12  ;;  %v3050_v61 = vpop.permute.xlu1 %3049  ;;  %v3760_v38 = vpop.permute.xlu0 %3759 }
 0x45b   : > { %3144 = vst.msk [vmem:[#allocation4 + $0x18] sm:$0xff] %vm1017_vm5, %v3050_v61  ;;  %v2650_v60 = vpop.permute.xlu2 %2649 }
 0x45c   : > { %3664 = vst.msk [vmem:[#allocation4 + $0x18] sm:$0xff] %vm752_vm4, %v3570_v55  ;;  %v3951_v56 = vld [vmem:[#allocation4] sm:$0xff] }
 0x45d   : > { %3855 = vst.msk [vmem:[#allocation4 + $0x8] sm:$0xff] %vm1017_vm5, %v3760_v38  ;;  %4199 = vmatmul.f32.vlgmr.msrb.gmra.mxu3 %v3951_v56  ;;  %v2734_v38 = vld [vmem:[#allocation2 + $0xe0] sm:$0xff] }
 0x45e   : > { %2716 = vst.msk [vmem:[#allocation4 + $0x2b8] sm:$0xff] %vm558_vm2, %v2650_v60 }
 0x460   : > { %3323 = vrot.lane.b32.xlu0 %v6573_v12, %s4948_s10 }
 0x461   : > { %3069 = vrot.lane.b32.xlu2 %v6527_v15, %s4950_s12 }
 0x462   : > { %3779 = vrot.lane.b32.xlu1 %v3705_v53, %s4950_s12  ;;  %v3762_v10 = vpop.permute.xlu1 %3761  ;;  %v2646_v58 = vpop.permute.xlu0 %2645 }
 0x463   : > { %2714 = vst.msk [vmem:[#allocation4 + $0x288] sm:$0xff] %vm558_vm2, %v2646_v58  ;;  %v3764_v48 = vpop.permute.xlu2 %3763  ;;  %v3954_v19 = vld [vmem:[#allocation4 + $0x18] sm:$0xff]  ;;  %v3710_v58 = vld [vmem:[#allocation3 + $0x88] sm:$0xff] }
 0x464   : > { %v3952_v23 = vld [vmem:[#allocation4 + $0x8] sm:$0xff] }
 0x465   : > { %4312 = vmatmul.f32.vlgmr.msrb.gmra.mxu2 %v3952_v23  ;;  %4202 = vmatmul.f32.gmra.mxu3 %v3954_v19 }
 0x468   : > { %3589 = vrot.lane.b32.xlu0 %v3704_v4, %s4949_s11 }
 0x469   : > { %3781 = vrot.lane.b32.xlu2 %v3706_v27, %s4950_s12 }
 0x46a   : > { %3325 = vrot.lane.b32.xlu1 %v6590_v47, %s4948_s10  ;;  %v2648_v24 = vpop.permute.xlu1 %2647  ;;  %v3306_v20 = vpop.permute.xlu0 %3305 }
 0x46b   : > { %2715 = vst.msk [vmem:[#allocation4 + $0x2a0] sm:$0xff] %vm558_vm2, %v2648_v24  ;;  %v3310_v15 = vpop.permute.xlu2 %3309 }
 0x46c   : > { %3400 = vst.msk [vmem:[#allocation4 + $0x20] sm:$0xff] %vm558_vm2, %v3306_v20  ;;  %v2735_v20 = vld [vmem:[#allocation2 + $0xf0] sm:$0xff] }
 0x46d   : > { %3856 = vst.msk [vmem:[#allocation4 + $0x20] sm:$0xff] %vm1017_vm5, %v3762_v10 }
 0x46e   : > { %3402 = vst.msk [vmem:[#allocation4 + $0x50] sm:$0xff] %vm558_vm2, %v3310_v15  ;;  %v3711_v15 = vld [vmem:[#allocation3 + $0x90] sm:$0xff] }
 0x470   : > { %3071 = vrot.lane.b32.xlu0 %v6542_v0, %s4950_s12 }
 0x471   : > { %3327 = vrot.lane.b32.xlu2 %v6604_v9, %s4948_s10 }
 0x472   : > { %3591 = vrot.lane.b32.xlu1 %v3705_v53, %s4949_s11  ;;  %v3308_v51 = vpop.permute.xlu1 %3307  ;;  %v3572_v62 = vpop.permute.xlu0 %3571 }
 0x473   : > { %3401 = vst.msk [vmem:[#allocation4 + $0x38] sm:$0xff] %vm558_vm2, %v3308_v51  ;;  %v3576_v26 = vpop.permute.xlu2 %3575 }
 0x474   : > { %3857 = vst.msk [vmem:[#allocation4 + $0x38] sm:$0xff] %vm1017_vm5, %v3764_v48  ;;  %v3955_v32 = vld [vmem:[#allocation4 + $0x20] sm:$0xff] }
 0x475   : > { %3665 = vst.msk [vmem:[#allocation4 + $0x30] sm:$0xff] %vm752_vm4, %v3572_v62  ;;  %4315 = vmatmul.f32.gmra.mxu2 %v3955_v32 }
 0x478   : > { %3783 = vrot.lane.b32.xlu0 %v3707_v37, %s4950_s12 }
 0x479   : > { %3593 = vrot.lane.b32.xlu2 %v3706_v27, %s4949_s11 }
 0x47a   : > { %3073 = vrot.lane.b32.xlu1 %v6557_v31, %s4950_s12  ;;  %v3574_v0 = vpop.permute.xlu1 %3573  ;;  %v2652_v44 = vpop.permute.xlu0 %2651 }
 0x47b   : > { %2717 = vst.msk [vmem:[#allocation4 + $0x2d0] sm:$0xff] %vm558_vm2, %v2652_v44  ;;  %v3058_v52 = vpop.permute.xlu2 %3057  ;;  %v3958_v43 = vld [vmem:[#allocation4 + $0x38] sm:$0xff] }
 0x47c   : > { %3148 = vst.msk [vmem:[#allocation4 + $0x78] sm:$0xff] %vm1017_vm5, %v3058_v52  ;;  %v3957_v50 = vld [vmem:[#allocation4 + $0x30] sm:$0xff] }
 0x47d   : > { %4205 = vmatmul.f32.gmra.mxu3 %v3957_v50  ;;  %4318 = vmatmul.f32.gmra.mxu2 %v3958_v43 }
 0x480   : > { %2809 = vrot.lane.b32.xlu0 %v2732_v39, %s4949_s11  ;;  %v3712_v39 = vld [vmem:[#allocation3 + $0x98] sm:$0xff] }
 0x481   : > { %3785 = vrot.lane.b32.xlu2 %v3708_v41, %s4950_s12 }
 0x482   : > { %3329 = vrot.lane.b32.xlu1 %v6619_v16, %s4948_s10  ;;  %v3054_v31 = vpop.permute.xlu0 %3053 }
 0x483   : > { %3146 = vst.msk [vmem:[#allocation4 + $0x48] sm:$0xff] %vm1017_vm5, %v3054_v31  ;;  %v3770_v36 = vpop.permute.xlu2 %3769 }
 0x484   : > { %v2654_v18 = vpop.permute.xlu1 %2653  ;;  %3666 = vst.msk [vmem:[#allocation4 + $0x48] sm:$0xff] %vm752_vm4, %v3574_v0 }
 0x485   : > { %2718 = vst.msk [vmem:[#allocation4 + $0x2e8] sm:$0xff] %vm558_vm2, %v2654_v18 }
 0x488   : > { %3075 = vrot.lane.b32.xlu0 %v6573_v12, %s4950_s12 }
 0x489   : > { %2811 = vrot.lane.b32.xlu2 %v2733_v35, %s4949_s11  ;;  %v2737_v35 = vld [vmem:[#allocation2 + $0x108] sm:$0xff] }
 0x48a   : > { %3595 = vrot.lane.b32.xlu1 %v3707_v37, %s4949_s11  ;;  %v3766_v28 = vpop.permute.xlu0 %3765  ;;  %v2736_v37 = vld [vmem:[#allocation2 + $0xf8] sm:$0xff] }
 0x48b   : > { %3858 = vst.msk [vmem:[#allocation4 + $0x50] sm:$0xff] %vm1017_vm5, %v3766_v28  ;;  %v3316_v55 = vpop.permute.xlu2 %3315  ;;  %v3960_v54 = vld [vmem:[#allocation4 + $0x48] sm:$0xff] }
 0x48c   : > { %v3056_v6 = vpop.permute.xlu1 %3055  ;;  %4208 = vmatmul.f32.gmra.mxu3 %v3960_v54  ;;  %3405 = vst.msk [vmem:[#allocation4 + $0x98] sm:$0xff] %vm558_vm2, %v3316_v55 }
 0x48d   : > { %3147 = vst.msk [vmem:[#allocation4 + $0x60] sm:$0xff] %vm1017_vm5, %v3056_v6 }
 0x48e   : > { %3667 = vst.msk [vmem:[#allocation4 + $0x60] sm:$0xff] %vm752_vm4, %v3576_v26 }
 0x490   : > { %3331 = vrot.lane.b32.xlu0 %v6635_v63, %s4948_s10 }
 0x491   : > { %3077 = vrot.lane.b32.xlu2 %v6590_v47, %s4950_s12 }
 0x492   : > { %3787 = vrot.lane.b32.xlu1 %v3709_v45, %s4950_s12  ;;  %v3312_v12 = vpop.permute.xlu0 %3311  ;;  %v3961_v21 = vld [vmem:[#allocation4 + $0x50] sm:$0xff] }
 0x493   : > { %3403 = vst.msk [vmem:[#allocation4 + $0x68] sm:$0xff] %vm558_vm2, %v3312_v12  ;;  %4321 = vmatmul.f32.gmra.mxu2 %v3961_v21  ;;  %v3582_v4 = vpop.permute.xlu2 %3581  ;;  %v3713_v12 = vld [vmem:[#allocation3 + $0xa0] sm:$0xff] }
 0x494   : > { %v3768_v57 = vpop.permute.xlu1 %3767 }
 0x495   : > { %3859 = vst.msk [vmem:[#allocation4 + $0x68] sm:$0xff] %vm1017_vm5, %v3768_v57  ;;  %v3963_v61 = vld [vmem:[#allocation4 + $0x60] sm:$0xff] }
 0x496   : > { %4211 = vmatmul.f32.gmra.mxu3 %v3963_v61 }
 0x498   : > { %3597 = vrot.lane.b32.xlu0 %v3708_v41, %s4949_s11 }
 0x499   : > { %3333 = vrot.lane.b32.xlu2 %v6651_v7, %s4948_s10 }
 0x49a   : > { %2813 = vrot.lane.b32.xlu1 %v2734_v38, %s4949_s11  ;;  %v3578_v60 = vpop.permute.xlu0 %3577  ;;  %v2738_v38 = vld [vmem:[#allocation2 + $0x110] sm:$0xff] }
 0x49b   : > { %3668 = vst.msk [vmem:[#allocation4 + $0x78] sm:$0xff] %vm752_vm4, %v3578_v60  ;;  %v3064_v10 = vpop.permute.xlu2 %3063  ;;  %v3714_v60 = vld [vmem:[#allocation3 + $0xa8] sm:$0xff] }
 0x49c   : > { %v3314_v56 = vpop.permute.xlu1 %3313  ;;  %v3964_v53 = vld [vmem:[#allocation4 + $0x68] sm:$0xff]  ;;  %3151 = vst.msk [vmem:[#allocation4 + $0xc0] sm:$0xff] %vm1017_vm5, %v3064_v10 }
 0x49d   : > { %3404 = vst.msk [vmem:[#allocation4 + $0x80] sm:$0xff] %vm558_vm2, %v3314_v56  ;;  %4324 = vmatmul.f32.gmra.mxu2 %v3964_v53 }
 0x49e   : > { %3860 = vst.msk [vmem:[#allocation4 + $0x80] sm:$0xff] %vm1017_vm5, %v3770_v36 }
 0x4a0   : > { %3789 = vrot.lane.b32.xlu0 %v3710_v58, %s4950_s12 }
 0x4a1   : > { %3599 = vrot.lane.b32.xlu2 %v3709_v45, %s4949_s11 }
 0x4a2   : > { %3079 = vrot.lane.b32.xlu1 %v6604_v9, %s4950_s12  ;;  %v3060_v48 = vpop.permute.xlu0 %3059  ;;  %v3966_v19 = vld [vmem:[#allocation4 + $0x78] sm:$0xff] }
 0x4a3   : > { %3149 = vst.msk [vmem:[#allocation4 + $0x90] sm:$0xff] %vm1017_vm5, %v3060_v48  ;;  %4214 = vmatmul.f32.gmra.mxu3 %v3966_v19  ;;  %v3776_v27 = vpop.permute.xlu2 %3775  ;;  %v2739_v19 = vld [vmem:[#allocation2 + $0x120] sm:$0xff] }
 0x4a4   : > { %v3580_v23 = vpop.permute.xlu1 %3579 }
 0x4a5   : > { %3669 = vst.msk [vmem:[#allocation4 + $0x90] sm:$0xff] %vm752_vm4, %v3580_v23  ;;  %v3967_v24 = vld [vmem:[#allocation4 + $0x80] sm:$0xff] }
 0x4a6   : > { %4327 = vmatmul.f32.gmra.mxu2 %v3967_v24 }
 0x4a8   : > { %2815 = vrot.lane.b32.xlu0 %v2735_v20, %s4949_s11 }
 0x4a9   : > { %3791 = vrot.lane.b32.xlu2 %v3711_v15, %s4950_s12 }
 0x4aa   : > { %3335 = vrot.lane.b32.xlu1 %v6665_v49, %s4948_s10  ;;  %v3772_v51 = vpop.permute.xlu0 %3771 }
 0x4ab   : > { %3861 = vst.msk [vmem:[#allocation4 + $0x98] sm:$0xff] %vm1017_vm5, %v3772_v51  ;;  %v3322_v32 = vpop.permute.xlu2 %3321 }
 0x4ac   : > { %v3062_v62 = vpop.permute.xlu1 %3061  ;;  %v3969_v26 = vld [vmem:[#allocation4 + $0x90] sm:$0xff]  ;;  %3408 = vst.msk [vmem:[#allocation4 + $0xe0] sm:$0xff] %vm558_vm2, %v3322_v32 }
 0x4ad   : > { %3150 = vst.msk [vmem:[#allocation4 + $0xa8] sm:$0xff] %vm1017_vm5, %v3062_v62  ;;  %4217 = vmatmul.f32.gmra.mxu3 %v3969_v26  ;;  %v7215_v26 = vld [vmem:[%s7636_s4] ss:$0 sm:$0xff] }
 0x4ae   : > { %3670 = vst.msk [vmem:[#allocation4 + $0xa8] sm:$0xff] %vm752_vm4, %v3582_v4 }
 0x4b0   : > { %3081 = vrot.lane.b32.xlu0 %v6619_v16, %s4950_s12 }
 0x4b1   : > { %2817 = vrot.lane.b32.xlu2 %v2736_v37, %s4949_s11 }
 0x4b2   : > { %3601 = vrot.lane.b32.xlu1 %v3710_v58, %s4949_s11  ;;  %v3318_v0 = vpop.permute.xlu0 %3317  ;;  %v3970_v44 = vld [vmem:[#allocation4 + $0x98] sm:$0xff] }
 0x4b3   : > { %3406 = vst.msk [vmem:[#allocation4 + $0xb0] sm:$0xff] %vm558_vm2, %v3318_v0  ;;  %4330 = vmatmul.f32.gmra.mxu2 %v3970_v44  ;;  %v3588_v43 = vpop.permute.xlu2 %3587 }
 0x4b4   : > { %v3774_v52 = vpop.permute.xlu1 %3773 }
 0x4b5   : > { %3862 = vst.msk [vmem:[#allocation4 + $0xb0] sm:$0xff] %vm1017_vm5, %v3774_v52  ;;  %v3972_v50 = vld [vmem:[#allocation4 + $0xa8] sm:$0xff] }
 0x4b6   : > { %4220 = vmatmul.f32.gmra.mxu3 %v3972_v50  ;;  %v2740_v50 = vld [vmem:[#allocation2 + $0x128] sm:$0xff] }
 0x4b8   : > { %3337 = vrot.lane.b32.xlu0 %v6685_v17, %s4948_s10 }
 0x4b9   : > { %3083 = vrot.lane.b32.xlu2 %v6635_v63, %s4950_s12 }
 0x4ba   : > { %3793 = vrot.lane.b32.xlu1 %v3712_v39, %s4950_s12  ;;  %v3584_v41 = vpop.permute.xlu0 %3583 }
 0x4bb   : > { %3671 = vst.msk [vmem:[#allocation4 + $0xc0] sm:$0xff] %vm752_vm4, %v3584_v41  ;;  %v3070_v36 = vpop.permute.xlu2 %3069 }
 0x4bc   : > { %v3320_v31 = vpop.permute.xlu1 %3319  ;;  %v3973_v18 = vld [vmem:[#allocation4 + $0xb0] sm:$0xff]  ;;  %3154 = vst.msk [vmem:[#allocation4 + $0x108] sm:$0xff] %vm1017_vm5, %v3070_v36 }
 0x4bd   : > { %3407 = vst.msk [vmem:[#allocation4 + $0xc8] sm:$0xff] %vm558_vm2, %v3320_v31  ;;  %4333 = vmatmul.f32.gmra.mxu2 %v3973_v18  ;;  %v4554_v36 = vld [vmem:[%s5044_s9] sm:$0xff] }
 0x4be   : > { %3863 = vst.msk [vmem:[#allocation4 + $0xc8] sm:$0xff] %vm1017_vm5, %v3776_v27 }
 0x4c0   : > { %3603 = vrot.lane.b32.xlu0 %v3711_v15, %s4949_s11  ;;  %v3715_v15 = vld [vmem:[#allocation3 + $0xb0] sm:$0xff] }
 0x4c1   : > { %3339 = vrot.lane.b32.xlu2 %v6703_v5, %s4948_s10 }
 0x4c2   : > { %2819 = vrot.lane.b32.xlu1 %v2737_v35, %s4949_s11  ;;  %v3066_v28 = vpop.permute.xlu0 %3065  ;;  %v3975_v6 = vld [vmem:[#allocation4 + $0xc0] sm:$0xff] }
 0x4c3   : > { %3152 = vst.msk [vmem:[#allocation4 + $0xd8] sm:$0xff] %vm1017_vm5, %v3066_v28  ;;  %4223 = vmatmul.f32.gmra.mxu3 %v3975_v6  ;;  %v3782_v54 = vpop.permute.xlu2 %3781 }
 0x4c4   : > { %v3586_v55 = vpop.permute.xlu1 %3585 }
 0x4c5   : > { %3672 = vst.msk [vmem:[#allocation4 + $0xd8] sm:$0xff] %vm752_vm4, %v3586_v55  ;;  %v3976_v45 = vld [vmem:[#allocation4 + $0xc8] sm:$0xff]  ;;  %v3716_v55 = vld [vmem:[#allocation3 + $0xb8] sm:$0xff] }
 0x4c6   : > { %4336 = vmatmul.f32.gmra.mxu2 %v3976_v45 }
 0x4c8   : > { %3795 = vrot.lane.b32.xlu0 %v3713_v12, %s4950_s12 }
 0x4c9   : > { %3605 = vrot.lane.b32.xlu2 %v3712_v39, %s4949_s11 }
 0x4ca   : > { %3085 = vrot.lane.b32.xlu1 %v6651_v7, %s4950_s12  ;;  %v3778_v21 = vpop.permute.xlu0 %3777 }
 0x4cb   : > { %3864 = vst.msk [vmem:[#allocation4 + $0xe0] sm:$0xff] %vm1017_vm5, %v3778_v21  ;;  %v3328_v61 = vpop.permute.xlu2 %3327 }
 0x4cc   : > { %v3068_v57 = vpop.permute.xlu1 %3067  ;;  %v3978_v4 = vld [vmem:[#allocation4 + $0xd8] sm:$0xff]  ;;  %3411 = vst.msk [vmem:[#allocation4 + $0x128] sm:$0xff] %vm558_vm2, %v3328_v61  ;;  %v2741_v61 = vld [vmem:[#allocation2 + $0x138] sm:$0xff] }
 0x4cd   : > { %3153 = vst.msk [vmem:[#allocation4 + $0xf0] sm:$0xff] %vm1017_vm5, %v3068_v57  ;;  %4226 = vmatmul.f32.gmra.mxu3 %v3978_v4 }
 0x4ce   : > { %3673 = vst.msk [vmem:[#allocation4 + $0xf0] sm:$0xff] %vm752_vm4, %v3588_v43 }
 0x4d0   : > { %2821 = vrot.lane.b32.xlu0 %v2738_v38, %s4949_s11 }
 0x4d1   : > { %3797 = vrot.lane.b32.xlu2 %v3714_v60, %s4950_s12 }
 0x4d2   : > { %3341 = vrot.lane.b32.xlu1 %v6722_v11, %s4948_s10  ;;  %v3324_v56 = vpop.permute.xlu0 %3323  ;;  %v3979_v53 = vld [vmem:[#allocation4 + $0xe0] sm:$0xff] }
 0x4d3   : > { %3409 = vst.msk [vmem:[#allocation4 + $0xf8] sm:$0xff] %vm558_vm2, %v3324_v56  ;;  %4339 = vmatmul.f32.gmra.mxu2 %v3979_v53  ;;  %v3594_v58 = vpop.permute.xlu2 %3593 }
 0x4d4   : > { %v3780_v10 = vpop.permute.xlu1 %3779 }
 0x4d5   : > { %3865 = vst.msk [vmem:[#allocation4 + $0xf8] sm:$0xff] %vm1017_vm5, %v3780_v10  ;;  %v3981_v48 = vld [vmem:[#allocation4 + $0xf0] sm:$0xff] }
 0x4d6   : > { %4229 = vmatmul.f32.gmra.mxu3 %v3981_v48 }
 0x4d8   : > { %3087 = vrot.lane.b32.xlu0 %v6665_v49, %s4950_s12 }
 0x4d9   : > { %2823 = vrot.lane.b32.xlu2 %v2739_v19, %s4949_s11 }
 0x4da   : > { %3607 = vrot.lane.b32.xlu1 %v3713_v12, %s4949_s11  ;;  %v3590_v23 = vpop.permute.xlu0 %3589 }
 0x4db   : > { %3674 = vst.msk [vmem:[#allocation4 + $0x108] sm:$0xff] %vm752_vm4, %v3590_v23  ;;  %v3786_v20 = vpop.permute.xlu2 %3785 }
 0x4dc   : > { %v3326_v27 = vpop.permute.xlu1 %3325  ;;  %v3982_v24 = vld [vmem:[#allocation4 + $0xf8] sm:$0xff] }
 0x4dd   : > { %3410 = vst.msk [vmem:[#allocation4 + $0x110] sm:$0xff] %vm558_vm2, %v3326_v27  ;;  %4342 = vmatmul.f32.gmra.mxu2 %v3982_v24 }
 0x4de   : > { %3866 = vst.msk [vmem:[#allocation4 + $0x110] sm:$0xff] %vm1017_vm5, %v3782_v54 }
 0x4e0   : > { %3343 = vrot.lane.b32.xlu0 %v6739_v40, %s4948_s10  ;;  %v4200_v37 = vpop.f32.mrf.mxu3 }
 0x4e1   : > { %3089 = vrot.lane.b32.xlu2 %v6685_v17, %s4950_s12  ;;  %v4201_v52 = vadd.f32 %v7215_v26, %v4200_v37 }
 0x4e2   : > { %3799 = vrot.lane.b32.xlu1 %v3715_v15, %s4950_s12  ;;  %v3072_v51 = vpop.permute.xlu0 %3071  ;;  %v3984_v62 = vld [vmem:[#allocation4 + $0x108] sm:$0xff] }
 0x4e3   : > { %3155 = vst.msk [vmem:[#allocation4 + $0x120] sm:$0xff] %vm1017_vm5, %v3072_v51  ;;  %4232 = vmatmul.f32.gmra.mxu3 %v3984_v62  ;;  %v2812_v0 = vpop.permute.xlu2 %2811 }
 0x4e4   : > { %v3592_v32 = vpop.permute.xlu1 %3591  ;;  %2893 = vst.msk [vmem:[#allocation4 + $0x158] sm:$0xff] %vm752_vm4, %v2812_v0 }
 0x4e5   : > { %3675 = vst.msk [vmem:[#allocation4 + $0x120] sm:$0xff] %vm752_vm4, %v3592_v32  ;;  %v3985_v44 = vld [vmem:[#allocation4 + $0x110] sm:$0xff] }
 0x4e6   : > { %4345 = vmatmul.f32.gmra.mxu2 %v3985_v44  ;;  %3221 = vst.msk [vmem:[#allocation4 + $0x158] sm:$0xff] %vm223_vm1, %v6604_v9 }
 0x4e8   : > { %v4313_v43 = vpop.f32.mrf.mxu2  ;;  %3609 = vrot.lane.b32.xlu0 %v3714_v60, %s4949_s11  ;;  %v4203_v12 = vpop.f32.mrf.mxu3  ;;  %v3717_v60 = vld [vmem:[#allocation3 + $0xc0] sm:$0xff] }
 0x4e9   : > { %v4314_v39 = vadd.f32 %v4313_v43, %v4201_v52  ;;  %3345 = vrot.lane.b32.xlu2 %v6756_v30, %s4948_s10  ;;  %v4204_v4 = vadd.f32 %v7215_v26, %v4203_v12  ;;  %v4556_v52 = vld [vmem:[%s5044_s9 + $0x10] sm:$0xff]  ;;  %v4557_v12 = vld [vmem:[%s5044_s9 + $0x18] sm:$0xff] }
 0x4ea   : > { %2825 = vrot.lane.b32.xlu1 %v2740_v50, %s4949_s11  ;;  %v3784_v41 = vpop.permute.xlu0 %3783  ;;  %v3718_v50 = vld [vmem:[#allocation3 + $0xc8] sm:$0xff] }
 0x4eb   : > { %v4427_v31 = vadd.f32 %v6827_v22, %v4314_v39  ;;  %3867 = vst.msk [vmem:[#allocation4 + $0x128] sm:$0xff] %vm1017_vm5, %v3784_v41  ;;  %v3078_v35 = vpop.permute.xlu2 %3077 }
 0x4ec   : > { %v3074_v18 = vpop.permute.xlu1 %3073  ;;  %v3987_v9 = vld [vmem:[#allocation4 + $0x120] sm:$0xff]  ;;  %3158 = vst.msk [vmem:[#allocation4 + $0x168] sm:$0xff] %vm1017_vm5, %v3078_v35 }
 0x4ed   : > { %3156 = vst.msk [vmem:[#allocation4 + $0x138] sm:$0xff] %vm1017_vm5, %v3074_v18  ;;  %4235 = vmatmul.f32.gmra.mxu3 %v3987_v9  ;;  %v4522_v28 = vmul.f32 0.1, %v4427_v31  ;;  %v2743_v9 = vld [vmem:[#allocation2 + $0x150] sm:$0xff] }
 0x4ee   : > { %3676 = vst.msk [vmem:[#allocation4 + $0x138] sm:$0xff] %vm752_vm4, %v3594_v58  ;;  %v4555_v58 = vld [vmem:[%s5044_s9 + $0x8] sm:$0xff] }
 0x4ef   : > { %v4586_v6 = vadd.f32 %v4554_v36, %v4522_v28 }
 0x4f0   : > { %3801 = vrot.lane.b32.xlu0 %v3716_v55, %s4950_s12 }
 0x4f1   : > { %4618 = vst.msk [vmem:[%s7237_s17] sm:$0xff] %vm223_vm1, %v4586_v6  ;;  %3611 = vrot.lane.b32.xlu2 %v3715_v15, %s4949_s11  ;;  %v2742_v15 = vld [vmem:[#allocation2 + $0x140] sm:$0xff] }
 0x4f2   : > { %3091 = vrot.lane.b32.xlu1 %v6703_v5, %s4950_s12  ;;  %v2810_v22 = vpop.permute.xlu0 %2809  ;;  %v3988_v54 = vld [vmem:[#allocation4 + $0x128] sm:$0xff] }
 0x4f3   : > { %2892 = vst.msk [vmem:[#allocation4 + $0x140] sm:$0xff] %vm752_vm4, %v2810_v22  ;;  %4348 = vmatmul.f32.gmra.mxu2 %v3988_v54  ;;  %v3334_v21 = vpop.permute.xlu2 %3333  ;;  %v3719_v54 = vld [vmem:[#allocation3 + $0xd0] sm:$0xff] }
 0x4f4   : > { %v3330_v45 = vpop.permute.xlu1 %3329  ;;  %3220 = vst.msk [vmem:[#allocation4 + $0x140] sm:$0xff] %vm223_vm1, %v6590_v47 }
 0x4f5   : > { %v3990_v57 = vld [vmem:[#allocation4 + $0x138] sm:$0xff]  ;;  %3412 = vst.msk [vmem:[#allocation4 + $0x140] sm:$0xff] %vm558_vm2, %v3330_v45 }
 0x4f6   : > { %4238 = vmatmul.f32.gmra.mxu3 %v3990_v57  ;;  %3868 = vst.msk [vmem:[#allocation4 + $0x140] sm:$0xff] %vm1017_vm5, %v3786_v20 }
 0x4f8   : > { %v4316_v38 = vpop.f32.mrf.mxu2  ;;  %2827 = vrot.lane.b32.xlu0 %v2741_v61, %s4949_s11 }
 0x4f9   : > { %v4317_v56 = vadd.f32 %v4316_v38, %v4204_v4  ;;  %3803 = vrot.lane.b32.xlu2 %v3717_v60, %s4950_s12 }
 0x4fa   : > { %3347 = vrot.lane.b32.xlu1 %v6769_v25, %s4948_s10  ;;  %v3076_v47 = vpop.permute.xlu0 %3075 }
 0x4fb   : > { %v4430_v53 = vadd.f32 %v6849_v2, %v4317_v56  ;;  %3157 = vst.msk [vmem:[#allocation4 + $0x150] sm:$0xff] %vm1017_vm5, %v3076_v47  ;;  %v3600_v48 = vpop.permute.xlu2 %3599 }
 0x4fc   : > { %v3596_v10 = vpop.permute.xlu1 %3595 }
 0x4fd   : > { %3677 = vst.msk [vmem:[#allocation4 + $0x150] sm:$0xff] %vm752_vm4, %v3596_v10  ;;  %v4523_v19 = vmul.f32 0.1, %v4430_v53  ;;  %v3991_v23 = vld [vmem:[#allocation4 + $0x140] sm:$0xff]  ;;  %v2744_v10 = vld [vmem:[#allocation2 + $0x158] sm:$0xff] }
 0x4fe   : > { %4351 = vmatmul.f32.gmra.mxu2 %v3991_v23  ;;  %v4558_v23 = vld [vmem:[%s5044_s9 + $0x20] sm:$0xff] }
 0x4ff   : > { %v4587_v27 = vadd.f32 %v4555_v58, %v4523_v19 }
 0x500   : > { %v4206_v24 = vpop.f32.mrf.mxu3  ;;  %v4319_v20 = vpop.f32.mrf.mxu2  ;;  %3093 = vrot.lane.b32.xlu0 %v6722_v11, %s4950_s12 }
 0x501   : > { %4619 = vst.msk [vmem:[%s7237_s17 + $0x8] sm:$0xff] %vm223_vm1, %v4587_v27  ;;  %v4207_v2 = vadd.f32 %v7215_v26, %v4206_v24  ;;  %2829 = vrot.lane.b32.xlu2 %v2742_v15, %s4949_s11 }
 0x502   : > { %3613 = vrot.lane.b32.xlu1 %v3716_v55, %s4949_s11  ;;  %v3332_v51 = vpop.permute.xlu0 %3331 }
 0x503   : > { %v4320_v62 = vadd.f32 %v4319_v20, %v4207_v2  ;;  %3413 = vst.msk [vmem:[#allocation4 + $0x158] sm:$0xff] %vm558_vm2, %v3332_v51  ;;  %v3792_v0 = vpop.permute.xlu2 %3791 }
 0x504   : > { %v3788_v32 = vpop.permute.xlu1 %3787  ;;  %v3993_v37 = vld [vmem:[#allocation4 + $0x150] sm:$0xff] }
 0x505   : > { %3869 = vst.msk [vmem:[#allocation4 + $0x158] sm:$0xff] %vm1017_vm5, %v3788_v32  ;;  %4241 = vmatmul.f32.gmra.mxu3 %v3993_v37  ;;  %v4433_v44 = vadd.f32 %v6868_v3, %v4320_v62 }
 0x507   : > { %v4524_v43 = vmul.f32 0.1, %v4433_v44 }
 0x508   : > { %3349 = vrot.lane.b32.xlu0 %v6790_v46, %s4948_s10 }
 0x509   : > { %v4588_v39 = vadd.f32 %v4556_v52, %v4524_v43  ;;  %3095 = vrot.lane.b32.xlu2 %v6739_v40, %s4950_s12 }
 0x50a   : > { %3805 = vrot.lane.b32.xlu1 %v3718_v50, %s4950_s12  ;;  %v3598_v41 = vpop.permute.xlu0 %3597 }
 0x50b   : > { %4620 = vst.msk [vmem:[%s7237_s17 + $0x10] sm:$0xff] %vm223_vm1, %v4588_v39  ;;  %v2818_v3 = vpop.permute.xlu2 %2817 }
 0x50c   : > { %v2814_v31 = vpop.permute.xlu1 %2813  ;;  %v3994_v18 = vld [vmem:[#allocation4 + $0x158] sm:$0xff]  ;;  %3678 = vst.msk [vmem:[#allocation4 + $0x168] sm:$0xff] %vm752_vm4, %v3598_v41 }
 0x50d   : > { %2894 = vst.msk [vmem:[#allocation4 + $0x170] sm:$0xff] %vm752_vm4, %v2814_v31  ;;  %4354 = vmatmul.f32.gmra.mxu2 %v3994_v18  ;;  %v3721_v18 = vld [vmem:[#allocation3 + $0xe0] sm:$0xff] }
 0x50e   : > { %3222 = vst.msk [vmem:[#allocation4 + $0x170] sm:$0xff] %vm223_vm1, %v6619_v16 }
 0x50f   : > { %3414 = vst.msk [vmem:[#allocation4 + $0x170] sm:$0xff] %vm558_vm2, %v3334_v21  ;;  %v4209_v36 = vpop.f32.mrf.mxu3 }
 0x510   : > { %2896 = vst.msk [vmem:[#allocation4 + $0x1a0] sm:$0xff] %vm752_vm4, %v2818_v3  ;;  %3615 = vrot.lane.b32.xlu0 %v3717_v60, %s4949_s11  ;;  %v4210_v6 = vadd.f32 %v7215_v26, %v4209_v36 }
 0x511   : > { %3224 = vst.msk [vmem:[#allocation4 + $0x1a0] sm:$0xff] %vm223_vm1, %v6651_v7  ;;  %3351 = vrot.lane.b32.xlu2 %v6805_v1, %s4948_s10 }
 0x512   : > { %2831 = vrot.lane.b32.xlu1 %v2743_v9, %s4949_s11  ;;  %v3790_v35 = vpop.permute.xlu0 %3789 }
 0x513   : > { %3870 = vst.msk [vmem:[#allocation4 + $0x170] sm:$0xff] %vm1017_vm5, %v3790_v35  ;;  %v3084_v28 = vpop.permute.xlu2 %3083  ;;  %v3996_v7 = vld [vmem:[#allocation4 + $0x168] sm:$0xff] }
 0x514   : > { %v3080_v16 = vpop.permute.xlu1 %3079  ;;  %3161 = vst.msk [vmem:[#allocation4 + $0x1b0] sm:$0xff] %vm1017_vm5, %v3084_v28  ;;  %4244 = vmatmul.f32.gmra.mxu3 %v3996_v7  ;;  %v4444_v28 = vpop.f32.mrf.mxu0 }
 0x515   : > { %3159 = vst.msk [vmem:[#allocation4 + $0x180] sm:$0xff] %vm1017_vm5, %v3080_v16 }
 0x516   : > { %3679 = vst.msk [vmem:[#allocation4 + $0x180] sm:$0xff] %vm752_vm4, %v3600_v48  ;;  %v4322_v55 = vpop.f32.mrf.mxu2  ;;  %v3720_v48 = vld [vmem:[#allocation3 + $0xd8] sm:$0xff] }
 0x517   : > { %v4323_v22 = vadd.f32 %v4322_v55, %v4210_v6  ;;  %v2746_v55 = vld [vmem:[#allocation2 + $0x170] sm:$0xff] }
 0x518   : > { %3807 = vrot.lane.b32.xlu0 %v3719_v54, %s4950_s12 }
 0x519   : > { %v4436_v45 = vadd.f32 %v6893_v33, %v4323_v22  ;;  %3617 = vrot.lane.b32.xlu2 %v3718_v50, %s4949_s11  ;;  %v4212_v61 = vpop.f32.mrf.mxu3  ;;  %v4559_v50 = vld [vmem:[%s5044_s9 + $0x28] sm:$0xff] }
 0x51a   : > { %3097 = vrot.lane.b32.xlu1 %v6756_v30, %s4950_s12  ;;  %v2816_v21 = vpop.permute.xlu0 %2815  ;;  %v3997_v57 = vld [vmem:[#allocation4 + $0x170] sm:$0xff]  ;;  %v4213_v47 = vadd.f32 %v7215_v26, %v4212_v61 }
 0x51b   : > { %v4525_v4 = vmul.f32 0.1, %v4436_v45  ;;  %2895 = vst.msk [vmem:[#allocation4 + $0x188] sm:$0xff] %vm752_vm4, %v2816_v21  ;;  %4357 = vmatmul.f32.gmra.mxu2 %v3997_v57  ;;  %v3340_v60 = vpop.permute.xlu2 %3339 }
 0x51c   : > { %v3336_v38 = vpop.permute.xlu1 %3335  ;;  %3223 = vst.msk [vmem:[#allocation4 + $0x188] sm:$0xff] %vm223_vm1, %v6635_v63 }
 0x51d   : > { %v3999_v33 = vld [vmem:[#allocation4 + $0x180] sm:$0xff]  ;;  %v4589_v56 = vadd.f32 %v4557_v12, %v4525_v4  ;;  %3415 = vst.msk [vmem:[#allocation4 + $0x188] sm:$0xff] %vm558_vm2, %v3336_v38 }
 0x51e   : > { %3871 = vst.msk [vmem:[#allocation4 + $0x188] sm:$0xff] %vm1017_vm5, %v3792_v0  ;;  %4247 = vmatmul.f32.gmra.mxu3 %v3999_v33  ;;  %v4447_v33 = vpop.f32.mrf.mxu0 }
 0x51f   : > { %4621 = vst.msk [vmem:[%s7237_s17 + $0x18] sm:$0xff] %vm223_vm1, %v4589_v56 }
 0x520   : > { %v4325_v53 = vpop.f32.mrf.mxu2  ;;  %2833 = vrot.lane.b32.xlu0 %v2744_v10, %s4949_s11 }
 0x521   : > { %v4326_v58 = vadd.f32 %v4325_v53, %v4213_v47  ;;  %3809 = vrot.lane.b32.xlu2 %v3720_v48, %s4950_s12 }
 0x522   : > { %3353 = vrot.lane.b32.xlu1 %v6823_v13, %s4948_s10  ;;  %v3082_v19 = vpop.permute.xlu0 %3081 }
 0x523   : > { %v4439_v63 = vadd.f32 %v6916_v14, %v4326_v58  ;;  %3160 = vst.msk [vmem:[#allocation4 + $0x198] sm:$0xff] %vm1017_vm5, %v3082_v19  ;;  %v3606_v20 = vpop.permute.xlu2 %3605  ;;  %v2745_v14 = vld [vmem:[#allocation2 + $0x168] sm:$0xff]  ;;  %v4561_v58 = vld [vmem:[%s5044_s9 + $0x38] sm:$0xff] }
 0x524   : > { %v3602_v27 = vpop.permute.xlu1 %3601 }
 0x525   : > { %v4526_v24 = vmul.f32 0.1, %v4439_v63  ;;  %3680 = vst.msk [vmem:[#allocation4 + $0x198] sm:$0xff] %vm752_vm4, %v3602_v27  ;;  %v4000_v15 = vld [vmem:[#allocation4 + $0x188] sm:$0xff] }
 0x526   : > { %v4215_v51 = vpop.f32.mrf.mxu3  ;;  %4360 = vmatmul.f32.gmra.mxu2 %v4000_v15  ;;  %v2747_v15 = vld [vmem:[#allocation2 + $0x180] sm:$0xff] }
 0x527   : > { %v4590_v2 = vadd.f32 %v4558_v23, %v4526_v24  ;;  %v4216_v62 = vadd.f32 %v7215_v26, %v4215_v51  ;;  %v7375_v51 = vld [vmem:[#allocation3 + $0x110] sm:$0xff] }
 0x528   : > { %3099 = vrot.lane.b32.xlu0 %v6769_v25, %s4950_s12 }
 0x529   : > { %4622 = vst.msk [vmem:[%s7237_s17 + $0x20] sm:$0xff] %vm223_vm1, %v4590_v2  ;;  %v4328_v32 = vpop.f32.mrf.mxu2  ;;  %2835 = vrot.lane.b32.xlu2 %v2745_v14, %s4949_s11  ;;  %v4450_v14 = vpop.f32.mrf.mxu0 }
 0x52a   : > { %v4329_v37 = vadd.f32 %v4328_v32, %v4216_v62  ;;  %3619 = vrot.lane.b32.xlu1 %v3719_v54, %s4949_s11  ;;  %v3338_v0 = vpop.permute.xlu0 %3337  ;;  %v3465_v62 = vld [vmem:[#allocation2 + $0x19a] sm:$0xff] }
 0x52b   : > { %3416 = vst.msk [vmem:[#allocation4 + $0x1a0] sm:$0xff] %vm558_vm2, %v3338_v0  ;;  %v7326_v39 = vpop.permute.xlu2 %3797 }
 0x52c   : > { %v4442_v44 = vadd.f32 %v6957_v34, %v4329_v37  ;;  %v3794_v52 = vpop.permute.xlu1 %3793  ;;  %v4002_v43 = vld [vmem:[#allocation4 + $0x198] sm:$0xff]  ;;  %3501 = vst.msk [vmem:[#allocation3 + $0x110] sm:$0xff] %vm223_vm1, %v3465_v62 }
 0x52d   : > { %3872 = vst.msk [vmem:[#allocation4 + $0x1a0] sm:$0xff] %vm1017_vm5, %v3794_v52  ;;  %4250 = vmatmul.f32.gmra.mxu3 %v4002_v43  ;;  %v4562_v52 = vld [vmem:[%s5044_s9 + $0x40] sm:$0xff] }
 0x52e   : > { %v4527_v41 = vmul.f32 0.1, %v4442_v44 }
 0x530   : > { %v4591_v31 = vadd.f32 %v4559_v50, %v4527_v41  ;;  %3355 = vrot.lane.b32.xlu0 %v6839_v8, %s4948_s10  ;;  %v4218_v3 = vpop.f32.mrf.mxu3 }
 0x531   : > { %3101 = vrot.lane.b32.xlu2 %v6790_v46, %s4950_s12  ;;  %v4219_v16 = vadd.f32 %v7215_v26, %v4218_v3  ;;  %v7393_v3 = vld [vmem:[#allocation3 + $0x118] sm:$0xff] }
 0x532   : > { %4623 = vst.msk [vmem:[%s7237_s17 + $0x28] sm:$0xff] %vm223_vm1, %v4591_v31  ;;  %3811 = vrot.lane.b32.xlu1 %v3721_v18, %s4950_s12  ;;  %v3604_v34 = vpop.permute.xlu0 %3603  ;;  %v2748_v31 = vld [vmem:[#allocation2 + $0x188] sm:$0xff] }
 0x533   : > { %3681 = vst.msk [vmem:[#allocation4 + $0x1b0] sm:$0xff] %vm752_vm4, %v3604_v34  ;;  %v2824_v35 = vpop.permute.xlu2 %2823  ;;  %v3466_v34 = vld [vmem:[#allocation2 + $0x1a2] sm:$0xff] }
 0x534   : > { %v2820_v9 = vpop.permute.xlu1 %2819  ;;  %v4003_v36 = vld [vmem:[#allocation4 + $0x1a0] sm:$0xff]  ;;  %2899 = vst.msk [vmem:[#allocation4 + $0x1e8] sm:$0xff] %vm752_vm4, %v2824_v35 }
 0x535   : > { %2897 = vst.msk [vmem:[#allocation4 + $0x1b8] sm:$0xff] %vm752_vm4, %v2820_v9  ;;  %4363 = vmatmul.f32.gmra.mxu2 %v4003_v36 }
 0x536   : > { %3225 = vst.msk [vmem:[#allocation4 + $0x1b8] sm:$0xff] %vm223_vm1, %v6665_v49  ;;  %v4331_v6 = vpop.f32.mrf.mxu2  ;;  %v4560_v49 = vld [vmem:[%s5044_s9 + $0x30] sm:$0xff] }
 0x537   : > { %3417 = vst.msk [vmem:[#allocation4 + $0x1b8] sm:$0xff] %vm558_vm2, %v3340_v60  ;;  %v4332_v7 = vadd.f32 %v4331_v6, %v4219_v16  ;;  %v3722_v60 = vld [vmem:[#allocation3 + $0xe8] sm:$0xff]  ;;  %v4453_v6 = vpop.f32.mrf.mxu0 }
 0x538   : > { %3227 = vst.msk [vmem:[#allocation4 + $0x1e8] sm:$0xff] %vm223_vm1, %v6703_v5  ;;  %3621 = vrot.lane.b32.xlu0 %v3720_v48, %s4949_s11 }
 0x539   : > { %v4445_v22 = vadd.f32 %v4444_v28, %v4332_v7  ;;  %3357 = vrot.lane.b32.xlu2 %v6861_v59, %s4948_s10  ;;  %v4221_v21 = vpop.f32.mrf.mxu3  ;;  %3502 = vst.msk [vmem:[#allocation3 + $0x118] sm:$0xff] %vm223_vm1, %v3466_v34 }
 0x53a   : > { %2837 = vrot.lane.b32.xlu1 %v2746_v55, %s4949_s11  ;;  %v3796_v54 = vpop.permute.xlu0 %3795  ;;  %v4005_v45 = vld [vmem:[#allocation4 + $0x1b0] sm:$0xff]  ;;  %v4222_v61 = vadd.f32 %v7215_v26, %v4221_v21 }
 0x53b   : > { %v4528_v12 = vmul.f32 0.1, %v4445_v22  ;;  %3873 = vst.msk [vmem:[#allocation4 + $0x1b8] sm:$0xff] %vm1017_vm5, %v3796_v54  ;;  %4253 = vmatmul.f32.gmra.mxu3 %v4005_v45  ;;  %v3090_v5 = vpop.permute.xlu2 %3089  ;;  %v3724_v22 = vld [vmem:[#allocation3 + $0xf8] sm:$0xff] }
 0x53c   : > { %v3086_v57 = vpop.permute.xlu1 %3085  ;;  %3164 = vst.msk [vmem:[#allocation4 + $0x1f8] sm:$0xff] %vm1017_vm5, %v3090_v5  ;;  %v4563_v45 = vld [vmem:[%s5044_s9 + $0x48] sm:$0xff] }
 0x53d   : > { %3162 = vst.msk [vmem:[#allocation4 + $0x1c8] sm:$0xff] %vm1017_vm5, %v3086_v57  ;;  %v4592_v4 = vadd.f32 %v4560_v49, %v4528_v12 }
 0x53e   : > { %3682 = vst.msk [vmem:[#allocation4 + $0x1c8] sm:$0xff] %vm752_vm4, %v3606_v20 }
 0x53f   : > { %4624 = vst.msk [vmem:[%s7237_s17 + $0x30] sm:$0xff] %vm223_vm1, %v4592_v4 }
 0x540   : > { %v4334_v38 = vpop.f32.mrf.mxu2  ;;  %3813 = vrot.lane.b32.xlu0 %v3722_v60, %s4950_s12  ;;  %v3918_v54 = vld [vmem:[#allocation3 + $0x118] sm:$0xff] }
 0x541   : > { %v4335_v56 = vadd.f32 %v4334_v38, %v4222_v61  ;;  %3623 = vrot.lane.b32.xlu2 %v3721_v18, %s4949_s11  ;;  %3950 = vst.msk [vmem:[#allocation4 + $0x2f8] sm:$0xff] %vm223_vm1, %v3918_v54 }
 0x542   : > { %3103 = vrot.lane.b32.xlu1 %v6805_v1, %s4950_s12  ;;  %v2822_v53 = vpop.permute.xlu0 %2821  ;;  %v4006_v10 = vld [vmem:[#allocation4 + $0x1b8] sm:$0xff] }
 0x543   : > { %v4448_v47 = vadd.f32 %v4447_v33, %v4335_v56  ;;  %2898 = vst.msk [vmem:[#allocation4 + $0x1d0] sm:$0xff] %vm752_vm4, %v2822_v53  ;;  %4366 = vmatmul.f32.gmra.mxu2 %v4006_v10  ;;  %v7364_v19 = vpop.permute.xlu2 %3345  ;;  %v2749_v33 = vld [vmem:[#allocation2 + $0x198] sm:$0xff] }
 0x544   : > { %v3342_v48 = vpop.permute.xlu1 %3341  ;;  %3226 = vst.msk [vmem:[#allocation4 + $0x1d0] sm:$0xff] %vm223_vm1, %v6685_v17  ;;  %v7373_v17 = vld [vmem:[#allocation3 + $0xf0] sm:$0xff] }
 0x545   : > { %v4529_v63 = vmul.f32 0.1, %v4448_v47  ;;  %v4008_v23 = vld [vmem:[#allocation4 + $0x1c8] sm:$0xff]  ;;  %3418 = vst.msk [vmem:[#allocation4 + $0x1d0] sm:$0xff] %vm558_vm2, %v3342_v48  ;;  %v4456_v47 = vpop.f32.mrf.mxu0  ;;  %v4564_v48 = vld [vmem:[%s5044_s9 + $0x50] sm:$0xff] }
 0x546   : > { %4256 = vmatmul.f32.gmra.mxu3 %v4008_v23  ;;  %3874 = vst.msk [vmem:[#allocation4 + $0x1d0] sm:$0xff] %vm1017_vm5, %v7326_v39  ;;  %v4224_v24 = vpop.f32.mrf.mxu3 }
 0x547   : > { %v4593_v27 = vadd.f32 %v4561_v58, %v4529_v63  ;;  %v4225_v20 = vadd.f32 %v7215_v26, %v4224_v24 }
 0x548   : > { %2839 = vrot.lane.b32.xlu0 %v2747_v15, %s4949_s11 }
 0x549   : > { %4625 = vst.msk [vmem:[%s7237_s17 + $0x38] sm:$0xff] %vm223_vm1, %v4593_v27  ;;  %v4337_v2 = vpop.f32.mrf.mxu2  ;;  %3815 = vrot.lane.b32.xlu2 %v7373_v17, %s4950_s12 }
 0x54a   : > { %v4338_v32 = vadd.f32 %v4337_v2, %v4225_v20  ;;  %3359 = vrot.lane.b32.xlu1 %v6873_v29, %s4948_s10  ;;  %v3088_v37 = vpop.permute.xlu0 %3087  ;;  %v3725_v20 = vld [vmem:[#allocation3 + $0x100] sm:$0xff] }
 0x54b   : > { %3163 = vst.msk [vmem:[#allocation4 + $0x1e0] sm:$0xff] %vm1017_vm5, %v3088_v37  ;;  %v7385_v43 = vpop.permute.xlu2 %3611  ;;  %v4565_v37 = vld [vmem:[%s5044_s9 + $0x58] sm:$0xff] }
 0x54c   : > { %v4451_v0 = vadd.f32 %v4450_v14, %v4338_v32  ;;  %v3608_v44 = vpop.permute.xlu1 %3607 }
 0x54d   : > { %3683 = vst.msk [vmem:[#allocation4 + $0x1e0] sm:$0xff] %vm752_vm4, %v3608_v44  ;;  %v4009_v39 = vld [vmem:[#allocation4 + $0x1d0] sm:$0xff] }
 0x54e   : > { %v4530_v50 = vmul.f32 0.1, %v4451_v0  ;;  %4369 = vmatmul.f32.gmra.mxu2 %v4009_v39  ;;  %v3726_v39 = vld [vmem:[#allocation3 + $0x108] sm:$0xff] }
 0x550   : > { %v4594_v41 = vadd.f32 %v4562_v52, %v4530_v50  ;;  %3105 = vrot.lane.b32.xlu0 %v6823_v13, %s4950_s12  ;;  %v4227_v18 = vpop.f32.mrf.mxu3 }
 0x551   : > { %2841 = vrot.lane.b32.xlu2 %v2748_v31, %s4949_s11  ;;  %v4228_v28 = vadd.f32 %v7215_v26, %v4227_v18 }
 0x552   : > { %4626 = vst.msk [vmem:[%s7237_s17 + $0x40] sm:$0xff] %vm223_vm1, %v4594_v41  ;;  %3625 = vrot.lane.b32.xlu1 %v3722_v60, %s4949_s11  ;;  %v3344_v9 = vpop.permute.xlu0 %3343 }
 0x553   : > { %3419 = vst.msk [vmem:[#allocation4 + $0x1e8] sm:$0xff] %vm558_vm2, %v3344_v9  ;;  %v7398_v16 = vpop.permute.xlu2 %3803 }
 0x554   : > { %v3800_v36 = vpop.permute.xlu1 %3799  ;;  %v4011_v35 = vld [vmem:[#allocation4 + $0x1e0] sm:$0xff] }
 0x555   : > { %3875 = vst.msk [vmem:[#allocation4 + $0x1e8] sm:$0xff] %vm1017_vm5, %v3800_v36  ;;  %4259 = vmatmul.f32.gmra.mxu3 %v4011_v35 }
 0x556   : > { %v4340_v7 = vpop.f32.mrf.mxu2 }
 0x557   : > { %v4341_v55 = vadd.f32 %v4340_v7, %v4228_v28 }
 0x558   : > { %3361 = vrot.lane.b32.xlu0 %v6885_v42, %s4948_s10 }
 0x559   : > { %v4454_v49 = vadd.f32 %v4453_v6, %v4341_v55  ;;  %3107 = vrot.lane.b32.xlu2 %v6839_v8, %s4950_s12  ;;  %v4230_v57 = vpop.f32.mrf.mxu3  ;;  %v4566_v6 = vld [vmem:[%s5044_s9 + $0x60] sm:$0xff] }
 0x55a   : > { %3817 = vrot.lane.b32.xlu1 %v3724_v22, %s4950_s12  ;;  %v3610_v12 = vpop.permute.xlu0 %3609  ;;  %v4231_v60 = vadd.f32 %v7215_v26, %v4230_v57 }
 0x55b   : > { %v4531_v21 = vmul.f32 0.1, %v4454_v49  ;;  %3684 = vst.msk [vmem:[#allocation4 + $0x1f8] sm:$0xff] %vm752_vm4, %v3610_v12  ;;  %v2830_v61 = vpop.permute.xlu2 %2829 }
 0x55c   : > { %v2826_v5 = vpop.permute.xlu1 %2825  ;;  %v4012_v4 = vld [vmem:[#allocation4 + $0x1e8] sm:$0xff]  ;;  %2902 = vst.msk [vmem:[#allocation4 + $0x230] sm:$0xff] %vm752_vm4, %v2830_v61 }
 0x55d   : > { %2900 = vst.msk [vmem:[#allocation4 + $0x200] sm:$0xff] %vm752_vm4, %v2826_v5  ;;  %4372 = vmatmul.f32.gmra.mxu2 %v4012_v4  ;;  %v4595_v38 = vadd.f32 %v4563_v45, %v4531_v21 }
 0x55e   : > { %3228 = vst.msk [vmem:[#allocation4 + $0x200] sm:$0xff] %vm223_vm1, %v6722_v11 }
 0x55f   : > { %3420 = vst.msk [vmem:[#allocation4 + $0x200] sm:$0xff] %vm558_vm2, %v7364_v19 }
 0x560   : > { %4627 = vst.msk [vmem:[%s7237_s17 + $0x48] sm:$0xff] %vm223_vm1, %v4595_v38  ;;  %v4343_v56 = vpop.f32.mrf.mxu2  ;;  %3627 = vrot.lane.b32.xlu0 %v7373_v17, %s4949_s11  ;;  %v4459_v17 = vpop.f32.mrf.mxu0 }
 0x561   : > { %v4344_v53 = vadd.f32 %v4343_v56, %v4231_v60  ;;  %3230 = vst.msk [vmem:[#allocation4 + $0x230] sm:$0xff] %vm223_vm1, %v6756_v30  ;;  %3363 = vrot.lane.b32.xlu2 %v7375_v51, %s4948_s10  ;;  %v4567_v56 = vld [vmem:[%s5044_s9 + $0x68] sm:$0xff] }
 0x562   : > { %2843 = vrot.lane.b32.xlu1 %v2749_v33, %s4949_s11  ;;  %v3802_v10 = vpop.permute.xlu0 %3801  ;;  %v4014_v58 = vld [vmem:[#allocation4 + $0x1f8] sm:$0xff] }
 0x563   : > { %v4457_v11 = vadd.f32 %v4456_v47, %v4344_v53  ;;  %3876 = vst.msk [vmem:[#allocation4 + $0x200] sm:$0xff] %vm1017_vm5, %v3802_v10  ;;  %4262 = vmatmul.f32.gmra.mxu3 %v4014_v58  ;;  %v3096_v23 = vpop.permute.xlu2 %3095 }
 0x564   : > { %v3092_v63 = vpop.permute.xlu1 %3091  ;;  %3167 = vst.msk [vmem:[#allocation4 + $0x240] sm:$0xff] %vm1017_vm5, %v3096_v23 }
 0x565   : > { %v4532_v19 = vmul.f32 0.1, %v4457_v11  ;;  %3165 = vst.msk [vmem:[#allocation4 + $0x210] sm:$0xff] %vm1017_vm5, %v3092_v63 }
 0x566   : > { %3685 = vst.msk [vmem:[#allocation4 + $0x210] sm:$0xff] %vm752_vm4, %v7385_v43  ;;  %v4233_v27 = vpop.f32.mrf.mxu3  ;;  %v2750_v43 = vld [vmem:[#allocation2 + $0x1a0] sm:$0xff] }
 0x567   : > { %v4596_v30 = vadd.f32 %v4564_v48, %v4532_v19  ;;  %v4234_v24 = vadd.f32 %v7215_v26, %v4233_v27 }
 0x568   : > { %3819 = vrot.lane.b32.xlu0 %v3725_v20, %s4950_s12  ;;  %v4568_v20 = vld [vmem:[%s5044_s9 + $0x70] sm:$0xff] }
 0x569   : > { %4628 = vst.msk [vmem:[%s7237_s17 + $0x50] sm:$0xff] %vm223_vm1, %v4596_v30  ;;  %v4346_v15 = vpop.f32.mrf.mxu2  ;;  %3629 = vrot.lane.b32.xlu2 %v3724_v22, %s4949_s11 }
 0x56a   : > { %v4347_v2 = vadd.f32 %v4346_v15, %v4234_v24  ;;  %3109 = vrot.lane.b32.xlu1 %v6861_v59, %s4950_s12  ;;  %v2828_v51 = vpop.permute.xlu0 %2827  ;;  %v4015_v62 = vld [vmem:[#allocation4 + $0x200] sm:$0xff] }
 0x56b   : > { %2901 = vst.msk [vmem:[#allocation4 + $0x218] sm:$0xff] %vm752_vm4, %v2828_v51  ;;  %4375 = vmatmul.f32.gmra.mxu2 %v4015_v62  ;;  %v3352_v0 = vpop.permute.xlu2 %3351 }
 0x56c   : > { %v4460_v32 = vadd.f32 %v4459_v17, %v4347_v2  ;;  %v3348_v14 = vpop.permute.xlu1 %3347  ;;  %3229 = vst.msk [vmem:[#allocation4 + $0x218] sm:$0xff] %vm223_vm1, %v6739_v40 }
 0x56d   : > { %v4017_v44 = vld [vmem:[#allocation4 + $0x210] sm:$0xff]  ;;  %3421 = vst.msk [vmem:[#allocation4 + $0x218] sm:$0xff] %vm558_vm2, %v3348_v14 }
 0x56e   : > { %v4533_v52 = vmul.f32 0.1, %v4460_v32  ;;  %4265 = vmatmul.f32.gmra.mxu3 %v4017_v44  ;;  %3877 = vst.msk [vmem:[#allocation4 + $0x218] sm:$0xff] %vm1017_vm5, %v7398_v16  ;;  %v4462_v16 = vpop.f32.mrf.mxu0 }
 0x570   : > { %v4597_v50 = vadd.f32 %v4565_v37, %v4533_v52  ;;  %2845 = vrot.lane.b32.xlu0 %v2750_v43, %s4949_s11  ;;  %v4236_v40 = vpop.f32.mrf.mxu3 }
 0x571   : > { %3821 = vrot.lane.b32.xlu2 %v3726_v39, %s4950_s12  ;;  %v4237_v34 = vadd.f32 %v7215_v26, %v4236_v40  ;;  %v4569_v40 = vld [vmem:[%s5044_s9 + $0x78] sm:$0xff]  ;;  %s4805_s12 = sshll.u32 %s5004_s22, 8  ;;  %s4651_s22 = scalar_lea.sflag [#allocation6], %s215_s15 }
 0x572   : > { %4629 = vst.msk [vmem:[%s7237_s17 + $0x58] sm:$0xff] %vm223_vm1, %v4597_v50  ;;  %3365 = vrot.lane.b32.xlu1 %v7393_v3, %s4948_s10  ;;  %v3094_v41 = vpop.permute.xlu0 %3093  ;;  %s4662_s26 = scalar_lea.hbm %s7637_s5, %s4805_s12 }
 0x573   : > { %3166 = vst.msk [vmem:[#allocation4 + $0x228] sm:$0xff] %vm1017_vm5, %v3094_v41  ;;  %v3618_v18 = vpop.permute.xlu2 %3617  ;;  %s4665_s6 = sshll.u32 %s4662_s26, 4  ;;  %s4666_s6 = int_to_ptr.hbm [resolvable:$true] %s4665_s6 }
 0x574   : > { %v3614_v31 = vpop.permute.xlu1 %3613  ;;  %s4897_s7 = sshra.s32 %s4666_s6, 4  ;;  %s4898_s7 = int_to_ptr.hbm [resolvable:$true] %s4897_s7 }
 0x575   : > { %3686 = vst.msk [vmem:[#allocation4 + $0x228] sm:$0xff] %vm752_vm4, %v3614_v31  ;;  %v4018_v9 = vld [vmem:[#allocation4 + $0x218] sm:$0xff]  ;;  %s4899_s8 = scalar_lea.hbm %s4898_s7, 256  ;;  %p4904_p0 = scmp.lt.s32.totalorder %s4898_s7, %s7637_s5 }
 0x576   : > { %v4349_v36 = vpop.f32.mrf.mxu2  ;;  %4378 = vmatmul.f32.gmra.mxu2 %v4018_v9  ;;  %v4465_v4 = vpop.f32.mrf.mxu0  ;;  %p4900_p11 = scmp.ne.s32.totalorder %s4898_s7, %s4899_s8  ;;  %p4905_p1 = scmp.lt.s32.totalorder %s4903_s16, %s4899_s8 }
 0x577   : > { %v4350_v35 = vadd.f32 %v4349_v36, %v4237_v34 }
 0x578   : > { %p4901_p12 = pnand %p4900_p11, %p5021_p5  ;;  %p4906_p2 = por %p4905_p1, %p4904_p0 }
 0x579   : > { %v4463_v28 = vadd.f32 %v4462_v16, %v4350_v35  ;;  %v4239_v45 = vpop.f32.mrf.mxu3 }
 0x57a   : > { %v3350_v7 = vpop.permute.xlu0 %3349  ;;  %v4240_v12 = vadd.f32 %v7215_v26, %v4239_v45  ;;  %v4570_v45 = vld [vmem:[%s5044_s9 + $0x80] sm:$0xff]  ;;  %p4902_p13 = pneg %p4901_p12 }
 0x57b   : > { %v4534_v3 = vmul.f32 0.1, %v4463_v28  ;;  %3422 = vst.msk [vmem:[#allocation4 + $0x230] sm:$0xff] %vm558_vm2, %v3350_v7  ;;  %v3810_v49 = vpop.permute.xlu2 %3809 }
 0x57c   : > { %v3806_v55 = vpop.permute.xlu1 %3805  ;;  %v4020_v22 = vld [vmem:[#allocation4 + $0x228] sm:$0xff]  ;;  %p4907_p3 = pnand %p4906_p2, %p4902_p13 }
 0x57d   : > { %3878 = vst.msk [vmem:[#allocation4 + $0x230] sm:$0xff] %vm1017_vm5, %v3806_v55  ;;  %4268 = vmatmul.f32.gmra.mxu3 %v4020_v22  ;;  %v4598_v54 = vadd.f32 %v4566_v6, %v4534_v3 }
 0x57e   : > { %v4468_v23 = vpop.f32.mrf.mxu0 }
 0x57f   : > { %4630 = vst.msk [vmem:[%s7237_s17 + $0x60] sm:$0xff] %vm223_vm1, %v4598_v54 }
 0x581   : > { %v4352_v21 = vpop.f32.mrf.mxu2 }
 0x582   : > { %v4353_v57 = vadd.f32 %v4352_v21, %v4240_v12  ;;  %v3616_v5 = vpop.permute.xlu0 %3615 }
 0x583   : > { %3687 = vst.msk [vmem:[#allocation4 + $0x240] sm:$0xff] %vm752_vm4, %v3616_v5  ;;  %v2836_v33 = vpop.permute.xlu2 %2835 }
 0x584   : > { %v2832_v61 = vpop.permute.xlu1 %2831  ;;  %v4021_v38 = vld [vmem:[#allocation4 + $0x230] sm:$0xff]  ;;  %v4466_v60 = vadd.f32 %v4465_v4, %v4353_v57  ;;  %2905 = vst.msk [vmem:[#allocation4 + $0x278] sm:$0xff] %vm752_vm4, %v2836_v33 }
 0x585   : > { %2903 = vst.msk [vmem:[#allocation4 + $0x248] sm:$0xff] %vm752_vm4, %v2832_v61  ;;  %4381 = vmatmul.f32.gmra.mxu2 %v4021_v38 }
 0x586   : > { %3231 = vst.msk [vmem:[#allocation4 + $0x248] sm:$0xff] %vm223_vm1, %v6769_v25  ;;  %v4535_v47 = vmul.f32 0.1, %v4466_v60  ;;  %v4471_v50 = vpop.f32.mrf.mxu0 }
 0x587   : > { %3423 = vst.msk [vmem:[#allocation4 + $0x248] sm:$0xff] %vm558_vm2, %v3352_v0 }
 0x588   : > { %v4599_v53 = vadd.f32 %v4567_v56, %v4535_v47  ;;  %3233 = vst.msk [vmem:[#allocation4 + $0x278] sm:$0xff] %vm223_vm1, %v6805_v1  ;;  %v4242_v58 = vpop.f32.mrf.mxu3 }
 0x589   : > { %v4243_v63 = vadd.f32 %v7215_v26, %v4242_v58 }
 0x58a   : > { %4631 = vst.msk [vmem:[%s7237_s17 + $0x68] sm:$0xff] %vm223_vm1, %v4599_v53  ;;  %v3808_v11 = vpop.permute.xlu0 %3807  ;;  %v4023_v10 = vld [vmem:[#allocation4 + $0x240] sm:$0xff] }
 0x58b   : > { %3879 = vst.msk [vmem:[#allocation4 + $0x248] sm:$0xff] %vm1017_vm5, %v3808_v11  ;;  %4271 = vmatmul.f32.gmra.mxu3 %v4023_v10  ;;  %v3102_v25 = vpop.permute.xlu2 %3101  ;;  %v4571_v11 = vld [vmem:[%s5044_s9 + $0x88] sm:$0xff] }
 0x58c   : > { %v3098_v48 = vpop.permute.xlu1 %3097  ;;  %3170 = vst.msk [vmem:[#allocation4 + $0x288] sm:$0xff] %vm1017_vm5, %v3102_v25 }
 0x58d   : > { %3168 = vst.msk [vmem:[#allocation4 + $0x258] sm:$0xff] %vm1017_vm5, %v3098_v48 }
 0x58e   : > { %3688 = vst.msk [vmem:[#allocation4 + $0x258] sm:$0xff] %vm752_vm4, %v3618_v18  ;;  %v4474_v3 = vpop.f32.mrf.mxu0 }
 0x590   : > { %v4355_v1 = vpop.f32.mrf.mxu2 }
 0x591   : > { %v4356_v19 = vadd.f32 %v4355_v1, %v4243_v63 }
 0x592   : > { %v2834_v27 = vpop.permute.xlu0 %2833  ;;  %v4024_v24 = vld [vmem:[#allocation4 + $0x248] sm:$0xff] }
 0x593   : > { %v4469_v30 = vadd.f32 %v4468_v23, %v4356_v19  ;;  %2904 = vst.msk [vmem:[#allocation4 + $0x260] sm:$0xff] %vm752_vm4, %v2834_v27  ;;  %4384 = vmatmul.f32.gmra.mxu2 %v4024_v24  ;;  %v3358_v17 = vpop.permute.xlu2 %3357 }
 0x594   : > { %v3354_v15 = vpop.permute.xlu1 %3353  ;;  %3232 = vst.msk [vmem:[#allocation4 + $0x260] sm:$0xff] %vm223_vm1, %v6790_v46 }
 0x595   : > { %v4536_v2 = vmul.f32 0.1, %v4469_v30  ;;  %v4026_v51 = vld [vmem:[#allocation4 + $0x258] sm:$0xff]  ;;  %3424 = vst.msk [vmem:[#allocation4 + $0x260] sm:$0xff] %vm558_vm2, %v3354_v15 }
 0x596   : > { %4274 = vmatmul.f32.gmra.mxu3 %v4026_v51  ;;  %3880 = vst.msk [vmem:[#allocation4 + $0x260] sm:$0xff] %vm1017_vm5, %v3810_v49  ;;  %v4477_v33 = vpop.f32.mrf.mxu0 }
 0x597   : > { %v4600_v62 = vadd.f32 %v4568_v20, %v4536_v2  ;;  %v4245_v32 = vpop.f32.mrf.mxu3  ;;  %v3917_v20 = vld [vmem:[#allocation3 + $0x110] sm:$0xff]  ;;  %v4572_v2 = vld [vmem:[%s5044_s9 + $0x90] sm:$0xff] }
 0x598   : > { %v4246_v46 = vadd.f32 %v7215_v26, %v4245_v32  ;;  %3949 = vst.msk [vmem:[#allocation4 + $0x2e0] sm:$0xff] %vm223_vm1, %v3917_v20 }
 0x599   : > { %4632 = vst.msk [vmem:[%s7237_s17 + $0x70] sm:$0xff] %vm223_vm1, %v4600_v62 }
 0x59a   : > { %v3100_v14 = vpop.permute.xlu0 %3099 }
 0x59b   : > { %3169 = vst.msk [vmem:[#allocation4 + $0x270] sm:$0xff] %vm1017_vm5, %v3100_v14  ;;  %v3624_v0 = vpop.permute.xlu2 %3623 }
 0x59c   : > { %v3620_v37 = vpop.permute.xlu1 %3619 }
 0x59d   : > { %3689 = vst.msk [vmem:[#allocation4 + $0x270] sm:$0xff] %vm752_vm4, %v3620_v37  ;;  %v4027_v44 = vld [vmem:[#allocation4 + $0x260] sm:$0xff] }
 0x59e   : > { %v4358_v52 = vpop.f32.mrf.mxu2  ;;  %4387 = vmatmul.f32.gmra.mxu2 %v4027_v44  ;;  %v4480_v24 = vpop.f32.mrf.mxu0 }
 0x59f   : > { %v4359_v43 = vadd.f32 %v4358_v52, %v4246_v46  ;;  %v4043_v44 = vld [vmem:[#allocation4 + $0x2e0] sm:$0xff] }
 0x5a0   : > { %4797 = vmatmul.msk.f32.gmra.mxu0 %vm223_vm1, %v4043_v44 }
 0x5a1   : > { %v4472_v39 = vadd.f32 %v4471_v50, %v4359_v43  ;;  %v4248_v35 = vpop.f32.mrf.mxu3 }
 0x5a2   : > { %v3356_v41 = vpop.permute.xlu0 %3355  ;;  %v4249_v16 = vadd.f32 %v7215_v26, %v4248_v35 }
 0x5a3   : > { %v4537_v31 = vmul.f32 0.1, %v4472_v39  ;;  %3425 = vst.msk [vmem:[#allocation4 + $0x278] sm:$0xff] %vm558_vm2, %v3356_v41  ;;  %v3816_v9 = vpop.permute.xlu2 %3815 }
 0x5a4   : > { %v3812_v18 = vpop.permute.xlu1 %3811  ;;  %v4029_v34 = vld [vmem:[#allocation4 + $0x270] sm:$0xff] }
 0x5a5   : > { %3881 = vst.msk [vmem:[#allocation4 + $0x278] sm:$0xff] %vm1017_vm5, %v3812_v18  ;;  %4277 = vmatmul.f32.gmra.mxu3 %v4029_v34  ;;  %v4601_v36 = vadd.f32 %v4569_v40, %v4537_v31  ;;  %v4573_v18 = vld [vmem:[%s5044_s9 + $0x98] sm:$0xff] }
 0x5a6   : > { %v4483_v39 = vpop.f32.mrf.mxu0 }
 0x5a7   : > { %4633 = vst.msk [vmem:[%s7237_s17 + $0x78] sm:$0xff] %vm223_vm1, %v4601_v36 }
 0x5a9   : > { %v4361_v28 = vpop.f32.mrf.mxu2 }
 0x5aa   : > { %v4362_v6 = vadd.f32 %v4361_v28, %v4249_v16  ;;  %v3622_v7 = vpop.permute.xlu0 %3621 }
 0x5ab   : > { %3690 = vst.msk [vmem:[#allocation4 + $0x288] sm:$0xff] %vm752_vm4, %v3622_v7  ;;  %v2842_v54 = vpop.permute.xlu2 %2841 }
 0x5ac   : > { %v2838_v55 = vpop.permute.xlu1 %2837  ;;  %v4030_v22 = vld [vmem:[#allocation4 + $0x278] sm:$0xff]  ;;  %v4475_v49 = vadd.f32 %v4474_v3, %v4362_v6  ;;  %2908 = vst.msk [vmem:[#allocation4 + $0x2c0] sm:$0xff] %vm752_vm4, %v2842_v54 }
 0x5ad   : > { %2906 = vst.msk [vmem:[#allocation4 + $0x290] sm:$0xff] %vm752_vm4, %v2838_v55  ;;  %4390 = vmatmul.f32.gmra.mxu2 %v4030_v22 }
 0x5ae   : > { %3234 = vst.msk [vmem:[#allocation4 + $0x290] sm:$0xff] %vm223_vm1, %v6823_v13  ;;  %v4538_v12 = vmul.f32 0.1, %v4475_v49  ;;  %v4486_v55 = vpop.f32.mrf.mxu0 }
 0x5af   : > { %3426 = vst.msk [vmem:[#allocation4 + $0x290] sm:$0xff] %vm558_vm2, %v3358_v17 }
 0x5b0   : > { %v4602_v21 = vadd.f32 %v4570_v45, %v4538_v12  ;;  %3236 = vst.msk [vmem:[#allocation4 + $0x2c0] sm:$0xff] %vm223_vm1, %v6861_v59  ;;  %v4251_v4 = vpop.f32.mrf.mxu3  ;;  %v4574_v45 = vld [vmem:[%s5044_s9 + $0xa0] sm:$0xff] }
 0x5b1   : > { %v4252_v38 = vadd.f32 %v7215_v26, %v4251_v4 }
 0x5b2   : > { %4634 = vst.msk [vmem:[%s7237_s17 + $0x80] sm:$0xff] %vm223_vm1, %v4602_v21  ;;  %v3814_v57 = vpop.permute.xlu0 %3813  ;;  %v4032_v5 = vld [vmem:[#allocation4 + $0x288] sm:$0xff] }
 0x5b3   : > { %3882 = vst.msk [vmem:[#allocation4 + $0x290] sm:$0xff] %vm1017_vm5, %v3814_v57  ;;  %4280 = vmatmul.f32.gmra.mxu3 %v4032_v5  ;;  %v3108_v13 = vpop.permute.xlu2 %3107 }
 0x5b4   : > { %v3104_v61 = vpop.permute.xlu1 %3103  ;;  %3173 = vst.msk [vmem:[#allocation4 + $0x2d0] sm:$0xff] %vm1017_vm5, %v3108_v13  ;;  %v4046_v13 = vld [vmem:[#allocation4 + $0x2f8] sm:$0xff] }
 0x5b5   : > { %3171 = vst.msk [vmem:[#allocation4 + $0x2a0] sm:$0xff] %vm1017_vm5, %v3104_v61 }
 0x5b6   : > { %3691 = vst.msk [vmem:[#allocation4 + $0x2a0] sm:$0xff] %vm752_vm4, %v3624_v0 }
 0x5b8   : > { %v4364_v59 = vpop.f32.mrf.mxu2 }
 0x5b9   : > { %v4365_v60 = vadd.f32 %v4364_v59, %v4252_v38 }
 0x5ba   : > { %v2840_v47 = vpop.permute.xlu0 %2839  ;;  %v4033_v53 = vld [vmem:[#allocation4 + $0x290] sm:$0xff] }
 0x5bb   : > { %v4478_v56 = vadd.f32 %v4477_v33, %v4365_v60  ;;  %2907 = vst.msk [vmem:[#allocation4 + $0x2a8] sm:$0xff] %vm752_vm4, %v2840_v47  ;;  %4393 = vmatmul.f32.gmra.mxu2 %v4033_v53  ;;  %v3364_v0 = vpop.permute.xlu2 %3363  ;;  %v4489_v33 = vpop.f32.mrf.mxu0  ;;  %v4575_v47 = vld [vmem:[%s5044_s9 + $0xa8] sm:$0xff] }
 0x5bc   : > { %v3360_v10 = vpop.permute.xlu1 %3359  ;;  %3235 = vst.msk [vmem:[#allocation4 + $0x2a8] sm:$0xff] %vm223_vm1, %v6839_v8  ;;  %v7522_v8 = vld [vmem:[%s7636_s4] ss:$0 sm:$0xff] }
 0x5bd   : > { %v4539_v58 = vmul.f32 0.1, %v4478_v56  ;;  %v4035_v48 = vld [vmem:[#allocation4 + $0x2a0] sm:$0xff]  ;;  %3427 = vst.msk [vmem:[#allocation4 + $0x2a8] sm:$0xff] %vm558_vm2, %v3360_v10 }
 0x5be   : > { %4283 = vmatmul.f32.gmra.mxu3 %v4035_v48  ;;  %3883 = vst.msk [vmem:[#allocation4 + $0x2a8] sm:$0xff] %vm1017_vm5, %v3816_v9  ;;  %v4254_v25 = vpop.f32.mrf.mxu3 }
 0x5bf   : > { %v4603_v26 = vadd.f32 %v4571_v11, %v4539_v58  ;;  %v4255_v19 = vadd.f32 %v7522_v8, %v4254_v25 }
 0x5c1   : > { %4635 = vst.msk [vmem:[%s7237_s17 + $0x88] sm:$0xff] %vm223_vm1, %v4603_v26 }
 0x5c2   : > { %v3106_v63 = vpop.permute.xlu0 %3105 }
 0x5c3   : > { %3172 = vst.msk [vmem:[#allocation4 + $0x2b8] sm:$0xff] %vm1017_vm5, %v3106_v63  ;;  %v3630_v36 = vpop.permute.xlu2 %3629  ;;  %v4492_v25 = vpop.f32.mrf.mxu0 }
 0x5c4   : > { %v3626_v1 = vpop.permute.xlu1 %3625 }
 0x5c5   : > { %3692 = vst.msk [vmem:[#allocation4 + $0x2b8] sm:$0xff] %vm752_vm4, %v3626_v1  ;;  %v4036_v23 = vld [vmem:[#allocation4 + $0x2a8] sm:$0xff]  ;;  %v4576_v1 = vld [vmem:[%s5044_s9 + $0xb0] sm:$0xff] }
 0x5c6   : > { %v4367_v30 = vpop.f32.mrf.mxu2  ;;  %4396 = vmatmul.f32.gmra.mxu2 %v4036_v23 }
 0x5c7   : > { %v4368_v27 = vadd.f32 %v4367_v30, %v4255_v19 }
 0x5c9   : > { %v4481_v15 = vadd.f32 %v4480_v24, %v4368_v27  ;;  %v4257_v37 = vpop.f32.mrf.mxu3 }
 0x5ca   : > { %v3362_v17 = vpop.permute.xlu0 %3361  ;;  %v4258_v46 = vadd.f32 %v7522_v8, %v4257_v37 }
 0x5cb   : > { %v4540_v51 = vmul.f32 0.1, %v4481_v15  ;;  %3428 = vst.msk [vmem:[#allocation4 + $0x2c0] sm:$0xff] %vm558_vm2, %v3362_v17  ;;  %v3822_v5 = vpop.permute.xlu2 %3821  ;;  %v4495_v15 = vpop.f32.mrf.mxu0  ;;  %v4577_v17 = vld [vmem:[%s5044_s9 + $0xb8] sm:$0xff] }
 0x5cc   : > { %v3818_v62 = vpop.permute.xlu1 %3817  ;;  %v4038_v32 = vld [vmem:[#allocation4 + $0x2b8] sm:$0xff] }
 0x5cd   : > { %3884 = vst.msk [vmem:[#allocation4 + $0x2c0] sm:$0xff] %vm1017_vm5, %v3818_v62  ;;  %4286 = vmatmul.f32.gmra.mxu3 %v4038_v32  ;;  %v4604_v14 = vadd.f32 %v4572_v2, %v4540_v51 }
 0x5cf   : > { %4636 = vst.msk [vmem:[%s7237_s17 + $0x90] sm:$0xff] %vm223_vm1, %v4604_v14 }
 0x5d1   : > { %v4370_v52 = vpop.f32.mrf.mxu2 }
 0x5d2   : > { %v4371_v43 = vadd.f32 %v4370_v52, %v4258_v46  ;;  %v3628_v50 = vpop.permute.xlu0 %3627  ;;  %v4578_v52 = vld [vmem:[%s5044_s9 + $0xc0] sm:$0xff] }
 0x5d3   : > { %3693 = vst.msk [vmem:[#allocation4 + $0x2d0] sm:$0xff] %vm752_vm4, %v3628_v50  ;;  %v4498_v46 = vpop.f32.mrf.mxu0 }
 0x5d4   : > { %v2844_v40 = vpop.permute.xlu1 %2843  ;;  %v4039_v41 = vld [vmem:[#allocation4 + $0x2c0] sm:$0xff]  ;;  %v4484_v31 = vadd.f32 %v4483_v39, %v4371_v43 }
 0x5d5   : > { %2909 = vst.msk [vmem:[#allocation4 + $0x2d8] sm:$0xff] %vm752_vm4, %v2844_v40  ;;  %4399 = vmatmul.f32.gmra.mxu2 %v4039_v41 }
 0x5d6   : > { %3237 = vst.msk [vmem:[#allocation4 + $0x2d8] sm:$0xff] %vm223_vm1, %v6873_v29  ;;  %v4541_v34 = vmul.f32 0.1, %v4484_v31 }
 0x5d7   : > { %3429 = vst.msk [vmem:[#allocation4 + $0x2d8] sm:$0xff] %vm558_vm2, %v3364_v0 }
 0x5d8   : > { %v4605_v9 = vadd.f32 %v4573_v18, %v4541_v34  ;;  %v4260_v28 = vpop.f32.mrf.mxu3 }
 0x5d9   : > { %v4261_v29 = vadd.f32 %v7522_v8, %v4260_v28 }
 0x5da   : > { %4637 = vst.msk [vmem:[%s7237_s17 + $0x98] sm:$0xff] %vm223_vm1, %v4605_v9  ;;  %v3820_v35 = vpop.permute.xlu0 %3819  ;;  %v4041_v16 = vld [vmem:[#allocation4 + $0x2d0] sm:$0xff]  ;;  %v4579_v9 = vld [vmem:[%s5044_s9 + $0xc8] sm:$0xff] }
 0x5db   : > { %3885 = vst.msk [vmem:[#allocation4 + $0x2d8] sm:$0xff] %vm1017_vm5, %v3820_v35  ;;  %4289 = vmatmul.f32.gmra.mxu3 %v4041_v16  ;;  %v4501_v18 = vpop.f32.mrf.mxu0 }
 0x5dc   : > { %v3110_v6 = vpop.permute.xlu1 %3109 }
 0x5dd   : > { %3174 = vst.msk [vmem:[#allocation4 + $0x2e8] sm:$0xff] %vm1017_vm5, %v3110_v6 }
 0x5de   : > { %3694 = vst.msk [vmem:[#allocation4 + $0x2e8] sm:$0xff] %vm752_vm4, %v3630_v36 }
 0x5e0   : > { %v4373_v7 = vpop.f32.mrf.mxu2 }
 0x5e1   : > { %v4374_v3 = vadd.f32 %v4373_v7, %v4261_v29 }
 0x5e2   : > { %v2846_v49 = vpop.permute.xlu0 %2845  ;;  %v4042_v54 = vld [vmem:[#allocation4 + $0x2d8] sm:$0xff] }
 0x5e3   : > { %v4487_v22 = vadd.f32 %v4486_v55, %v4374_v3  ;;  %2910 = vst.msk [vmem:[#allocation4 + $0x2f0] sm:$0xff] %vm752_vm4, %v2846_v49  ;;  %4402 = vmatmul.f32.gmra.mxu2 %v4042_v54  ;;  %v4504_v7 = vpop.f32.mrf.mxu0  ;;  %v4580_v55 = vld [vmem:[%s5044_s9 + $0xd0] sm:$0xff] }
 0x5e4   : > { %v3366_v12 = vpop.permute.xlu1 %3365  ;;  %3238 = vst.msk [vmem:[#allocation4 + $0x2f0] sm:$0xff] %vm223_vm1, %v6885_v42 }
 0x5e5   : > { %v4542_v21 = vmul.f32 0.1, %v4487_v22  ;;  %v4044_v57 = vld [vmem:[#allocation4 + $0x2e8] sm:$0xff]  ;;  %3430 = vst.msk [vmem:[#allocation4 + $0x2f0] sm:$0xff] %vm558_vm2, %v3366_v12 }
 0x5e6   : > { %4292 = vmatmul.f32.gmra.mxu3 %v4044_v57  ;;  %3886 = vst.msk [vmem:[#allocation4 + $0x2f0] sm:$0xff] %vm1017_vm5, %v3822_v5  ;;  %v4263_v61 = vpop.f32.mrf.mxu3 }
 0x5e7   : > { %v4606_v4 = vadd.f32 %v4574_v45, %v4542_v21  ;;  %v4264_v38 = vadd.f32 %v7522_v8, %v4263_v61 }
 0x5e9   : > { %4638 = vst.msk [vmem:[%s7237_s17 + $0xa0] sm:$0xff] %vm223_vm1, %v4606_v4  ;;  %v4581_v4 = vld [vmem:[%s5044_s9 + $0xd8] sm:$0xff] }
 0x5eb   : > { %v4507_v57 = vpop.f32.mrf.mxu0 }
 0x5ed   : > { %v4045_v59 = vld [vmem:[#allocation4 + $0x2f0] sm:$0xff] }
 0x5ee   : > { %4798 = vmatmul.msk.f32.vlgmr.msra.gmra.mxu3 %vm223_vm1, %v4046_v13  ;;  %v4376_v42 = vpop.f32.mrf.mxu2  ;;  %4405 = vmatmul.f32.gmra.mxu2 %v4045_v59 }
 0x5ef   : > { %v4377_v60 = vadd.f32 %v4376_v42, %v4264_v38 }
 0x5f1   : > { %v4490_v56 = vadd.f32 %v4489_v33, %v4377_v60  ;;  %v4266_v10 = vpop.f32.mrf.mxu3 }
 0x5f2   : > { %v4267_v58 = vadd.f32 %v7522_v8, %v4266_v10 }
 0x5f3   : > { %v4543_v53 = vmul.f32 0.1, %v4490_v56  ;;  %v4510_v33 = vpop.f32.mrf.mxu0 }
 0x5f5   : > { %v4607_v11 = vadd.f32 %v4575_v47, %v4543_v53  ;;  %v4582_v47 = vld [vmem:[%s5044_s9 + $0xe0] sm:$0xff] }
 0x5f7   : > { %4639 = vst.msk [vmem:[%s7237_s17 + $0xa8] sm:$0xff] %vm223_vm1, %v4607_v11 }
 0x5f9   : > { %v4379_v48 = vpop.f32.mrf.mxu2 }
 0x5fa   : > { %v4380_v26 = vadd.f32 %v4379_v48, %v4267_v58 }
 0x5fc   : > { %v4493_v63 = vadd.f32 %v4492_v25, %v4380_v26  ;;  %v4513_v25 = vpop.f32.mrf.mxu0 }
 0x5fe   : > { %v4544_v19 = vmul.f32 0.1, %v4493_v63 }
 0x600   : > { %v4608_v23 = vadd.f32 %v4576_v1, %v4544_v19  ;;  %v4269_v30 = vpop.f32.mrf.mxu3  ;;  %v4583_v1 = vld [vmem:[%s5044_s9 + $0xe8] sm:$0xff] }
 0x601   : > { %v4270_v27 = vadd.f32 %v7522_v8, %v4269_v30 }
 0x602   : > { %4640 = vst.msk [vmem:[%s7237_s17 + $0xb0] sm:$0xff] %vm223_vm1, %v4608_v23 }
 0x608   : > { %v4382_v24 = vpop.f32.mrf.mxu2 }
 0x609   : > { %v4383_v20 = vadd.f32 %v4382_v24, %v4270_v27 }
 0x60b   : > { %v4496_v2 = vadd.f32 %v4495_v15, %v4383_v20 }
 0x60d   : > { %v4545_v51 = vmul.f32 0.1, %v4496_v2 }
 0x60e   : > { %v4272_v32 = vpop.f32.mrf.mxu3 }
 0x60f   : > { %v4609_v62 = vadd.f32 %v4577_v17, %v4545_v51  ;;  %v4273_v14 = vadd.f32 %v7522_v8, %v4272_v32  ;;  %v4584_v51 = vld [vmem:[%s5044_s9 + $0xf0] sm:$0xff] }
 0x611   : > { %4641 = vst.msk [vmem:[%s7237_s17 + $0xb8] sm:$0xff] %vm223_vm1, %v4609_v62 }
 0x616   : > { %v4385_v37 = vpop.f32.mrf.mxu2 }
 0x617   : > { %v4386_v0 = vadd.f32 %v4385_v37, %v4273_v14 }
 0x619   : > { %v4499_v44 = vadd.f32 %v4498_v46, %v4386_v0  ;;  %v4275_v39 = vpop.f32.mrf.mxu3 }
 0x61a   : > { %v4276_v40 = vadd.f32 %v7522_v8, %v4275_v39 }
 0x61b   : > { %v4546_v43 = vmul.f32 0.1, %v4499_v44 }
 0x61d   : > { %v4610_v50 = vadd.f32 %v4578_v52, %v4546_v43  ;;  %v4516_v20 = vpop.f32.mrf.mxu0  ;;  %v4585_v52 = vld [vmem:[%s5044_s9 + $0xf8] sm:$0xff] }
 0x61f   : > { %4642 = vst.msk [vmem:[%s7237_s17 + $0xc0] sm:$0xff] %vm223_vm1, %v4610_v50 }
 0x621   : > { %v4388_v41 = vpop.f32.mrf.mxu2 }
 0x622   : > { %v4389_v31 = vadd.f32 %v4388_v41, %v4276_v40 }
 0x624   : > { %v4502_v34 = vadd.f32 %v4501_v18, %v4389_v31 }
 0x626   : > { %v4547_v36 = vmul.f32 0.1, %v4502_v34 }
 0x628   : > { %v4611_v35 = vadd.f32 %v4579_v9, %v4547_v36  ;;  %v4278_v16 = vpop.f32.mrf.mxu3 }
 0x629   : > { %v4279_v28 = vadd.f32 %v7522_v8, %v4278_v16 }
 0x62a   : > { %4643 = vst.msk [vmem:[%s7237_s17 + $0xc8] sm:$0xff] %vm223_vm1, %v4611_v35 }
 0x630   : > { %v4391_v6 = vpop.f32.mrf.mxu2 }
 0x631   : > { %v4392_v29 = vadd.f32 %v4391_v6, %v4279_v28 }
 0x633   : > { %v4505_v3 = vadd.f32 %v4504_v7, %v4392_v29 }
 0x635   : > { %v4548_v22 = vmul.f32 0.1, %v4505_v3 }
 0x636   : > { %v4281_v54 = vpop.f32.mrf.mxu3 }
 0x637   : > { %v4612_v49 = vadd.f32 %v4580_v55, %v4548_v22  ;;  %v4282_v45 = vadd.f32 %v7522_v8, %v4281_v54 }
 0x639   : > { %4644 = vst.msk [vmem:[%s7237_s17 + $0xd0] sm:$0xff] %vm223_vm1, %v4612_v49 }
 0x63e   : > { %v4394_v12 = vpop.f32.mrf.mxu2 }
 0x63f   : > { %v4395_v21 = vadd.f32 %v4394_v12, %v4282_v45 }
 0x641   : > { %v4508_v5 = vadd.f32 %v4507_v57, %v4395_v21  ;;  %v4284_v38 = vpop.f32.mrf.mxu3 }
 0x642   : > { %v4285_v59 = vadd.f32 %v7522_v8, %v4284_v38 }
 0x643   : > { %v4549_v61 = vmul.f32 0.1, %v4508_v5 }
 0x645   : > { %v4613_v13 = vadd.f32 %v4581_v4, %v4549_v61 }
 0x647   : > { %4645 = vst.msk [vmem:[%s7237_s17 + $0xd8] sm:$0xff] %vm223_vm1, %v4613_v13 }
 0x649   : > { %v4397_v42 = vpop.f32.mrf.mxu2 }
 0x64a   : > { %v4398_v60 = vadd.f32 %v4397_v42, %v4285_v59 }
 0x64c   : > { %v4511_v56 = vadd.f32 %v4510_v33, %v4398_v60 }
 0x64e   : > { %v4550_v53 = vmul.f32 0.1, %v4511_v56 }
 0x650   : > { %v4614_v11 = vadd.f32 %v4582_v47, %v4550_v53  ;;  %v4287_v10 = vpop.f32.mrf.mxu3 }
 0x651   : > { %v4288_v58 = vadd.f32 %v7522_v8, %v4287_v10 }
 0x652   : > { %4646 = vst.msk [vmem:[%s7237_s17 + $0xe0] sm:$0xff] %vm223_vm1, %v4614_v11 }
 0x658   : > { %v4400_v48 = vpop.f32.mrf.mxu2 }
 0x659   : > { %v4401_v26 = vadd.f32 %v4400_v48, %v4288_v58 }
 0x65b   : > { %v4514_v63 = vadd.f32 %v4513_v25, %v4401_v26 }
 0x65d   : > { %v4551_v19 = vmul.f32 0.1, %v4514_v63 }
 0x65e   : > { %v4290_v30 = vpop.f32.mrf.mxu3 }
 0x65f   : > { %v4615_v23 = vadd.f32 %v4583_v1, %v4551_v19  ;;  %v4291_v27 = vadd.f32 %v7522_v8, %v4290_v30 }
 0x661   : > { %4647 = vst.msk [vmem:[%s7237_s17 + $0xe8] sm:$0xff] %vm223_vm1, %v4615_v23 }
 0x666   : > { %v4403_v24 = vpop.f32.mrf.mxu2 }
 0x667   : > { %v4404_v15 = vadd.f32 %v4403_v24, %v4291_v27 }
 0x669   : > { %v4293_v2 = vpop.f32.mrf.mxu3  ;;  %v4517_v17 = vadd.f32 %v4516_v20, %v4404_v15 }
 0x66a   : > { %v4294_v14 = vadd.f32 %v7522_v8, %v4293_v2 }
 0x66b   : > { %v4552_v62 = vmul.f32 0.1, %v4517_v17 }
 0x66d   : > { %v4616_v32 = vadd.f32 %v4584_v51, %v4552_v62 }
 0x66f   : > { %4648 = vst.msk [vmem:[%s7237_s17 + $0xf0] sm:$0xff] %vm223_vm1, %v4616_v32 }
 0x671   : > { %v4406_v37 = vpop.f32.mrf.mxu2  ;;  %v4519_v0 = vpop.f32.mrf.mxu3 }
 0x672   : > { %v4407_v46 = vadd.f32 %v4406_v37, %v4294_v14 }
 0x674   : > { %v4520_v44 = vadd.f32 %v4519_v0, %v4407_v46 }
 0x676   : > { %v4553_v43 = vmul.f32 0.1, %v4520_v44 }
 0x678   : > { %v4617_v50 = vadd.f32 %v4585_v52, %v4553_v43 }
 0x67a   : > { %4649 = vst.msk [vmem:[%s7237_s17 + $0xf8] sm:$0xff] %vm223_vm1, %v4617_v50 }
 0x67b   : > { %4910 = shalt.err (!%p4907_p3)
}
 0x67c   : > { %s4951_s15 = smov 128   ;;  %s4952_s17 = smov 8  }
 0x67d   : > { %4830 = dma.vmem_to_hbm [thread:$0]  (%p5021_p5), %s4664_s30, 4096, %s4666_s6, %s4651_s22, %s4951_s15, %s4951_s15, %s4952_s17  }
 0x67e PF: > { %p4836_p4 = scmp.ge.s32.totalorder %s4945_s21, 2  ;;  %s4680_s11 = sand.u32 1, %s4933_s18  }
 0x67f   : > { %s4681_s12 = scalar_lea.sflag [#allocation6], %s4680_s11 }
 0x680   : > { %p4833_p7 = pnand %p4836_p4, %p5025_p6 }
 0x682   : > { %p4834_p8 = pneg %p4833_p7 }
 0x684   : > { %4928 = dma.done.wait (%p4834_p8), %s4681_s12, 4096  }
 0x685   : > { %4930 = vsyncadd (%p4834_p8), %s4681_s12, 4294963200  ;;  %p15_p9 = scmp.ge.s32.totalorder %s5008_s24, 4   ;;  %s7640_s18 = smov %s4937_s19 }
 0x686   : > { %s7641_s19 = smov %s4941_s20  ;;  %s7642_s20 = smov %s5019_s27 }
 0x687   : > { %s7643_s21 = smov %s5008_s24  ;;  %17 = sbr.rel (!%p15_p9) target bundleno = 3 (0x3), region = 80 }
 0x68c   :  { %4687 = vsyncpa [#allocation6], 1 }
 0x68d   :  { %4689 = vsyncpa [#allocation6 + $0x1], 1 }

</bundles_post_ra>
